<compile_context>
chip_gen: v5e
topology: v5e:2x2
jax: 0.10.0
libtpu: 0.0.40
codegen_flags: <defaults>
</compile_context>

<pallas_src>
import functools
import math

import jax
import jax.numpy as jnp
from jax.experimental import pallas as pl
from jax.experimental.pallas import tpu as pltpu

_CPAD = 8          # pad channel counts to a multiple of 8 (f32 sublane tile)
_LANE_CAP = 2048   # max packed lane width (btile * H * W)


def _round_up(n, m):
    return ((n + m - 1) // m) * m


def _choose_btile(B, HW, cap=_LANE_CAP):
    best = 1
    for d in range(1, B + 1):
        if B % d == 0 and d * HW <= cap:
            best = d
    return best


# ------------------------------ fused kernel --------------------------------


def _attention_block_kernel(x_ref, masks_ref,
                            w0, b0, w1, b1, w2, b2, w3, b3, w4, b4, w5, b5,
                            wf, bf, o_ref, *, W, HW, btile):
    LW = btile * HW

    def conv3x3_relu(act, w_ref, b_ref):
        # act: (Cin_p, LW) f32; w_ref: (9, Cout_p, Cin_p) bf16; b_ref: (Cout_p, 1) f32
        # Center tap first (no roll / mask needed).
        acc = jnp.dot(w_ref[4], act.astype(jnp.bfloat16),
                      preferred_element_type=jnp.float32)
        t = 0
        for dy in (-1, 0, 1):
            for dx in (-1, 0, 1):
                off = dy * W + dx
                if off != 0:
                    # Load the border mask at point of use (short live range).
                    mask = masks_ref[pl.ds(t, 1), :]                 # (1, LW)
                    # tap[p] = act[p + off], zeroed outside the image; lane
                    # rotation on the XLU + mask multiply on the VPU.
                    rolled = pltpu.roll(act, shift=(-off) % LW, axis=1)
                    tap = (rolled * mask).astype(jnp.bfloat16)
                    acc = acc + jnp.dot(w_ref[t], tap,
                                        preferred_element_type=jnp.float32)
                t += 1
        return jnp.maximum(acc + b_ref[...], 0.0)

    act = x_ref[0]                                                   # (C0_p, LW)
    for w_r, b_r in ((w0, b0), (w1, b1), (w2, b2), (w3, b3), (w4, b4), (w5, b5)):
        act = conv3x3_relu(act, w_r, b_r)

    # 1x1 conv (no ReLU), channel-major (C, LW) output.
    logits = jnp.dot(wf[...], act.astype(jnp.bfloat16),
                     preferred_element_type=jnp.float32) + bf[...]

    # Spatial softmax, independently per packed 256-lane image segment.
    for bi in range(btile):
        seg = logits[:, bi * HW:(bi + 1) * HW]
        m = jnp.max(seg, axis=-1, keepdims=True)
        e = jnp.exp(seg - m)
        s = jnp.sum(e, axis=-1, keepdims=True)
        o_ref[0, bi] = (e / s).astype(o_ref.dtype)


# --------------------------- host-side packing (once) ------------------------


def _tap_masks(H, W):
    """(9, H*W) f32: mask[t, p] == 1 iff the (dy, dx) neighbour of pixel p is in-bounds."""
    HW = H * W
    y = jnp.arange(HW, dtype=jnp.int32) // W
    x = jnp.arange(HW, dtype=jnp.int32) % W
    rows = []
    for dy in (-1, 0, 1):
        for dx in (-1, 0, 1):
            valid = jnp.ones((HW,), dtype=bool)
            if dy == -1:
                valid = valid & (y > 0)
            elif dy == 1:
                valid = valid & (y < H - 1)
            if dx == -1:
                valid = valid & (x > 0)
            elif dx == 1:
                valid = valid & (x < W - 1)
            rows.append(valid.astype(jnp.float32))
    return jnp.stack(rows, axis=0)


def _pack_conv3x3(w, b, cin_p, cout_p):
    """Torch (Cout,Cin,3,3)/(Cout,) -> tap-major bf16 (9, cout_p, cin_p), f32 (cout_p, 1)."""
    cout, cin = int(w.shape[0]), int(w.shape[1])
    wp = jnp.zeros((cout_p, cin_p, 3, 3), jnp.float32).at[:cout, :cin].set(w)
    w9 = jnp.transpose(wp, (2, 3, 0, 1)).reshape(9, cout_p, cin_p).astype(jnp.bfloat16)
    b_col = jnp.zeros((cout_p, 1), jnp.float32).at[:cout, 0].set(b)
    return w9, b_col


def _pack_conv1x1(w, b, cin_p, cout_p):
    cout, cin = int(w.shape[0]), int(w.shape[1])
    w_mat = jnp.zeros((cout_p, cin_p), jnp.float32).at[:cout, :cin].set(
        w.reshape(cout, cin)).astype(jnp.bfloat16)
    b_col = jnp.zeros((cout_p, 1), jnp.float32).at[:cout, 0].set(b)
    return w_mat, b_col


def make_attention_block(params, H, W, *, btile=None):
    """Pack weights/masks once; return a jitted forward: (B,1,H,W) -> (B,C_out,H,W)."""
    HW = H * W

    flat = []
    for name in ("0_0", "0_1", "1_0", "1_1", "2_0", "2_1"):
        w, b = params[name]
        cout, cin = int(w.shape[0]), int(w.shape[1])
        flat += list(_pack_conv3x3(w, b, _round_up(cin, _CPAD),
                                   _round_up(cout, _CPAD)))
    wf, bf = params["2_2"]
    cfin, clast = int(wf.shape[0]), int(wf.shape[1])
    cfin_p = _round_up(cfin, _CPAD)
    flat += list(_pack_conv1x1(wf, bf, _round_up(clast, _CPAD), cfin_p))
    flat = tuple(jax.device_put(a) for a in flat)

    cin0 = int(params["0_0"][0].shape[1])                  # input channels (=1)
    cin0_p = _round_up(cin0, _CPAD)
    masks_base = jax.device_put(_tap_masks(H, W))          # (9, HW) f32
    fixed_btile = btile

    @jax.jit
    def forward(x):
        B = x.shape[0]
        bt = fixed_btile if fixed_btile is not None else _choose_btile(B, HW)
        LW = bt * HW

        # Lane-pack bt images per grid step: (B/bt, C0_p, bt*HW).
        x_flat = jnp.pad(x.astype(jnp.float32).reshape(B, cin0, HW),
                         ((0, 0), (0, cin0_p - cin0), (0, 0)))
        x_packed = (x_flat.reshape(B // bt, bt, cin0_p, HW)
                    .transpose(0, 2, 1, 3).reshape(B // bt, cin0_p, LW))
        masks = jnp.tile(masks_base, (1, bt))              # (9, LW)

        kernel = functools.partial(_attention_block_kernel, W=W, HW=HW, btile=bt)

        def whole(arr):
            nd = arr.ndim
            return pl.BlockSpec(arr.shape, lambda g, _nd=nd: (0,) * _nd)

        out = pl.pallas_call(
            kernel,
            out_shape=jax.ShapeDtypeStruct((B // bt, bt, cfin_p, HW), jnp.float32),
            grid=(B // bt,),
            in_specs=[pl.BlockSpec((1, cin0_p, LW), lambda g: (g, 0, 0)),
                      whole(masks)] + [whole(a) for a in flat],
            out_specs=pl.BlockSpec((1, bt, cfin_p, HW), lambda g: (g, 0, 0, 0)),
            compiler_params=pltpu.CompilerParams(
                dimension_semantics=("parallel",),
                vmem_limit_bytes=32 * 1024 * 1024),
        )(x_packed, masks, *flat)

        return out.reshape(B, cfin_p, HW)[:, :cfin, :].reshape(B, cfin, H, W)

    return forward


# ------------------------- parameters & reference ----------------------------


def _init_conv(key, cout, cin, kh, kw):
    # Mimics torch's default Conv2d init: U(-1/sqrt(fan_in), +1/sqrt(fan_in)).
    wk, bk = jax.random.split(key)
    bound = 1.0 / math.sqrt(cin * kh * kw)
    w = jax.random.uniform(wk, (cout, cin, kh, kw), jnp.float32, -bound, bound)
    b = jax.random.uniform(bk, (cout,), jnp.float32, -bound, bound)
    return w, b


def make_params(key, init_channels, inc_rate):
    c0 = init_channels
    c1 = c0 * inc_rate
    c2 = c1 * inc_rate
    specs = [("0_0", c0, 1, 3, 3), ("0_1", c0, c0, 3, 3),
             ("1_0", c1, c0, 3, 3), ("1_1", c1, c1, 3, 3),
             ("2_0", c2, c1, 3, 3), ("2_1", c2, c2, 3, 3),
             ("2_2", c2 // 2, c2, 1, 1)]
    keys = jax.random.split(key, len(specs))
    return {name: _init_conv(k, co, ci, kh, kw)
            for k, (name, co, ci, kh, kw) in zip(keys, specs)}


def _reference_forward(x_nchw, params):
    """Pure-JAX (XLA conv, f32) reference of AttentionBlock.forward."""
    out = x_nchw
    for name in ("0_0", "0_1", "1_0", "1_1", "2_0", "2_1"):
        w, b = params[name]
        out = jax.lax.conv_general_dilated(
            out, w, window_strides=(1, 1), padding=((1, 1), (1, 1)),
            dimension_numbers=("NCHW", "OIHW", "NCHW"))
        out = jnp.maximum(out + b[None, :, None, None], 0.0)
    w, b = params["2_2"]
    out = jax.lax.conv_general_dilated(
        out, w, window_strides=(1, 1), padding=((0, 0), (0, 0)),
        dimension_numbers=("NCHW", "OIHW", "NCHW")) + b[None, :, None, None]
    B, C, H, W = out.shape
    return jax.nn.softmax(out.reshape(B, C, H * W), axis=-1).reshape(B, C, H, W)


# ----------------------------------- main ------------------------------------


if __name__ == "__main__":
    B, H, W = 2, 16, 16
    init_channels, inc_rate = 4, 2

    kx, kp = jax.random.split(jax.random.PRNGKey(0))
    x = jax.random.normal(kx, (B, 1, H, W), jnp.float32)        # torch-style NCHW
    params = make_params(kp, init_channels, inc_rate)

    forward = make_attention_block(params, H, W)    # one-time weight/mask packing
    out = jax.block_until_ready(forward(x))

    c_out = init_channels * inc_rate * inc_rate // 2            # 8
    assert out.shape == (B, c_out, H, W), out.shape

    # softmax over the spatial axis must sum to ~1 per (batch, channel)
    sums = jnp.sum(out.reshape(B, c_out, H * W), axis=-1)
    assert bool(jnp.allclose(sums, 1.0, atol=1e-3)), sums

    # full-value check against a pure-JAX / XLA f32 conv reference
    # (bf16 MXU operands -> slightly loosened tolerance)
    ref = jax.block_until_ready(_reference_forward(x, params))
    assert bool(jnp.allclose(out, ref, atol=2e-3, rtol=2e-2)), (
        float(jnp.max(jnp.abs(out - ref))))

    print("KERNEL_OK")
</pallas_src>

<mosaic_0001>
module attributes {stable_mosaic.version = 11 : i64} {
  func.func @_attention_block_kernel(%arg0: i32, %arg1: memref<1x8x512xf32, #tpu.memory_space<vmem>>, %arg2: memref<9x512xf32, #tpu.memory_space<vmem>>, %arg3: memref<9x8x8xbf16, #tpu.memory_space<vmem>>, %arg4: memref<8x1xf32, #tpu.memory_space<vmem>>, %arg5: memref<9x8x8xbf16, #tpu.memory_space<vmem>>, %arg6: memref<8x1xf32, #tpu.memory_space<vmem>>, %arg7: memref<9x8x8xbf16, #tpu.memory_space<vmem>>, %arg8: memref<8x1xf32, #tpu.memory_space<vmem>>, %arg9: memref<9x8x8xbf16, #tpu.memory_space<vmem>>, %arg10: memref<8x1xf32, #tpu.memory_space<vmem>>, %arg11: memref<9x16x8xbf16, #tpu.memory_space<vmem>>, %arg12: memref<16x1xf32, #tpu.memory_space<vmem>>, %arg13: memref<9x16x16xbf16, #tpu.memory_space<vmem>>, %arg14: memref<16x1xf32, #tpu.memory_space<vmem>>, %arg15: memref<8x16xbf16, #tpu.memory_space<vmem>>, %arg16: memref<8x1xf32, #tpu.memory_space<vmem>>, %arg17: memref<1x2x8x256xf32, #tpu.memory_space<vmem>>) attributes {dimension_semantics = [#tpu.dimension_semantics<parallel>], iteration_bounds = array<i64: 1>, scalar_prefetch = 0 : i64, scratch_operands = 0 : i64, tpu.core_type = #tpu.core_type<tc>, window_params = [{transform_indices = @transform_0, window_bounds = array<i64: 1, 8, 512>}, {pipeline_mode = #tpu.pipeline_mode<synchronous>, transform_indices = @transform_1, window_bounds = array<i64: 9, 512>}, {pipeline_mode = #tpu.pipeline_mode<synchronous>, transform_indices = @transform_2, window_bounds = array<i64: 9, 8, 8>}, {pipeline_mode = #tpu.pipeline_mode<synchronous>, transform_indices = @transform_3, window_bounds = array<i64: 8, 1>}, {pipeline_mode = #tpu.pipeline_mode<synchronous>, transform_indices = @transform_4, window_bounds = array<i64: 9, 8, 8>}, {pipeline_mode = #tpu.pipeline_mode<synchronous>, transform_indices = @transform_5, window_bounds = array<i64: 8, 1>}, {pipeline_mode = #tpu.pipeline_mode<synchronous>, transform_indices = @transform_6, window_bounds = array<i64: 9, 8, 8>}, {pipeline_mode = #tpu.pipeline_mode<synchronous>, transform_indices = @transform_7, window_bounds = array<i64: 8, 1>}, {pipeline_mode = #tpu.pipeline_mode<synchronous>, transform_indices = @transform_8, window_bounds = array<i64: 9, 8, 8>}, {pipeline_mode = #tpu.pipeline_mode<synchronous>, transform_indices = @transform_9, window_bounds = array<i64: 8, 1>}, {pipeline_mode = #tpu.pipeline_mode<synchronous>, transform_indices = @transform_10, window_bounds = array<i64: 9, 16, 8>}, {pipeline_mode = #tpu.pipeline_mode<synchronous>, transform_indices = @transform_11, window_bounds = array<i64: 16, 1>}, {pipeline_mode = #tpu.pipeline_mode<synchronous>, transform_indices = @transform_12, window_bounds = array<i64: 9, 16, 16>}, {pipeline_mode = #tpu.pipeline_mode<synchronous>, transform_indices = @transform_13, window_bounds = array<i64: 16, 1>}, {pipeline_mode = #tpu.pipeline_mode<synchronous>, transform_indices = @transform_14, window_bounds = array<i64: 8, 16>}, {pipeline_mode = #tpu.pipeline_mode<synchronous>, transform_indices = @transform_15, window_bounds = array<i64: 8, 1>}, {transform_indices = @transform_16, window_bounds = array<i64: 1, 2, 8, 256>}]} {
    %c0 = arith.constant 0 : index
    %c0_0 = arith.constant 0 : index
    %c0_1 = arith.constant 0 : index
    %0 = vector.load %arg1[%c0, %c0_0, %c0_1] : memref<1x8x512xf32, #tpu.memory_space<vmem>>, vector<1x8x512xf32>
    %1 = vector.shape_cast %0 : vector<1x8x512xf32> to vector<8x512xf32>
    %c4 = arith.constant 4 : index
    %c0_2 = arith.constant 0 : index
    %c0_3 = arith.constant 0 : index
    %2 = vector.load %arg3[%c4, %c0_2, %c0_3] : memref<9x8x8xbf16, #tpu.memory_space<vmem>>, vector<1x8x8xbf16>
    %3 = vector.shape_cast %2 : vector<1x8x8xbf16> to vector<8x8xbf16>
    %4 = arith.truncf %1 : vector<8x512xf32> to vector<8x512xbf16>
    %cst = arith.constant dense<0.000000e+00> : vector<8x512xf32>
    %5 = tpu.matmul %3, %4, %cst {dimension_numbers = #tpu.dot_dimension_numbers<[1], [0], [0], [1], [0, 0, 1, 1], [], []>} : vector<8x8xbf16>, vector<8x512xbf16>, vector<8x512xf32> -> vector<8x512xf32>
    %c0_4 = arith.constant 0 : index
    %c0_5 = arith.constant 0 : index
    %6 = vector.load %arg2[%c0_4, %c0_5] : memref<9x512xf32, #tpu.memory_space<vmem>>, vector<1x512xf32>
    %c17_i32 = arith.constant 17 : i32
    %7 = tpu.dynamic_rotate %1 by %c17_i32 dim 1 : vector<8x512xf32>, i32 -> vector<8x512xf32>
    %8 = vector.broadcast %6 : vector<1x512xf32> to vector<8x512xf32>
    %9 = arith.mulf %7, %8 : vector<8x512xf32>
    %10 = arith.truncf %9 : vector<8x512xf32> to vector<8x512xbf16>
    %c0_6 = arith.constant 0 : index
    %c0_7 = arith.constant 0 : index
    %c0_8 = arith.constant 0 : index
    %11 = vector.load %arg3[%c0_6, %c0_7, %c0_8] : memref<9x8x8xbf16, #tpu.memory_space<vmem>>, vector<1x8x8xbf16>
    %12 = vector.shape_cast %11 : vector<1x8x8xbf16> to vector<8x8xbf16>
    %cst_9 = arith.constant dense<0.000000e+00> : vector<8x512xf32>
    %13 = tpu.matmul %12, %10, %cst_9 {dimension_numbers = #tpu.dot_dimension_numbers<[1], [0], [0], [1], [0, 0, 1, 1], [], []>} : vector<8x8xbf16>, vector<8x512xbf16>, vector<8x512xf32> -> vector<8x512xf32>
    %14 = arith.addf %5, %13 : vector<8x512xf32>
    %c1 = arith.constant 1 : index
    %c0_10 = arith.constant 0 : index
    %15 = vector.load %arg2[%c1, %c0_10] : memref<9x512xf32, #tpu.memory_space<vmem>>, vector<1x512xf32>
    %c16_i32 = arith.constant 16 : i32
    %16 = tpu.dynamic_rotate %1 by %c16_i32 dim 1 : vector<8x512xf32>, i32 -> vector<8x512xf32>
    %17 = vector.broadcast %15 : vector<1x512xf32> to vector<8x512xf32>
    %18 = arith.mulf %16, %17 : vector<8x512xf32>
    %19 = arith.truncf %18 : vector<8x512xf32> to vector<8x512xbf16>
    %c1_11 = arith.constant 1 : index
    %c0_12 = arith.constant 0 : index
    %c0_13 = arith.constant 0 : index
    %20 = vector.load %arg3[%c1_11, %c0_12, %c0_13] : memref<9x8x8xbf16, #tpu.memory_space<vmem>>, vector<1x8x8xbf16>
    %21 = vector.shape_cast %20 : vector<1x8x8xbf16> to vector<8x8xbf16>
    %cst_14 = arith.constant dense<0.000000e+00> : vector<8x512xf32>
    %22 = tpu.matmul %21, %19, %cst_14 {dimension_numbers = #tpu.dot_dimension_numbers<[1], [0], [0], [1], [0, 0, 1, 1], [], []>} : vector<8x8xbf16>, vector<8x512xbf16>, vector<8x512xf32> -> vector<8x512xf32>
    %23 = arith.addf %14, %22 : vector<8x512xf32>
    %c2 = arith.constant 2 : index
    %c0_15 = arith.constant 0 : index
    %24 = vector.load %arg2[%c2, %c0_15] : memref<9x512xf32, #tpu.memory_space<vmem>>, vector<1x512xf32>
    %c15_i32 = arith.constant 15 : i32
    %25 = tpu.dynamic_rotate %1 by %c15_i32 dim 1 : vector<8x512xf32>, i32 -> vector<8x512xf32>
    %26 = vector.broadcast %24 : vector<1x512xf32> to vector<8x512xf32>
    %27 = arith.mulf %25, %26 : vector<8x512xf32>
    %28 = arith.truncf %27 : vector<8x512xf32> to vector<8x512xbf16>
    %c2_16 = arith.constant 2 : index
    %c0_17 = arith.constant 0 : index
    %c0_18 = arith.constant 0 : index
    %29 = vector.load %arg3[%c2_16, %c0_17, %c0_18] : memref<9x8x8xbf16, #tpu.memory_space<vmem>>, vector<1x8x8xbf16>
    %30 = vector.shape_cast %29 : vector<1x8x8xbf16> to vector<8x8xbf16>
    %cst_19 = arith.constant dense<0.000000e+00> : vector<8x512xf32>
    %31 = tpu.matmul %30, %28, %cst_19 {dimension_numbers = #tpu.dot_dimension_numbers<[1], [0], [0], [1], [0, 0, 1, 1], [], []>} : vector<8x8xbf16>, vector<8x512xbf16>, vector<8x512xf32> -> vector<8x512xf32>
    %32 = arith.addf %23, %31 : vector<8x512xf32>
    %c3 = arith.constant 3 : index
    %c0_20 = arith.constant 0 : index
    %33 = vector.load %arg2[%c3, %c0_20] : memref<9x512xf32, #tpu.memory_space<vmem>>, vector<1x512xf32>
    %c1_i32 = arith.constant 1 : i32
    %34 = tpu.dynamic_rotate %1 by %c1_i32 dim 1 : vector<8x512xf32>, i32 -> vector<8x512xf32>
    %35 = vector.broadcast %33 : vector<1x512xf32> to vector<8x512xf32>
    %36 = arith.mulf %34, %35 : vector<8x512xf32>
    %37 = arith.truncf %36 : vector<8x512xf32> to vector<8x512xbf16>
    %c3_21 = arith.constant 3 : index
    %c0_22 = arith.constant 0 : index
    %c0_23 = arith.constant 0 : index
    %38 = vector.load %arg3[%c3_21, %c0_22, %c0_23] : memref<9x8x8xbf16, #tpu.memory_space<vmem>>, vector<1x8x8xbf16>
    %39 = vector.shape_cast %38 : vector<1x8x8xbf16> to vector<8x8xbf16>
    %cst_24 = arith.constant dense<0.000000e+00> : vector<8x512xf32>
    %40 = tpu.matmul %39, %37, %cst_24 {dimension_numbers = #tpu.dot_dimension_numbers<[1], [0], [0], [1], [0, 0, 1, 1], [], []>} : vector<8x8xbf16>, vector<8x512xbf16>, vector<8x512xf32> -> vector<8x512xf32>
    %41 = arith.addf %32, %40 : vector<8x512xf32>
    %c5 = arith.constant 5 : index
    %c0_25 = arith.constant 0 : index
    %42 = vector.load %arg2[%c5, %c0_25] : memref<9x512xf32, #tpu.memory_space<vmem>>, vector<1x512xf32>
    %c511_i32 = arith.constant 511 : i32
    %43 = tpu.dynamic_rotate %1 by %c511_i32 dim 1 : vector<8x512xf32>, i32 -> vector<8x512xf32>
    %44 = vector.broadcast %42 : vector<1x512xf32> to vector<8x512xf32>
    %45 = arith.mulf %43, %44 : vector<8x512xf32>
    %46 = arith.truncf %45 : vector<8x512xf32> to vector<8x512xbf16>
    %c5_26 = arith.constant 5 : index
    %c0_27 = arith.constant 0 : index
    %c0_28 = arith.constant 0 : index
    %47 = vector.load %arg3[%c5_26, %c0_27, %c0_28] : memref<9x8x8xbf16, #tpu.memory_space<vmem>>, vector<1x8x8xbf16>
    %48 = vector.shape_cast %47 : vector<1x8x8xbf16> to vector<8x8xbf16>
    %cst_29 = arith.constant dense<0.000000e+00> : vector<8x512xf32>
    %49 = tpu.matmul %48, %46, %cst_29 {dimension_numbers = #tpu.dot_dimension_numbers<[1], [0], [0], [1], [0, 0, 1, 1], [], []>} : vector<8x8xbf16>, vector<8x512xbf16>, vector<8x512xf32> -> vector<8x512xf32>
    %50 = arith.addf %41, %49 : vector<8x512xf32>
    %c6 = arith.constant 6 : index
    %c0_30 = arith.constant 0 : index
    %51 = vector.load %arg2[%c6, %c0_30] : memref<9x512xf32, #tpu.memory_space<vmem>>, vector<1x512xf32>
    %c497_i32 = arith.constant 497 : i32
    %52 = tpu.dynamic_rotate %1 by %c497_i32 dim 1 : vector<8x512xf32>, i32 -> vector<8x512xf32>
    %53 = vector.broadcast %51 : vector<1x512xf32> to vector<8x512xf32>
    %54 = arith.mulf %52, %53 : vector<8x512xf32>
    %55 = arith.truncf %54 : vector<8x512xf32> to vector<8x512xbf16>
    %c6_31 = arith.constant 6 : index
    %c0_32 = arith.constant 0 : index
    %c0_33 = arith.constant 0 : index
    %56 = vector.load %arg3[%c6_31, %c0_32, %c0_33] : memref<9x8x8xbf16, #tpu.memory_space<vmem>>, vector<1x8x8xbf16>
    %57 = vector.shape_cast %56 : vector<1x8x8xbf16> to vector<8x8xbf16>
    %cst_34 = arith.constant dense<0.000000e+00> : vector<8x512xf32>
    %58 = tpu.matmul %57, %55, %cst_34 {dimension_numbers = #tpu.dot_dimension_numbers<[1], [0], [0], [1], [0, 0, 1, 1], [], []>} : vector<8x8xbf16>, vector<8x512xbf16>, vector<8x512xf32> -> vector<8x512xf32>
    %59 = arith.addf %50, %58 : vector<8x512xf32>
    %c7 = arith.constant 7 : index
    %c0_35 = arith.constant 0 : index
    %60 = vector.load %arg2[%c7, %c0_35] : memref<9x512xf32, #tpu.memory_space<vmem>>, vector<1x512xf32>
    %c496_i32 = arith.constant 496 : i32
    %61 = tpu.dynamic_rotate %1 by %c496_i32 dim 1 : vector<8x512xf32>, i32 -> vector<8x512xf32>
    %62 = vector.broadcast %60 : vector<1x512xf32> to vector<8x512xf32>
    %63 = arith.mulf %61, %62 : vector<8x512xf32>
    %64 = arith.truncf %63 : vector<8x512xf32> to vector<8x512xbf16>
    %c7_36 = arith.constant 7 : index
    %c0_37 = arith.constant 0 : index
    %c0_38 = arith.constant 0 : index
    %65 = vector.load %arg3[%c7_36, %c0_37, %c0_38] : memref<9x8x8xbf16, #tpu.memory_space<vmem>>, vector<1x8x8xbf16>
    %66 = vector.shape_cast %65 : vector<1x8x8xbf16> to vector<8x8xbf16>
    %cst_39 = arith.constant dense<0.000000e+00> : vector<8x512xf32>
    %67 = tpu.matmul %66, %64, %cst_39 {dimension_numbers = #tpu.dot_dimension_numbers<[1], [0], [0], [1], [0, 0, 1, 1], [], []>} : vector<8x8xbf16>, vector<8x512xbf16>, vector<8x512xf32> -> vector<8x512xf32>
    %68 = arith.addf %59, %67 : vector<8x512xf32>
    %c8 = arith.constant 8 : index
    %c0_40 = arith.constant 0 : index
    %69 = vector.load %arg2[%c8, %c0_40] : memref<9x512xf32, #tpu.memory_space<vmem>>, vector<1x512xf32>
    %c495_i32 = arith.constant 495 : i32
    %70 = tpu.dynamic_rotate %1 by %c495_i32 dim 1 : vector<8x512xf32>, i32 -> vector<8x512xf32>
    %71 = vector.broadcast %69 : vector<1x512xf32> to vector<8x512xf32>
    %72 = arith.mulf %70, %71 : vector<8x512xf32>
    %73 = arith.truncf %72 : vector<8x512xf32> to vector<8x512xbf16>
    %c8_41 = arith.constant 8 : index
    %c0_42 = arith.constant 0 : index
    %c0_43 = arith.constant 0 : index
    %74 = vector.load %arg3[%c8_41, %c0_42, %c0_43] : memref<9x8x8xbf16, #tpu.memory_space<vmem>>, vector<1x8x8xbf16>
    %75 = vector.shape_cast %74 : vector<1x8x8xbf16> to vector<8x8xbf16>
    %cst_44 = arith.constant dense<0.000000e+00> : vector<8x512xf32>
    %76 = tpu.matmul %75, %73, %cst_44 {dimension_numbers = #tpu.dot_dimension_numbers<[1], [0], [0], [1], [0, 0, 1, 1], [], []>} : vector<8x8xbf16>, vector<8x512xbf16>, vector<8x512xf32> -> vector<8x512xf32>
    %77 = arith.addf %68, %76 : vector<8x512xf32>
    %c0_45 = arith.constant 0 : index
    %c0_46 = arith.constant 0 : index
    %78 = vector.load %arg4[%c0_45, %c0_46] : memref<8x1xf32, #tpu.memory_space<vmem>>, vector<8x1xf32>
    %79 = vector.broadcast %78 : vector<8x1xf32> to vector<8x512xf32>
    %80 = arith.addf %77, %79 : vector<8x512xf32>
    %cst_47 = arith.constant 0.000000e+00 : f32
    %81 = vector.broadcast %cst_47 : f32 to vector<8x512xf32>
    %82 = arith.maximumf %80, %81 : vector<8x512xf32>
    %c4_48 = arith.constant 4 : index
    %c0_49 = arith.constant 0 : index
    %c0_50 = arith.constant 0 : index
    %83 = vector.load %arg5[%c4_48, %c0_49, %c0_50] : memref<9x8x8xbf16, #tpu.memory_space<vmem>>, vector<1x8x8xbf16>
    %84 = vector.shape_cast %83 : vector<1x8x8xbf16> to vector<8x8xbf16>
    %85 = arith.truncf %82 : vector<8x512xf32> to vector<8x512xbf16>
    %cst_51 = arith.constant dense<0.000000e+00> : vector<8x512xf32>
    %86 = tpu.matmul %84, %85, %cst_51 {dimension_numbers = #tpu.dot_dimension_numbers<[1], [0], [0], [1], [0, 0, 1, 1], [], []>} : vector<8x8xbf16>, vector<8x512xbf16>, vector<8x512xf32> -> vector<8x512xf32>
    %c0_52 = arith.constant 0 : index
    %c0_53 = arith.constant 0 : index
    %87 = vector.load %arg2[%c0_52, %c0_53] : memref<9x512xf32, #tpu.memory_space<vmem>>, vector<1x512xf32>
    %c17_i32_54 = arith.constant 17 : i32
    %88 = tpu.dynamic_rotate %82 by %c17_i32_54 dim 1 : vector<8x512xf32>, i32 -> vector<8x512xf32>
    %89 = vector.broadcast %87 : vector<1x512xf32> to vector<8x512xf32>
    %90 = arith.mulf %88, %89 : vector<8x512xf32>
    %91 = arith.truncf %90 : vector<8x512xf32> to vector<8x512xbf16>
    %c0_55 = arith.constant 0 : index
    %c0_56 = arith.constant 0 : index
    %c0_57 = arith.constant 0 : index
    %92 = vector.load %arg5[%c0_55, %c0_56, %c0_57] : memref<9x8x8xbf16, #tpu.memory_space<vmem>>, vector<1x8x8xbf16>
    %93 = vector.shape_cast %92 : vector<1x8x8xbf16> to vector<8x8xbf16>
    %cst_58 = arith.constant dense<0.000000e+00> : vector<8x512xf32>
    %94 = tpu.matmul %93, %91, %cst_58 {dimension_numbers = #tpu.dot_dimension_numbers<[1], [0], [0], [1], [0, 0, 1, 1], [], []>} : vector<8x8xbf16>, vector<8x512xbf16>, vector<8x512xf32> -> vector<8x512xf32>
    %95 = arith.addf %86, %94 : vector<8x512xf32>
    %c1_59 = arith.constant 1 : index
    %c0_60 = arith.constant 0 : index
    %96 = vector.load %arg2[%c1_59, %c0_60] : memref<9x512xf32, #tpu.memory_space<vmem>>, vector<1x512xf32>
    %c16_i32_61 = arith.constant 16 : i32
    %97 = tpu.dynamic_rotate %82 by %c16_i32_61 dim 1 : vector<8x512xf32>, i32 -> vector<8x512xf32>
    %98 = vector.broadcast %96 : vector<1x512xf32> to vector<8x512xf32>
    %99 = arith.mulf %97, %98 : vector<8x512xf32>
    %100 = arith.truncf %99 : vector<8x512xf32> to vector<8x512xbf16>
    %c1_62 = arith.constant 1 : index
    %c0_63 = arith.constant 0 : index
    %c0_64 = arith.constant 0 : index
    %101 = vector.load %arg5[%c1_62, %c0_63, %c0_64] : memref<9x8x8xbf16, #tpu.memory_space<vmem>>, vector<1x8x8xbf16>
    %102 = vector.shape_cast %101 : vector<1x8x8xbf16> to vector<8x8xbf16>
    %cst_65 = arith.constant dense<0.000000e+00> : vector<8x512xf32>
    %103 = tpu.matmul %102, %100, %cst_65 {dimension_numbers = #tpu.dot_dimension_numbers<[1], [0], [0], [1], [0, 0, 1, 1], [], []>} : vector<8x8xbf16>, vector<8x512xbf16>, vector<8x512xf32> -> vector<8x512xf32>
    %104 = arith.addf %95, %103 : vector<8x512xf32>
    %c2_66 = arith.constant 2 : index
    %c0_67 = arith.constant 0 : index
    %105 = vector.load %arg2[%c2_66, %c0_67] : memref<9x512xf32, #tpu.memory_space<vmem>>, vector<1x512xf32>
    %c15_i32_68 = arith.constant 15 : i32
    %106 = tpu.dynamic_rotate %82 by %c15_i32_68 dim 1 : vector<8x512xf32>, i32 -> vector<8x512xf32>
    %107 = vector.broadcast %105 : vector<1x512xf32> to vector<8x512xf32>
    %108 = arith.mulf %106, %107 : vector<8x512xf32>
    %109 = arith.truncf %108 : vector<8x512xf32> to vector<8x512xbf16>
    %c2_69 = arith.constant 2 : index
    %c0_70 = arith.constant 0 : index
    %c0_71 = arith.constant 0 : index
    %110 = vector.load %arg5[%c2_69, %c0_70, %c0_71] : memref<9x8x8xbf16, #tpu.memory_space<vmem>>, vector<1x8x8xbf16>
    %111 = vector.shape_cast %110 : vector<1x8x8xbf16> to vector<8x8xbf16>
    %cst_72 = arith.constant dense<0.000000e+00> : vector<8x512xf32>
    %112 = tpu.matmul %111, %109, %cst_72 {dimension_numbers = #tpu.dot_dimension_numbers<[1], [0], [0], [1], [0, 0, 1, 1], [], []>} : vector<8x8xbf16>, vector<8x512xbf16>, vector<8x512xf32> -> vector<8x512xf32>
    %113 = arith.addf %104, %112 : vector<8x512xf32>
    %c3_73 = arith.constant 3 : index
    %c0_74 = arith.constant 0 : index
    %114 = vector.load %arg2[%c3_73, %c0_74] : memref<9x512xf32, #tpu.memory_space<vmem>>, vector<1x512xf32>
    %c1_i32_75 = arith.constant 1 : i32
    %115 = tpu.dynamic_rotate %82 by %c1_i32_75 dim 1 : vector<8x512xf32>, i32 -> vector<8x512xf32>
    %116 = vector.broadcast %114 : vector<1x512xf32> to vector<8x512xf32>
    %117 = arith.mulf %115, %116 : vector<8x512xf32>
    %118 = arith.truncf %117 : vector<8x512xf32> to vector<8x512xbf16>
    %c3_76 = arith.constant 3 : index
    %c0_77 = arith.constant 0 : index
    %c0_78 = arith.constant 0 : index
    %119 = vector.load %arg5[%c3_76, %c0_77, %c0_78] : memref<9x8x8xbf16, #tpu.memory_space<vmem>>, vector<1x8x8xbf16>
    %120 = vector.shape_cast %119 : vector<1x8x8xbf16> to vector<8x8xbf16>
    %cst_79 = arith.constant dense<0.000000e+00> : vector<8x512xf32>
    %121 = tpu.matmul %120, %118, %cst_79 {dimension_numbers = #tpu.dot_dimension_numbers<[1], [0], [0], [1], [0, 0, 1, 1], [], []>} : vector<8x8xbf16>, vector<8x512xbf16>, vector<8x512xf32> -> vector<8x512xf32>
    %122 = arith.addf %113, %121 : vector<8x512xf32>
    %c5_80 = arith.constant 5 : index
    %c0_81 = arith.constant 0 : index
    %123 = vector.load %arg2[%c5_80, %c0_81] : memref<9x512xf32, #tpu.memory_space<vmem>>, vector<1x512xf32>
    %c511_i32_82 = arith.constant 511 : i32
    %124 = tpu.dynamic_rotate %82 by %c511_i32_82 dim 1 : vector<8x512xf32>, i32 -> vector<8x512xf32>
    %125 = vector.broadcast %123 : vector<1x512xf32> to vector<8x512xf32>
    %126 = arith.mulf %124, %125 : vector<8x512xf32>
    %127 = arith.truncf %126 : vector<8x512xf32> to vector<8x512xbf16>
    %c5_83 = arith.constant 5 : index
    %c0_84 = arith.constant 0 : index
    %c0_85 = arith.constant 0 : index
    %128 = vector.load %arg5[%c5_83, %c0_84, %c0_85] : memref<9x8x8xbf16, #tpu.memory_space<vmem>>, vector<1x8x8xbf16>
    %129 = vector.shape_cast %128 : vector<1x8x8xbf16> to vector<8x8xbf16>
    %cst_86 = arith.constant dense<0.000000e+00> : vector<8x512xf32>
    %130 = tpu.matmul %129, %127, %cst_86 {dimension_numbers = #tpu.dot_dimension_numbers<[1], [0], [0], [1], [0, 0, 1, 1], [], []>} : vector<8x8xbf16>, vector<8x512xbf16>, vector<8x512xf32> -> vector<8x512xf32>
    %131 = arith.addf %122, %130 : vector<8x512xf32>
    %c6_87 = arith.constant 6 : index
    %c0_88 = arith.constant 0 : index
    %132 = vector.load %arg2[%c6_87, %c0_88] : memref<9x512xf32, #tpu.memory_space<vmem>>, vector<1x512xf32>
    %c497_i32_89 = arith.constant 497 : i32
    %133 = tpu.dynamic_rotate %82 by %c497_i32_89 dim 1 : vector<8x512xf32>, i32 -> vector<8x512xf32>
    %134 = vector.broadcast %132 : vector<1x512xf32> to vector<8x512xf32>
    %135 = arith.mulf %133, %134 : vector<8x512xf32>
    %136 = arith.truncf %135 : vector<8x512xf32> to vector<8x512xbf16>
    %c6_90 = arith.constant 6 : index
    %c0_91 = arith.constant 0 : index
    %c0_92 = arith.constant 0 : index
    %137 = vector.load %arg5[%c6_90, %c0_91, %c0_92] : memref<9x8x8xbf16, #tpu.memory_space<vmem>>, vector<1x8x8xbf16>
    %138 = vector.shape_cast %137 : vector<1x8x8xbf16> to vector<8x8xbf16>
    %cst_93 = arith.constant dense<0.000000e+00> : vector<8x512xf32>
    %139 = tpu.matmul %138, %136, %cst_93 {dimension_numbers = #tpu.dot_dimension_numbers<[1], [0], [0], [1], [0, 0, 1, 1], [], []>} : vector<8x8xbf16>, vector<8x512xbf16>, vector<8x512xf32> -> vector<8x512xf32>
    %140 = arith.addf %131, %139 : vector<8x512xf32>
    %c7_94 = arith.constant 7 : index
    %c0_95 = arith.constant 0 : index
    %141 = vector.load %arg2[%c7_94, %c0_95] : memref<9x512xf32, #tpu.memory_space<vmem>>, vector<1x512xf32>
    %c496_i32_96 = arith.constant 496 : i32
    %142 = tpu.dynamic_rotate %82 by %c496_i32_96 dim 1 : vector<8x512xf32>, i32 -> vector<8x512xf32>
    %143 = vector.broadcast %141 : vector<1x512xf32> to vector<8x512xf32>
    %144 = arith.mulf %142, %143 : vector<8x512xf32>
    %145 = arith.truncf %144 : vector<8x512xf32> to vector<8x512xbf16>
    %c7_97 = arith.constant 7 : index
    %c0_98 = arith.constant 0 : index
    %c0_99 = arith.constant 0 : index
    %146 = vector.load %arg5[%c7_97, %c0_98, %c0_99] : memref<9x8x8xbf16, #tpu.memory_space<vmem>>, vector<1x8x8xbf16>
    %147 = vector.shape_cast %146 : vector<1x8x8xbf16> to vector<8x8xbf16>
    %cst_100 = arith.constant dense<0.000000e+00> : vector<8x512xf32>
    %148 = tpu.matmul %147, %145, %cst_100 {dimension_numbers = #tpu.dot_dimension_numbers<[1], [0], [0], [1], [0, 0, 1, 1], [], []>} : vector<8x8xbf16>, vector<8x512xbf16>, vector<8x512xf32> -> vector<8x512xf32>
    %149 = arith.addf %140, %148 : vector<8x512xf32>
    %c8_101 = arith.constant 8 : index
    %c0_102 = arith.constant 0 : index
    %150 = vector.load %arg2[%c8_101, %c0_102] : memref<9x512xf32, #tpu.memory_space<vmem>>, vector<1x512xf32>
    %c495_i32_103 = arith.constant 495 : i32
    %151 = tpu.dynamic_rotate %82 by %c495_i32_103 dim 1 : vector<8x512xf32>, i32 -> vector<8x512xf32>
    %152 = vector.broadcast %150 : vector<1x512xf32> to vector<8x512xf32>
    %153 = arith.mulf %151, %152 : vector<8x512xf32>
    %154 = arith.truncf %153 : vector<8x512xf32> to vector<8x512xbf16>
    %c8_104 = arith.constant 8 : index
    %c0_105 = arith.constant 0 : index
    %c0_106 = arith.constant 0 : index
    %155 = vector.load %arg5[%c8_104, %c0_105, %c0_106] : memref<9x8x8xbf16, #tpu.memory_space<vmem>>, vector<1x8x8xbf16>
    %156 = vector.shape_cast %155 : vector<1x8x8xbf16> to vector<8x8xbf16>
    %cst_107 = arith.constant dense<0.000000e+00> : vector<8x512xf32>
    %157 = tpu.matmul %156, %154, %cst_107 {dimension_numbers = #tpu.dot_dimension_numbers<[1], [0], [0], [1], [0, 0, 1, 1], [], []>} : vector<8x8xbf16>, vector<8x512xbf16>, vector<8x512xf32> -> vector<8x512xf32>
    %158 = arith.addf %149, %157 : vector<8x512xf32>
    %c0_108 = arith.constant 0 : index
    %c0_109 = arith.constant 0 : index
    %159 = vector.load %arg6[%c0_108, %c0_109] : memref<8x1xf32, #tpu.memory_space<vmem>>, vector<8x1xf32>
    %160 = vector.broadcast %159 : vector<8x1xf32> to vector<8x512xf32>
    %161 = arith.addf %158, %160 : vector<8x512xf32>
    %cst_110 = arith.constant 0.000000e+00 : f32
    %162 = vector.broadcast %cst_110 : f32 to vector<8x512xf32>
    %163 = arith.maximumf %161, %162 : vector<8x512xf32>
    %c4_111 = arith.constant 4 : index
    %c0_112 = arith.constant 0 : index
    %c0_113 = arith.constant 0 : index
    %164 = vector.load %arg7[%c4_111, %c0_112, %c0_113] : memref<9x8x8xbf16, #tpu.memory_space<vmem>>, vector<1x8x8xbf16>
    %165 = vector.shape_cast %164 : vector<1x8x8xbf16> to vector<8x8xbf16>
    %166 = arith.truncf %163 : vector<8x512xf32> to vector<8x512xbf16>
    %cst_114 = arith.constant dense<0.000000e+00> : vector<8x512xf32>
    %167 = tpu.matmul %165, %166, %cst_114 {dimension_numbers = #tpu.dot_dimension_numbers<[1], [0], [0], [1], [0, 0, 1, 1], [], []>} : vector<8x8xbf16>, vector<8x512xbf16>, vector<8x512xf32> -> vector<8x512xf32>
    %c0_115 = arith.constant 0 : index
    %c0_116 = arith.constant 0 : index
    %168 = vector.load %arg2[%c0_115, %c0_116] : memref<9x512xf32, #tpu.memory_space<vmem>>, vector<1x512xf32>
    %c17_i32_117 = arith.constant 17 : i32
    %169 = tpu.dynamic_rotate %163 by %c17_i32_117 dim 1 : vector<8x512xf32>, i32 -> vector<8x512xf32>
    %170 = vector.broadcast %168 : vector<1x512xf32> to vector<8x512xf32>
    %171 = arith.mulf %169, %170 : vector<8x512xf32>
    %172 = arith.truncf %171 : vector<8x512xf32> to vector<8x512xbf16>
    %c0_118 = arith.constant 0 : index
    %c0_119 = arith.constant 0 : index
    %c0_120 = arith.constant 0 : index
    %173 = vector.load %arg7[%c0_118, %c0_119, %c0_120] : memref<9x8x8xbf16, #tpu.memory_space<vmem>>, vector<1x8x8xbf16>
    %174 = vector.shape_cast %173 : vector<1x8x8xbf16> to vector<8x8xbf16>
    %cst_121 = arith.constant dense<0.000000e+00> : vector<8x512xf32>
    %175 = tpu.matmul %174, %172, %cst_121 {dimension_numbers = #tpu.dot_dimension_numbers<[1], [0], [0], [1], [0, 0, 1, 1], [], []>} : vector<8x8xbf16>, vector<8x512xbf16>, vector<8x512xf32> -> vector<8x512xf32>
    %176 = arith.addf %167, %175 : vector<8x512xf32>
    %c1_122 = arith.constant 1 : index
    %c0_123 = arith.constant 0 : index
    %177 = vector.load %arg2[%c1_122, %c0_123] : memref<9x512xf32, #tpu.memory_space<vmem>>, vector<1x512xf32>
    %c16_i32_124 = arith.constant 16 : i32
    %178 = tpu.dynamic_rotate %163 by %c16_i32_124 dim 1 : vector<8x512xf32>, i32 -> vector<8x512xf32>
    %179 = vector.broadcast %177 : vector<1x512xf32> to vector<8x512xf32>
    %180 = arith.mulf %178, %179 : vector<8x512xf32>
    %181 = arith.truncf %180 : vector<8x512xf32> to vector<8x512xbf16>
    %c1_125 = arith.constant 1 : index
    %c0_126 = arith.constant 0 : index
    %c0_127 = arith.constant 0 : index
    %182 = vector.load %arg7[%c1_125, %c0_126, %c0_127] : memref<9x8x8xbf16, #tpu.memory_space<vmem>>, vector<1x8x8xbf16>
    %183 = vector.shape_cast %182 : vector<1x8x8xbf16> to vector<8x8xbf16>
    %cst_128 = arith.constant dense<0.000000e+00> : vector<8x512xf32>
    %184 = tpu.matmul %183, %181, %cst_128 {dimension_numbers = #tpu.dot_dimension_numbers<[1], [0], [0], [1], [0, 0, 1, 1], [], []>} : vector<8x8xbf16>, vector<8x512xbf16>, vector<8x512xf32> -> vector<8x512xf32>
    %185 = arith.addf %176, %184 : vector<8x512xf32>
    %c2_129 = arith.constant 2 : index
    %c0_130 = arith.constant 0 : index
    %186 = vector.load %arg2[%c2_129, %c0_130] : memref<9x512xf32, #tpu.memory_space<vmem>>, vector<1x512xf32>
    %c15_i32_131 = arith.constant 15 : i32
    %187 = tpu.dynamic_rotate %163 by %c15_i32_131 dim 1 : vector<8x512xf32>, i32 -> vector<8x512xf32>
    %188 = vector.broadcast %186 : vector<1x512xf32> to vector<8x512xf32>
    %189 = arith.mulf %187, %188 : vector<8x512xf32>
    %190 = arith.truncf %189 : vector<8x512xf32> to vector<8x512xbf16>
    %c2_132 = arith.constant 2 : index
    %c0_133 = arith.constant 0 : index
    %c0_134 = arith.constant 0 : index
    %191 = vector.load %arg7[%c2_132, %c0_133, %c0_134] : memref<9x8x8xbf16, #tpu.memory_space<vmem>>, vector<1x8x8xbf16>
    %192 = vector.shape_cast %191 : vector<1x8x8xbf16> to vector<8x8xbf16>
    %cst_135 = arith.constant dense<0.000000e+00> : vector<8x512xf32>
    %193 = tpu.matmul %192, %190, %cst_135 {dimension_numbers = #tpu.dot_dimension_numbers<[1], [0], [0], [1], [0, 0, 1, 1], [], []>} : vector<8x8xbf16>, vector<8x512xbf16>, vector<8x512xf32> -> vector<8x512xf32>
    %194 = arith.addf %185, %193 : vector<8x512xf32>
    %c3_136 = arith.constant 3 : index
    %c0_137 = arith.constant 0 : index
    %195 = vector.load %arg2[%c3_136, %c0_137] : memref<9x512xf32, #tpu.memory_space<vmem>>, vector<1x512xf32>
    %c1_i32_138 = arith.constant 1 : i32
    %196 = tpu.dynamic_rotate %163 by %c1_i32_138 dim 1 : vector<8x512xf32>, i32 -> vector<8x512xf32>
    %197 = vector.broadcast %195 : vector<1x512xf32> to vector<8x512xf32>
    %198 = arith.mulf %196, %197 : vector<8x512xf32>
    %199 = arith.truncf %198 : vector<8x512xf32> to vector<8x512xbf16>
    %c3_139 = arith.constant 3 : index
    %c0_140 = arith.constant 0 : index
    %c0_141 = arith.constant 0 : index
    %200 = vector.load %arg7[%c3_139, %c0_140, %c0_141] : memref<9x8x8xbf16, #tpu.memory_space<vmem>>, vector<1x8x8xbf16>
    %201 = vector.shape_cast %200 : vector<1x8x8xbf16> to vector<8x8xbf16>
    %cst_142 = arith.constant dense<0.000000e+00> : vector<8x512xf32>
    %202 = tpu.matmul %201, %199, %cst_142 {dimension_numbers = #tpu.dot_dimension_numbers<[1], [0], [0], [1], [0, 0, 1, 1], [], []>} : vector<8x8xbf16>, vector<8x512xbf16>, vector<8x512xf32> -> vector<8x512xf32>
    %203 = arith.addf %194, %202 : vector<8x512xf32>
    %c5_143 = arith.constant 5 : index
    %c0_144 = arith.constant 0 : index
    %204 = vector.load %arg2[%c5_143, %c0_144] : memref<9x512xf32, #tpu.memory_space<vmem>>, vector<1x512xf32>
    %c511_i32_145 = arith.constant 511 : i32
    %205 = tpu.dynamic_rotate %163 by %c511_i32_145 dim 1 : vector<8x512xf32>, i32 -> vector<8x512xf32>
    %206 = vector.broadcast %204 : vector<1x512xf32> to vector<8x512xf32>
    %207 = arith.mulf %205, %206 : vector<8x512xf32>
    %208 = arith.truncf %207 : vector<8x512xf32> to vector<8x512xbf16>
    %c5_146 = arith.constant 5 : index
    %c0_147 = arith.constant 0 : index
    %c0_148 = arith.constant 0 : index
    %209 = vector.load %arg7[%c5_146, %c0_147, %c0_148] : memref<9x8x8xbf16, #tpu.memory_space<vmem>>, vector<1x8x8xbf16>
    %210 = vector.shape_cast %209 : vector<1x8x8xbf16> to vector<8x8xbf16>
    %cst_149 = arith.constant dense<0.000000e+00> : vector<8x512xf32>
    %211 = tpu.matmul %210, %208, %cst_149 {dimension_numbers = #tpu.dot_dimension_numbers<[1], [0], [0], [1], [0, 0, 1, 1], [], []>} : vector<8x8xbf16>, vector<8x512xbf16>, vector<8x512xf32> -> vector<8x512xf32>
    %212 = arith.addf %203, %211 : vector<8x512xf32>
    %c6_150 = arith.constant 6 : index
    %c0_151 = arith.constant 0 : index
    %213 = vector.load %arg2[%c6_150, %c0_151] : memref<9x512xf32, #tpu.memory_space<vmem>>, vector<1x512xf32>
    %c497_i32_152 = arith.constant 497 : i32
    %214 = tpu.dynamic_rotate %163 by %c497_i32_152 dim 1 : vector<8x512xf32>, i32 -> vector<8x512xf32>
    %215 = vector.broadcast %213 : vector<1x512xf32> to vector<8x512xf32>
    %216 = arith.mulf %214, %215 : vector<8x512xf32>
    %217 = arith.truncf %216 : vector<8x512xf32> to vector<8x512xbf16>
    %c6_153 = arith.constant 6 : index
    %c0_154 = arith.constant 0 : index
    %c0_155 = arith.constant 0 : index
    %218 = vector.load %arg7[%c6_153, %c0_154, %c0_155] : memref<9x8x8xbf16, #tpu.memory_space<vmem>>, vector<1x8x8xbf16>
    %219 = vector.shape_cast %218 : vector<1x8x8xbf16> to vector<8x8xbf16>
    %cst_156 = arith.constant dense<0.000000e+00> : vector<8x512xf32>
    %220 = tpu.matmul %219, %217, %cst_156 {dimension_numbers = #tpu.dot_dimension_numbers<[1], [0], [0], [1], [0, 0, 1, 1], [], []>} : vector<8x8xbf16>, vector<8x512xbf16>, vector<8x512xf32> -> vector<8x512xf32>
    %221 = arith.addf %212, %220 : vector<8x512xf32>
    %c7_157 = arith.constant 7 : index
    %c0_158 = arith.constant 0 : index
    %222 = vector.load %arg2[%c7_157, %c0_158] : memref<9x512xf32, #tpu.memory_space<vmem>>, vector<1x512xf32>
    %c496_i32_159 = arith.constant 496 : i32
    %223 = tpu.dynamic_rotate %163 by %c496_i32_159 dim 1 : vector<8x512xf32>, i32 -> vector<8x512xf32>
    %224 = vector.broadcast %222 : vector<1x512xf32> to vector<8x512xf32>
    %225 = arith.mulf %223, %224 : vector<8x512xf32>
    %226 = arith.truncf %225 : vector<8x512xf32> to vector<8x512xbf16>
    %c7_160 = arith.constant 7 : index
    %c0_161 = arith.constant 0 : index
    %c0_162 = arith.constant 0 : index
    %227 = vector.load %arg7[%c7_160, %c0_161, %c0_162] : memref<9x8x8xbf16, #tpu.memory_space<vmem>>, vector<1x8x8xbf16>
    %228 = vector.shape_cast %227 : vector<1x8x8xbf16> to vector<8x8xbf16>
    %cst_163 = arith.constant dense<0.000000e+00> : vector<8x512xf32>
    %229 = tpu.matmul %228, %226, %cst_163 {dimension_numbers = #tpu.dot_dimension_numbers<[1], [0], [0], [1], [0, 0, 1, 1], [], []>} : vector<8x8xbf16>, vector<8x512xbf16>, vector<8x512xf32> -> vector<8x512xf32>
    %230 = arith.addf %221, %229 : vector<8x512xf32>
    %c8_164 = arith.constant 8 : index
    %c0_165 = arith.constant 0 : index
    %231 = vector.load %arg2[%c8_164, %c0_165] : memref<9x512xf32, #tpu.memory_space<vmem>>, vector<1x512xf32>
    %c495_i32_166 = arith.constant 495 : i32
    %232 = tpu.dynamic_rotate %163 by %c495_i32_166 dim 1 : vector<8x512xf32>, i32 -> vector<8x512xf32>
    %233 = vector.broadcast %231 : vector<1x512xf32> to vector<8x512xf32>
    %234 = arith.mulf %232, %233 : vector<8x512xf32>
    %235 = arith.truncf %234 : vector<8x512xf32> to vector<8x512xbf16>
    %c8_167 = arith.constant 8 : index
    %c0_168 = arith.constant 0 : index
    %c0_169 = arith.constant 0 : index
    %236 = vector.load %arg7[%c8_167, %c0_168, %c0_169] : memref<9x8x8xbf16, #tpu.memory_space<vmem>>, vector<1x8x8xbf16>
    %237 = vector.shape_cast %236 : vector<1x8x8xbf16> to vector<8x8xbf16>
    %cst_170 = arith.constant dense<0.000000e+00> : vector<8x512xf32>
    %238 = tpu.matmul %237, %235, %cst_170 {dimension_numbers = #tpu.dot_dimension_numbers<[1], [0], [0], [1], [0, 0, 1, 1], [], []>} : vector<8x8xbf16>, vector<8x512xbf16>, vector<8x512xf32> -> vector<8x512xf32>
    %239 = arith.addf %230, %238 : vector<8x512xf32>
    %c0_171 = arith.constant 0 : index
    %c0_172 = arith.constant 0 : index
    %240 = vector.load %arg8[%c0_171, %c0_172] : memref<8x1xf32, #tpu.memory_space<vmem>>, vector<8x1xf32>
    %241 = vector.broadcast %240 : vector<8x1xf32> to vector<8x512xf32>
    %242 = arith.addf %239, %241 : vector<8x512xf32>
    %cst_173 = arith.constant 0.000000e+00 : f32
    %243 = vector.broadcast %cst_173 : f32 to vector<8x512xf32>
    %244 = arith.maximumf %242, %243 : vector<8x512xf32>
    %c4_174 = arith.constant 4 : index
    %c0_175 = arith.constant 0 : index
    %c0_176 = arith.constant 0 : index
    %245 = vector.load %arg9[%c4_174, %c0_175, %c0_176] : memref<9x8x8xbf16, #tpu.memory_space<vmem>>, vector<1x8x8xbf16>
    %246 = vector.shape_cast %245 : vector<1x8x8xbf16> to vector<8x8xbf16>
    %247 = arith.truncf %244 : vector<8x512xf32> to vector<8x512xbf16>
    %cst_177 = arith.constant dense<0.000000e+00> : vector<8x512xf32>
    %248 = tpu.matmul %246, %247, %cst_177 {dimension_numbers = #tpu.dot_dimension_numbers<[1], [0], [0], [1], [0, 0, 1, 1], [], []>} : vector<8x8xbf16>, vector<8x512xbf16>, vector<8x512xf32> -> vector<8x512xf32>
    %c0_178 = arith.constant 0 : index
    %c0_179 = arith.constant 0 : index
    %249 = vector.load %arg2[%c0_178, %c0_179] : memref<9x512xf32, #tpu.memory_space<vmem>>, vector<1x512xf32>
    %c17_i32_180 = arith.constant 17 : i32
    %250 = tpu.dynamic_rotate %244 by %c17_i32_180 dim 1 : vector<8x512xf32>, i32 -> vector<8x512xf32>
    %251 = vector.broadcast %249 : vector<1x512xf32> to vector<8x512xf32>
    %252 = arith.mulf %250, %251 : vector<8x512xf32>
    %253 = arith.truncf %252 : vector<8x512xf32> to vector<8x512xbf16>
    %c0_181 = arith.constant 0 : index
    %c0_182 = arith.constant 0 : index
    %c0_183 = arith.constant 0 : index
    %254 = vector.load %arg9[%c0_181, %c0_182, %c0_183] : memref<9x8x8xbf16, #tpu.memory_space<vmem>>, vector<1x8x8xbf16>
    %255 = vector.shape_cast %254 : vector<1x8x8xbf16> to vector<8x8xbf16>
    %cst_184 = arith.constant dense<0.000000e+00> : vector<8x512xf32>
    %256 = tpu.matmul %255, %253, %cst_184 {dimension_numbers = #tpu.dot_dimension_numbers<[1], [0], [0], [1], [0, 0, 1, 1], [], []>} : vector<8x8xbf16>, vector<8x512xbf16>, vector<8x512xf32> -> vector<8x512xf32>
    %257 = arith.addf %248, %256 : vector<8x512xf32>
    %c1_185 = arith.constant 1 : index
    %c0_186 = arith.constant 0 : index
    %258 = vector.load %arg2[%c1_185, %c0_186] : memref<9x512xf32, #tpu.memory_space<vmem>>, vector<1x512xf32>
    %c16_i32_187 = arith.constant 16 : i32
    %259 = tpu.dynamic_rotate %244 by %c16_i32_187 dim 1 : vector<8x512xf32>, i32 -> vector<8x512xf32>
    %260 = vector.broadcast %258 : vector<1x512xf32> to vector<8x512xf32>
    %261 = arith.mulf %259, %260 : vector<8x512xf32>
    %262 = arith.truncf %261 : vector<8x512xf32> to vector<8x512xbf16>
    %c1_188 = arith.constant 1 : index
    %c0_189 = arith.constant 0 : index
    %c0_190 = arith.constant 0 : index
    %263 = vector.load %arg9[%c1_188, %c0_189, %c0_190] : memref<9x8x8xbf16, #tpu.memory_space<vmem>>, vector<1x8x8xbf16>
    %264 = vector.shape_cast %263 : vector<1x8x8xbf16> to vector<8x8xbf16>
    %cst_191 = arith.constant dense<0.000000e+00> : vector<8x512xf32>
    %265 = tpu.matmul %264, %262, %cst_191 {dimension_numbers = #tpu.dot_dimension_numbers<[1], [0], [0], [1], [0, 0, 1, 1], [], []>} : vector<8x8xbf16>, vector<8x512xbf16>, vector<8x512xf32> -> vector<8x512xf32>
    %266 = arith.addf %257, %265 : vector<8x512xf32>
    %c2_192 = arith.constant 2 : index
    %c0_193 = arith.constant 0 : index
    %267 = vector.load %arg2[%c2_192, %c0_193] : memref<9x512xf32, #tpu.memory_space<vmem>>, vector<1x512xf32>
    %c15_i32_194 = arith.constant 15 : i32
    %268 = tpu.dynamic_rotate %244 by %c15_i32_194 dim 1 : vector<8x512xf32>, i32 -> vector<8x512xf32>
    %269 = vector.broadcast %267 : vector<1x512xf32> to vector<8x512xf32>
    %270 = arith.mulf %268, %269 : vector<8x512xf32>
    %271 = arith.truncf %270 : vector<8x512xf32> to vector<8x512xbf16>
    %c2_195 = arith.constant 2 : index
    %c0_196 = arith.constant 0 : index
    %c0_197 = arith.constant 0 : index
    %272 = vector.load %arg9[%c2_195, %c0_196, %c0_197] : memref<9x8x8xbf16, #tpu.memory_space<vmem>>, vector<1x8x8xbf16>
    %273 = vector.shape_cast %272 : vector<1x8x8xbf16> to vector<8x8xbf16>
    %cst_198 = arith.constant dense<0.000000e+00> : vector<8x512xf32>
    %274 = tpu.matmul %273, %271, %cst_198 {dimension_numbers = #tpu.dot_dimension_numbers<[1], [0], [0], [1], [0, 0, 1, 1], [], []>} : vector<8x8xbf16>, vector<8x512xbf16>, vector<8x512xf32> -> vector<8x512xf32>
    %275 = arith.addf %266, %274 : vector<8x512xf32>
    %c3_199 = arith.constant 3 : index
    %c0_200 = arith.constant 0 : index
    %276 = vector.load %arg2[%c3_199, %c0_200] : memref<9x512xf32, #tpu.memory_space<vmem>>, vector<1x512xf32>
    %c1_i32_201 = arith.constant 1 : i32
    %277 = tpu.dynamic_rotate %244 by %c1_i32_201 dim 1 : vector<8x512xf32>, i32 -> vector<8x512xf32>
    %278 = vector.broadcast %276 : vector<1x512xf32> to vector<8x512xf32>
    %279 = arith.mulf %277, %278 : vector<8x512xf32>
    %280 = arith.truncf %279 : vector<8x512xf32> to vector<8x512xbf16>
    %c3_202 = arith.constant 3 : index
    %c0_203 = arith.constant 0 : index
    %c0_204 = arith.constant 0 : index
    %281 = vector.load %arg9[%c3_202, %c0_203, %c0_204] : memref<9x8x8xbf16, #tpu.memory_space<vmem>>, vector<1x8x8xbf16>
    %282 = vector.shape_cast %281 : vector<1x8x8xbf16> to vector<8x8xbf16>
    %cst_205 = arith.constant dense<0.000000e+00> : vector<8x512xf32>
    %283 = tpu.matmul %282, %280, %cst_205 {dimension_numbers = #tpu.dot_dimension_numbers<[1], [0], [0], [1], [0, 0, 1, 1], [], []>} : vector<8x8xbf16>, vector<8x512xbf16>, vector<8x512xf32> -> vector<8x512xf32>
    %284 = arith.addf %275, %283 : vector<8x512xf32>
    %c5_206 = arith.constant 5 : index
    %c0_207 = arith.constant 0 : index
    %285 = vector.load %arg2[%c5_206, %c0_207] : memref<9x512xf32, #tpu.memory_space<vmem>>, vector<1x512xf32>
    %c511_i32_208 = arith.constant 511 : i32
    %286 = tpu.dynamic_rotate %244 by %c511_i32_208 dim 1 : vector<8x512xf32>, i32 -> vector<8x512xf32>
    %287 = vector.broadcast %285 : vector<1x512xf32> to vector<8x512xf32>
    %288 = arith.mulf %286, %287 : vector<8x512xf32>
    %289 = arith.truncf %288 : vector<8x512xf32> to vector<8x512xbf16>
    %c5_209 = arith.constant 5 : index
    %c0_210 = arith.constant 0 : index
    %c0_211 = arith.constant 0 : index
    %290 = vector.load %arg9[%c5_209, %c0_210, %c0_211] : memref<9x8x8xbf16, #tpu.memory_space<vmem>>, vector<1x8x8xbf16>
    %291 = vector.shape_cast %290 : vector<1x8x8xbf16> to vector<8x8xbf16>
    %cst_212 = arith.constant dense<0.000000e+00> : vector<8x512xf32>
    %292 = tpu.matmul %291, %289, %cst_212 {dimension_numbers = #tpu.dot_dimension_numbers<[1], [0], [0], [1], [0, 0, 1, 1], [], []>} : vector<8x8xbf16>, vector<8x512xbf16>, vector<8x512xf32> -> vector<8x512xf32>
    %293 = arith.addf %284, %292 : vector<8x512xf32>
    %c6_213 = arith.constant 6 : index
    %c0_214 = arith.constant 0 : index
    %294 = vector.load %arg2[%c6_213, %c0_214] : memref<9x512xf32, #tpu.memory_space<vmem>>, vector<1x512xf32>
    %c497_i32_215 = arith.constant 497 : i32
    %295 = tpu.dynamic_rotate %244 by %c497_i32_215 dim 1 : vector<8x512xf32>, i32 -> vector<8x512xf32>
    %296 = vector.broadcast %294 : vector<1x512xf32> to vector<8x512xf32>
    %297 = arith.mulf %295, %296 : vector<8x512xf32>
    %298 = arith.truncf %297 : vector<8x512xf32> to vector<8x512xbf16>
    %c6_216 = arith.constant 6 : index
    %c0_217 = arith.constant 0 : index
    %c0_218 = arith.constant 0 : index
    %299 = vector.load %arg9[%c6_216, %c0_217, %c0_218] : memref<9x8x8xbf16, #tpu.memory_space<vmem>>, vector<1x8x8xbf16>
    %300 = vector.shape_cast %299 : vector<1x8x8xbf16> to vector<8x8xbf16>
    %cst_219 = arith.constant dense<0.000000e+00> : vector<8x512xf32>
    %301 = tpu.matmul %300, %298, %cst_219 {dimension_numbers = #tpu.dot_dimension_numbers<[1], [0], [0], [1], [0, 0, 1, 1], [], []>} : vector<8x8xbf16>, vector<8x512xbf16>, vector<8x512xf32> -> vector<8x512xf32>
    %302 = arith.addf %293, %301 : vector<8x512xf32>
    %c7_220 = arith.constant 7 : index
    %c0_221 = arith.constant 0 : index
    %303 = vector.load %arg2[%c7_220, %c0_221] : memref<9x512xf32, #tpu.memory_space<vmem>>, vector<1x512xf32>
    %c496_i32_222 = arith.constant 496 : i32
    %304 = tpu.dynamic_rotate %244 by %c496_i32_222 dim 1 : vector<8x512xf32>, i32 -> vector<8x512xf32>
    %305 = vector.broadcast %303 : vector<1x512xf32> to vector<8x512xf32>
    %306 = arith.mulf %304, %305 : vector<8x512xf32>
    %307 = arith.truncf %306 : vector<8x512xf32> to vector<8x512xbf16>
    %c7_223 = arith.constant 7 : index
    %c0_224 = arith.constant 0 : index
    %c0_225 = arith.constant 0 : index
    %308 = vector.load %arg9[%c7_223, %c0_224, %c0_225] : memref<9x8x8xbf16, #tpu.memory_space<vmem>>, vector<1x8x8xbf16>
    %309 = vector.shape_cast %308 : vector<1x8x8xbf16> to vector<8x8xbf16>
    %cst_226 = arith.constant dense<0.000000e+00> : vector<8x512xf32>
    %310 = tpu.matmul %309, %307, %cst_226 {dimension_numbers = #tpu.dot_dimension_numbers<[1], [0], [0], [1], [0, 0, 1, 1], [], []>} : vector<8x8xbf16>, vector<8x512xbf16>, vector<8x512xf32> -> vector<8x512xf32>
    %311 = arith.addf %302, %310 : vector<8x512xf32>
    %c8_227 = arith.constant 8 : index
    %c0_228 = arith.constant 0 : index
    %312 = vector.load %arg2[%c8_227, %c0_228] : memref<9x512xf32, #tpu.memory_space<vmem>>, vector<1x512xf32>
    %c495_i32_229 = arith.constant 495 : i32
    %313 = tpu.dynamic_rotate %244 by %c495_i32_229 dim 1 : vector<8x512xf32>, i32 -> vector<8x512xf32>
    %314 = vector.broadcast %312 : vector<1x512xf32> to vector<8x512xf32>
    %315 = arith.mulf %313, %314 : vector<8x512xf32>
    %316 = arith.truncf %315 : vector<8x512xf32> to vector<8x512xbf16>
    %c8_230 = arith.constant 8 : index
    %c0_231 = arith.constant 0 : index
    %c0_232 = arith.constant 0 : index
    %317 = vector.load %arg9[%c8_230, %c0_231, %c0_232] : memref<9x8x8xbf16, #tpu.memory_space<vmem>>, vector<1x8x8xbf16>
    %318 = vector.shape_cast %317 : vector<1x8x8xbf16> to vector<8x8xbf16>
    %cst_233 = arith.constant dense<0.000000e+00> : vector<8x512xf32>
    %319 = tpu.matmul %318, %316, %cst_233 {dimension_numbers = #tpu.dot_dimension_numbers<[1], [0], [0], [1], [0, 0, 1, 1], [], []>} : vector<8x8xbf16>, vector<8x512xbf16>, vector<8x512xf32> -> vector<8x512xf32>
    %320 = arith.addf %311, %319 : vector<8x512xf32>
    %c0_234 = arith.constant 0 : index
    %c0_235 = arith.constant 0 : index
    %321 = vector.load %arg10[%c0_234, %c0_235] : memref<8x1xf32, #tpu.memory_space<vmem>>, vector<8x1xf32>
    %322 = vector.broadcast %321 : vector<8x1xf32> to vector<8x512xf32>
    %323 = arith.addf %320, %322 : vector<8x512xf32>
    %cst_236 = arith.constant 0.000000e+00 : f32
    %324 = vector.broadcast %cst_236 : f32 to vector<8x512xf32>
    %325 = arith.maximumf %323, %324 : vector<8x512xf32>
    %c4_237 = arith.constant 4 : index
    %c0_238 = arith.constant 0 : index
    %c0_239 = arith.constant 0 : index
    %326 = vector.load %arg11[%c4_237, %c0_238, %c0_239] : memref<9x16x8xbf16, #tpu.memory_space<vmem>>, vector<1x16x8xbf16>
    %327 = vector.shape_cast %326 : vector<1x16x8xbf16> to vector<16x8xbf16>
    %328 = arith.truncf %325 : vector<8x512xf32> to vector<8x512xbf16>
    %cst_240 = arith.constant dense<0.000000e+00> : vector<16x512xf32>
    %329 = tpu.matmul %327, %328, %cst_240 {dimension_numbers = #tpu.dot_dimension_numbers<[1], [0], [0], [1], [0, 0, 1, 1], [], []>} : vector<16x8xbf16>, vector<8x512xbf16>, vector<16x512xf32> -> vector<16x512xf32>
    %c0_241 = arith.constant 0 : index
    %c0_242 = arith.constant 0 : index
    %330 = vector.load %arg2[%c0_241, %c0_242] : memref<9x512xf32, #tpu.memory_space<vmem>>, vector<1x512xf32>
    %c17_i32_243 = arith.constant 17 : i32
    %331 = tpu.dynamic_rotate %325 by %c17_i32_243 dim 1 : vector<8x512xf32>, i32 -> vector<8x512xf32>
    %332 = vector.broadcast %330 : vector<1x512xf32> to vector<8x512xf32>
    %333 = arith.mulf %331, %332 : vector<8x512xf32>
    %334 = arith.truncf %333 : vector<8x512xf32> to vector<8x512xbf16>
    %c0_244 = arith.constant 0 : index
    %c0_245 = arith.constant 0 : index
    %c0_246 = arith.constant 0 : index
    %335 = vector.load %arg11[%c0_244, %c0_245, %c0_246] : memref<9x16x8xbf16, #tpu.memory_space<vmem>>, vector<1x16x8xbf16>
    %336 = vector.shape_cast %335 : vector<1x16x8xbf16> to vector<16x8xbf16>
    %cst_247 = arith.constant dense<0.000000e+00> : vector<16x512xf32>
    %337 = tpu.matmul %336, %334, %cst_247 {dimension_numbers = #tpu.dot_dimension_numbers<[1], [0], [0], [1], [0, 0, 1, 1], [], []>} : vector<16x8xbf16>, vector<8x512xbf16>, vector<16x512xf32> -> vector<16x512xf32>
    %338 = arith.addf %329, %337 : vector<16x512xf32>
    %c1_248 = arith.constant 1 : index
    %c0_249 = arith.constant 0 : index
    %339 = vector.load %arg2[%c1_248, %c0_249] : memref<9x512xf32, #tpu.memory_space<vmem>>, vector<1x512xf32>
    %c16_i32_250 = arith.constant 16 : i32
    %340 = tpu.dynamic_rotate %325 by %c16_i32_250 dim 1 : vector<8x512xf32>, i32 -> vector<8x512xf32>
    %341 = vector.broadcast %339 : vector<1x512xf32> to vector<8x512xf32>
    %342 = arith.mulf %340, %341 : vector<8x512xf32>
    %343 = arith.truncf %342 : vector<8x512xf32> to vector<8x512xbf16>
    %c1_251 = arith.constant 1 : index
    %c0_252 = arith.constant 0 : index
    %c0_253 = arith.constant 0 : index
    %344 = vector.load %arg11[%c1_251, %c0_252, %c0_253] : memref<9x16x8xbf16, #tpu.memory_space<vmem>>, vector<1x16x8xbf16>
    %345 = vector.shape_cast %344 : vector<1x16x8xbf16> to vector<16x8xbf16>
    %cst_254 = arith.constant dense<0.000000e+00> : vector<16x512xf32>
    %346 = tpu.matmul %345, %343, %cst_254 {dimension_numbers = #tpu.dot_dimension_numbers<[1], [0], [0], [1], [0, 0, 1, 1], [], []>} : vector<16x8xbf16>, vector<8x512xbf16>, vector<16x512xf32> -> vector<16x512xf32>
    %347 = arith.addf %338, %346 : vector<16x512xf32>
    %c2_255 = arith.constant 2 : index
    %c0_256 = arith.constant 0 : index
    %348 = vector.load %arg2[%c2_255, %c0_256] : memref<9x512xf32, #tpu.memory_space<vmem>>, vector<1x512xf32>
    %c15_i32_257 = arith.constant 15 : i32
    %349 = tpu.dynamic_rotate %325 by %c15_i32_257 dim 1 : vector<8x512xf32>, i32 -> vector<8x512xf32>
    %350 = vector.broadcast %348 : vector<1x512xf32> to vector<8x512xf32>
    %351 = arith.mulf %349, %350 : vector<8x512xf32>
    %352 = arith.truncf %351 : vector<8x512xf32> to vector<8x512xbf16>
    %c2_258 = arith.constant 2 : index
    %c0_259 = arith.constant 0 : index
    %c0_260 = arith.constant 0 : index
    %353 = vector.load %arg11[%c2_258, %c0_259, %c0_260] : memref<9x16x8xbf16, #tpu.memory_space<vmem>>, vector<1x16x8xbf16>
    %354 = vector.shape_cast %353 : vector<1x16x8xbf16> to vector<16x8xbf16>
    %cst_261 = arith.constant dense<0.000000e+00> : vector<16x512xf32>
    %355 = tpu.matmul %354, %352, %cst_261 {dimension_numbers = #tpu.dot_dimension_numbers<[1], [0], [0], [1], [0, 0, 1, 1], [], []>} : vector<16x8xbf16>, vector<8x512xbf16>, vector<16x512xf32> -> vector<16x512xf32>
    %356 = arith.addf %347, %355 : vector<16x512xf32>
    %c3_262 = arith.constant 3 : index
    %c0_263 = arith.constant 0 : index
    %357 = vector.load %arg2[%c3_262, %c0_263] : memref<9x512xf32, #tpu.memory_space<vmem>>, vector<1x512xf32>
    %c1_i32_264 = arith.constant 1 : i32
    %358 = tpu.dynamic_rotate %325 by %c1_i32_264 dim 1 : vector<8x512xf32>, i32 -> vector<8x512xf32>
    %359 = vector.broadcast %357 : vector<1x512xf32> to vector<8x512xf32>
    %360 = arith.mulf %358, %359 : vector<8x512xf32>
    %361 = arith.truncf %360 : vector<8x512xf32> to vector<8x512xbf16>
    %c3_265 = arith.constant 3 : index
    %c0_266 = arith.constant 0 : index
    %c0_267 = arith.constant 0 : index
    %362 = vector.load %arg11[%c3_265, %c0_266, %c0_267] : memref<9x16x8xbf16, #tpu.memory_space<vmem>>, vector<1x16x8xbf16>
    %363 = vector.shape_cast %362 : vector<1x16x8xbf16> to vector<16x8xbf16>
    %cst_268 = arith.constant dense<0.000000e+00> : vector<16x512xf32>
    %364 = tpu.matmul %363, %361, %cst_268 {dimension_numbers = #tpu.dot_dimension_numbers<[1], [0], [0], [1], [0, 0, 1, 1], [], []>} : vector<16x8xbf16>, vector<8x512xbf16>, vector<16x512xf32> -> vector<16x512xf32>
    %365 = arith.addf %356, %364 : vector<16x512xf32>
    %c5_269 = arith.constant 5 : index
    %c0_270 = arith.constant 0 : index
    %366 = vector.load %arg2[%c5_269, %c0_270] : memref<9x512xf32, #tpu.memory_space<vmem>>, vector<1x512xf32>
    %c511_i32_271 = arith.constant 511 : i32
    %367 = tpu.dynamic_rotate %325 by %c511_i32_271 dim 1 : vector<8x512xf32>, i32 -> vector<8x512xf32>
    %368 = vector.broadcast %366 : vector<1x512xf32> to vector<8x512xf32>
    %369 = arith.mulf %367, %368 : vector<8x512xf32>
    %370 = arith.truncf %369 : vector<8x512xf32> to vector<8x512xbf16>
    %c5_272 = arith.constant 5 : index
    %c0_273 = arith.constant 0 : index
    %c0_274 = arith.constant 0 : index
    %371 = vector.load %arg11[%c5_272, %c0_273, %c0_274] : memref<9x16x8xbf16, #tpu.memory_space<vmem>>, vector<1x16x8xbf16>
    %372 = vector.shape_cast %371 : vector<1x16x8xbf16> to vector<16x8xbf16>
    %cst_275 = arith.constant dense<0.000000e+00> : vector<16x512xf32>
    %373 = tpu.matmul %372, %370, %cst_275 {dimension_numbers = #tpu.dot_dimension_numbers<[1], [0], [0], [1], [0, 0, 1, 1], [], []>} : vector<16x8xbf16>, vector<8x512xbf16>, vector<16x512xf32> -> vector<16x512xf32>
    %374 = arith.addf %365, %373 : vector<16x512xf32>
    %c6_276 = arith.constant 6 : index
    %c0_277 = arith.constant 0 : index
    %375 = vector.load %arg2[%c6_276, %c0_277] : memref<9x512xf32, #tpu.memory_space<vmem>>, vector<1x512xf32>
    %c497_i32_278 = arith.constant 497 : i32
    %376 = tpu.dynamic_rotate %325 by %c497_i32_278 dim 1 : vector<8x512xf32>, i32 -> vector<8x512xf32>
    %377 = vector.broadcast %375 : vector<1x512xf32> to vector<8x512xf32>
    %378 = arith.mulf %376, %377 : vector<8x512xf32>
    %379 = arith.truncf %378 : vector<8x512xf32> to vector<8x512xbf16>
    %c6_279 = arith.constant 6 : index
    %c0_280 = arith.constant 0 : index
    %c0_281 = arith.constant 0 : index
    %380 = vector.load %arg11[%c6_279, %c0_280, %c0_281] : memref<9x16x8xbf16, #tpu.memory_space<vmem>>, vector<1x16x8xbf16>
    %381 = vector.shape_cast %380 : vector<1x16x8xbf16> to vector<16x8xbf16>
    %cst_282 = arith.constant dense<0.000000e+00> : vector<16x512xf32>
    %382 = tpu.matmul %381, %379, %cst_282 {dimension_numbers = #tpu.dot_dimension_numbers<[1], [0], [0], [1], [0, 0, 1, 1], [], []>} : vector<16x8xbf16>, vector<8x512xbf16>, vector<16x512xf32> -> vector<16x512xf32>
    %383 = arith.addf %374, %382 : vector<16x512xf32>
    %c7_283 = arith.constant 7 : index
    %c0_284 = arith.constant 0 : index
    %384 = vector.load %arg2[%c7_283, %c0_284] : memref<9x512xf32, #tpu.memory_space<vmem>>, vector<1x512xf32>
    %c496_i32_285 = arith.constant 496 : i32
    %385 = tpu.dynamic_rotate %325 by %c496_i32_285 dim 1 : vector<8x512xf32>, i32 -> vector<8x512xf32>
    %386 = vector.broadcast %384 : vector<1x512xf32> to vector<8x512xf32>
    %387 = arith.mulf %385, %386 : vector<8x512xf32>
    %388 = arith.truncf %387 : vector<8x512xf32> to vector<8x512xbf16>
    %c7_286 = arith.constant 7 : index
    %c0_287 = arith.constant 0 : index
    %c0_288 = arith.constant 0 : index
    %389 = vector.load %arg11[%c7_286, %c0_287, %c0_288] : memref<9x16x8xbf16, #tpu.memory_space<vmem>>, vector<1x16x8xbf16>
    %390 = vector.shape_cast %389 : vector<1x16x8xbf16> to vector<16x8xbf16>
    %cst_289 = arith.constant dense<0.000000e+00> : vector<16x512xf32>
    %391 = tpu.matmul %390, %388, %cst_289 {dimension_numbers = #tpu.dot_dimension_numbers<[1], [0], [0], [1], [0, 0, 1, 1], [], []>} : vector<16x8xbf16>, vector<8x512xbf16>, vector<16x512xf32> -> vector<16x512xf32>
    %392 = arith.addf %383, %391 : vector<16x512xf32>
    %c8_290 = arith.constant 8 : index
    %c0_291 = arith.constant 0 : index
    %393 = vector.load %arg2[%c8_290, %c0_291] : memref<9x512xf32, #tpu.memory_space<vmem>>, vector<1x512xf32>
    %c495_i32_292 = arith.constant 495 : i32
    %394 = tpu.dynamic_rotate %325 by %c495_i32_292 dim 1 : vector<8x512xf32>, i32 -> vector<8x512xf32>
    %395 = vector.broadcast %393 : vector<1x512xf32> to vector<8x512xf32>
    %396 = arith.mulf %394, %395 : vector<8x512xf32>
    %397 = arith.truncf %396 : vector<8x512xf32> to vector<8x512xbf16>
    %c8_293 = arith.constant 8 : index
    %c0_294 = arith.constant 0 : index
    %c0_295 = arith.constant 0 : index
    %398 = vector.load %arg11[%c8_293, %c0_294, %c0_295] : memref<9x16x8xbf16, #tpu.memory_space<vmem>>, vector<1x16x8xbf16>
    %399 = vector.shape_cast %398 : vector<1x16x8xbf16> to vector<16x8xbf16>
    %cst_296 = arith.constant dense<0.000000e+00> : vector<16x512xf32>
    %400 = tpu.matmul %399, %397, %cst_296 {dimension_numbers = #tpu.dot_dimension_numbers<[1], [0], [0], [1], [0, 0, 1, 1], [], []>} : vector<16x8xbf16>, vector<8x512xbf16>, vector<16x512xf32> -> vector<16x512xf32>
    %401 = arith.addf %392, %400 : vector<16x512xf32>
    %c0_297 = arith.constant 0 : index
    %c0_298 = arith.constant 0 : index
    %402 = vector.load %arg12[%c0_297, %c0_298] : memref<16x1xf32, #tpu.memory_space<vmem>>, vector<16x1xf32>
    %403 = vector.broadcast %402 : vector<16x1xf32> to vector<16x512xf32>
    %404 = arith.addf %401, %403 : vector<16x512xf32>
    %cst_299 = arith.constant 0.000000e+00 : f32
    %405 = vector.broadcast %cst_299 : f32 to vector<16x512xf32>
    %406 = arith.maximumf %404, %405 : vector<16x512xf32>
    %c4_300 = arith.constant 4 : index
    %c0_301 = arith.constant 0 : index
    %c0_302 = arith.constant 0 : index
    %407 = vector.load %arg13[%c4_300, %c0_301, %c0_302] : memref<9x16x16xbf16, #tpu.memory_space<vmem>>, vector<1x16x16xbf16>
    %408 = vector.shape_cast %407 : vector<1x16x16xbf16> to vector<16x16xbf16>
    %409 = arith.truncf %406 : vector<16x512xf32> to vector<16x512xbf16>
    %cst_303 = arith.constant dense<0.000000e+00> : vector<16x512xf32>
    %410 = tpu.matmul %408, %409, %cst_303 {dimension_numbers = #tpu.dot_dimension_numbers<[1], [0], [0], [1], [0, 0, 1, 1], [], []>} : vector<16x16xbf16>, vector<16x512xbf16>, vector<16x512xf32> -> vector<16x512xf32>
    %c0_304 = arith.constant 0 : index
    %c0_305 = arith.constant 0 : index
    %411 = vector.load %arg2[%c0_304, %c0_305] : memref<9x512xf32, #tpu.memory_space<vmem>>, vector<1x512xf32>
    %c17_i32_306 = arith.constant 17 : i32
    %412 = tpu.dynamic_rotate %406 by %c17_i32_306 dim 1 : vector<16x512xf32>, i32 -> vector<16x512xf32>
    %413 = vector.broadcast %411 : vector<1x512xf32> to vector<16x512xf32>
    %414 = arith.mulf %412, %413 : vector<16x512xf32>
    %415 = arith.truncf %414 : vector<16x512xf32> to vector<16x512xbf16>
    %c0_307 = arith.constant 0 : index
    %c0_308 = arith.constant 0 : index
    %c0_309 = arith.constant 0 : index
    %416 = vector.load %arg13[%c0_307, %c0_308, %c0_309] : memref<9x16x16xbf16, #tpu.memory_space<vmem>>, vector<1x16x16xbf16>
    %417 = vector.shape_cast %416 : vector<1x16x16xbf16> to vector<16x16xbf16>
    %cst_310 = arith.constant dense<0.000000e+00> : vector<16x512xf32>
    %418 = tpu.matmul %417, %415, %cst_310 {dimension_numbers = #tpu.dot_dimension_numbers<[1], [0], [0], [1], [0, 0, 1, 1], [], []>} : vector<16x16xbf16>, vector<16x512xbf16>, vector<16x512xf32> -> vector<16x512xf32>
    %419 = arith.addf %410, %418 : vector<16x512xf32>
    %c1_311 = arith.constant 1 : index
    %c0_312 = arith.constant 0 : index
    %420 = vector.load %arg2[%c1_311, %c0_312] : memref<9x512xf32, #tpu.memory_space<vmem>>, vector<1x512xf32>
    %c16_i32_313 = arith.constant 16 : i32
    %421 = tpu.dynamic_rotate %406 by %c16_i32_313 dim 1 : vector<16x512xf32>, i32 -> vector<16x512xf32>
    %422 = vector.broadcast %420 : vector<1x512xf32> to vector<16x512xf32>
    %423 = arith.mulf %421, %422 : vector<16x512xf32>
    %424 = arith.truncf %423 : vector<16x512xf32> to vector<16x512xbf16>
    %c1_314 = arith.constant 1 : index
    %c0_315 = arith.constant 0 : index
    %c0_316 = arith.constant 0 : index
    %425 = vector.load %arg13[%c1_314, %c0_315, %c0_316] : memref<9x16x16xbf16, #tpu.memory_space<vmem>>, vector<1x16x16xbf16>
    %426 = vector.shape_cast %425 : vector<1x16x16xbf16> to vector<16x16xbf16>
    %cst_317 = arith.constant dense<0.000000e+00> : vector<16x512xf32>
    %427 = tpu.matmul %426, %424, %cst_317 {dimension_numbers = #tpu.dot_dimension_numbers<[1], [0], [0], [1], [0, 0, 1, 1], [], []>} : vector<16x16xbf16>, vector<16x512xbf16>, vector<16x512xf32> -> vector<16x512xf32>
    %428 = arith.addf %419, %427 : vector<16x512xf32>
    %c2_318 = arith.constant 2 : index
    %c0_319 = arith.constant 0 : index
    %429 = vector.load %arg2[%c2_318, %c0_319] : memref<9x512xf32, #tpu.memory_space<vmem>>, vector<1x512xf32>
    %c15_i32_320 = arith.constant 15 : i32
    %430 = tpu.dynamic_rotate %406 by %c15_i32_320 dim 1 : vector<16x512xf32>, i32 -> vector<16x512xf32>
    %431 = vector.broadcast %429 : vector<1x512xf32> to vector<16x512xf32>
    %432 = arith.mulf %430, %431 : vector<16x512xf32>
    %433 = arith.truncf %432 : vector<16x512xf32> to vector<16x512xbf16>
    %c2_321 = arith.constant 2 : index
    %c0_322 = arith.constant 0 : index
    %c0_323 = arith.constant 0 : index
    %434 = vector.load %arg13[%c2_321, %c0_322, %c0_323] : memref<9x16x16xbf16, #tpu.memory_space<vmem>>, vector<1x16x16xbf16>
    %435 = vector.shape_cast %434 : vector<1x16x16xbf16> to vector<16x16xbf16>
    %cst_324 = arith.constant dense<0.000000e+00> : vector<16x512xf32>
    %436 = tpu.matmul %435, %433, %cst_324 {dimension_numbers = #tpu.dot_dimension_numbers<[1], [0], [0], [1], [0, 0, 1, 1], [], []>} : vector<16x16xbf16>, vector<16x512xbf16>, vector<16x512xf32> -> vector<16x512xf32>
    %437 = arith.addf %428, %436 : vector<16x512xf32>
    %c3_325 = arith.constant 3 : index
    %c0_326 = arith.constant 0 : index
    %438 = vector.load %arg2[%c3_325, %c0_326] : memref<9x512xf32, #tpu.memory_space<vmem>>, vector<1x512xf32>
    %c1_i32_327 = arith.constant 1 : i32
    %439 = tpu.dynamic_rotate %406 by %c1_i32_327 dim 1 : vector<16x512xf32>, i32 -> vector<16x512xf32>
    %440 = vector.broadcast %438 : vector<1x512xf32> to vector<16x512xf32>
    %441 = arith.mulf %439, %440 : vector<16x512xf32>
    %442 = arith.truncf %441 : vector<16x512xf32> to vector<16x512xbf16>
    %c3_328 = arith.constant 3 : index
    %c0_329 = arith.constant 0 : index
    %c0_330 = arith.constant 0 : index
    %443 = vector.load %arg13[%c3_328, %c0_329, %c0_330] : memref<9x16x16xbf16, #tpu.memory_space<vmem>>, vector<1x16x16xbf16>
    %444 = vector.shape_cast %443 : vector<1x16x16xbf16> to vector<16x16xbf16>
    %cst_331 = arith.constant dense<0.000000e+00> : vector<16x512xf32>
    %445 = tpu.matmul %444, %442, %cst_331 {dimension_numbers = #tpu.dot_dimension_numbers<[1], [0], [0], [1], [0, 0, 1, 1], [], []>} : vector<16x16xbf16>, vector<16x512xbf16>, vector<16x512xf32> -> vector<16x512xf32>
    %446 = arith.addf %437, %445 : vector<16x512xf32>
    %c5_332 = arith.constant 5 : index
    %c0_333 = arith.constant 0 : index
    %447 = vector.load %arg2[%c5_332, %c0_333] : memref<9x512xf32, #tpu.memory_space<vmem>>, vector<1x512xf32>
    %c511_i32_334 = arith.constant 511 : i32
    %448 = tpu.dynamic_rotate %406 by %c511_i32_334 dim 1 : vector<16x512xf32>, i32 -> vector<16x512xf32>
    %449 = vector.broadcast %447 : vector<1x512xf32> to vector<16x512xf32>
    %450 = arith.mulf %448, %449 : vector<16x512xf32>
    %451 = arith.truncf %450 : vector<16x512xf32> to vector<16x512xbf16>
    %c5_335 = arith.constant 5 : index
    %c0_336 = arith.constant 0 : index
    %c0_337 = arith.constant 0 : index
    %452 = vector.load %arg13[%c5_335, %c0_336, %c0_337] : memref<9x16x16xbf16, #tpu.memory_space<vmem>>, vector<1x16x16xbf16>
    %453 = vector.shape_cast %452 : vector<1x16x16xbf16> to vector<16x16xbf16>
    %cst_338 = arith.constant dense<0.000000e+00> : vector<16x512xf32>
    %454 = tpu.matmul %453, %451, %cst_338 {dimension_numbers = #tpu.dot_dimension_numbers<[1], [0], [0], [1], [0, 0, 1, 1], [], []>} : vector<16x16xbf16>, vector<16x512xbf16>, vector<16x512xf32> -> vector<16x512xf32>
    %455 = arith.addf %446, %454 : vector<16x512xf32>
    %c6_339 = arith.constant 6 : index
    %c0_340 = arith.constant 0 : index
    %456 = vector.load %arg2[%c6_339, %c0_340] : memref<9x512xf32, #tpu.memory_space<vmem>>, vector<1x512xf32>
    %c497_i32_341 = arith.constant 497 : i32
    %457 = tpu.dynamic_rotate %406 by %c497_i32_341 dim 1 : vector<16x512xf32>, i32 -> vector<16x512xf32>
    %458 = vector.broadcast %456 : vector<1x512xf32> to vector<16x512xf32>
    %459 = arith.mulf %457, %458 : vector<16x512xf32>
    %460 = arith.truncf %459 : vector<16x512xf32> to vector<16x512xbf16>
    %c6_342 = arith.constant 6 : index
    %c0_343 = arith.constant 0 : index
    %c0_344 = arith.constant 0 : index
    %461 = vector.load %arg13[%c6_342, %c0_343, %c0_344] : memref<9x16x16xbf16, #tpu.memory_space<vmem>>, vector<1x16x16xbf16>
    %462 = vector.shape_cast %461 : vector<1x16x16xbf16> to vector<16x16xbf16>
    %cst_345 = arith.constant dense<0.000000e+00> : vector<16x512xf32>
    %463 = tpu.matmul %462, %460, %cst_345 {dimension_numbers = #tpu.dot_dimension_numbers<[1], [0], [0], [1], [0, 0, 1, 1], [], []>} : vector<16x16xbf16>, vector<16x512xbf16>, vector<16x512xf32> -> vector<16x512xf32>
    %464 = arith.addf %455, %463 : vector<16x512xf32>
    %c7_346 = arith.constant 7 : index
    %c0_347 = arith.constant 0 : index
    %465 = vector.load %arg2[%c7_346, %c0_347] : memref<9x512xf32, #tpu.memory_space<vmem>>, vector<1x512xf32>
    %c496_i32_348 = arith.constant 496 : i32
    %466 = tpu.dynamic_rotate %406 by %c496_i32_348 dim 1 : vector<16x512xf32>, i32 -> vector<16x512xf32>
    %467 = vector.broadcast %465 : vector<1x512xf32> to vector<16x512xf32>
    %468 = arith.mulf %466, %467 : vector<16x512xf32>
    %469 = arith.truncf %468 : vector<16x512xf32> to vector<16x512xbf16>
    %c7_349 = arith.constant 7 : index
    %c0_350 = arith.constant 0 : index
    %c0_351 = arith.constant 0 : index
    %470 = vector.load %arg13[%c7_349, %c0_350, %c0_351] : memref<9x16x16xbf16, #tpu.memory_space<vmem>>, vector<1x16x16xbf16>
    %471 = vector.shape_cast %470 : vector<1x16x16xbf16> to vector<16x16xbf16>
    %cst_352 = arith.constant dense<0.000000e+00> : vector<16x512xf32>
    %472 = tpu.matmul %471, %469, %cst_352 {dimension_numbers = #tpu.dot_dimension_numbers<[1], [0], [0], [1], [0, 0, 1, 1], [], []>} : vector<16x16xbf16>, vector<16x512xbf16>, vector<16x512xf32> -> vector<16x512xf32>
    %473 = arith.addf %464, %472 : vector<16x512xf32>
    %c8_353 = arith.constant 8 : index
    %c0_354 = arith.constant 0 : index
    %474 = vector.load %arg2[%c8_353, %c0_354] : memref<9x512xf32, #tpu.memory_space<vmem>>, vector<1x512xf32>
    %c495_i32_355 = arith.constant 495 : i32
    %475 = tpu.dynamic_rotate %406 by %c495_i32_355 dim 1 : vector<16x512xf32>, i32 -> vector<16x512xf32>
    %476 = vector.broadcast %474 : vector<1x512xf32> to vector<16x512xf32>
    %477 = arith.mulf %475, %476 : vector<16x512xf32>
    %478 = arith.truncf %477 : vector<16x512xf32> to vector<16x512xbf16>
    %c8_356 = arith.constant 8 : index
    %c0_357 = arith.constant 0 : index
    %c0_358 = arith.constant 0 : index
    %479 = vector.load %arg13[%c8_356, %c0_357, %c0_358] : memref<9x16x16xbf16, #tpu.memory_space<vmem>>, vector<1x16x16xbf16>
    %480 = vector.shape_cast %479 : vector<1x16x16xbf16> to vector<16x16xbf16>
    %cst_359 = arith.constant dense<0.000000e+00> : vector<16x512xf32>
    %481 = tpu.matmul %480, %478, %cst_359 {dimension_numbers = #tpu.dot_dimension_numbers<[1], [0], [0], [1], [0, 0, 1, 1], [], []>} : vector<16x16xbf16>, vector<16x512xbf16>, vector<16x512xf32> -> vector<16x512xf32>
    %482 = arith.addf %473, %481 : vector<16x512xf32>
    %c0_360 = arith.constant 0 : index
    %c0_361 = arith.constant 0 : index
    %483 = vector.load %arg14[%c0_360, %c0_361] : memref<16x1xf32, #tpu.memory_space<vmem>>, vector<16x1xf32>
    %484 = vector.broadcast %483 : vector<16x1xf32> to vector<16x512xf32>
    %485 = arith.addf %482, %484 : vector<16x512xf32>
    %cst_362 = arith.constant 0.000000e+00 : f32
    %486 = vector.broadcast %cst_362 : f32 to vector<16x512xf32>
    %487 = arith.maximumf %485, %486 : vector<16x512xf32>
    %c0_363 = arith.constant 0 : index
    %c0_364 = arith.constant 0 : index
    %488 = vector.load %arg15[%c0_363, %c0_364] : memref<8x16xbf16, #tpu.memory_space<vmem>>, vector<8x16xbf16>
    %489 = arith.truncf %487 : vector<16x512xf32> to vector<16x512xbf16>
    %cst_365 = arith.constant dense<0.000000e+00> : vector<8x512xf32>
    %490 = tpu.matmul %488, %489, %cst_365 {dimension_numbers = #tpu.dot_dimension_numbers<[1], [0], [0], [1], [0, 0, 1, 1], [], []>} : vector<8x16xbf16>, vector<16x512xbf16>, vector<8x512xf32> -> vector<8x512xf32>
    %c0_366 = arith.constant 0 : index
    %c0_367 = arith.constant 0 : index
    %491 = vector.load %arg16[%c0_366, %c0_367] : memref<8x1xf32, #tpu.memory_space<vmem>>, vector<8x1xf32>
    %492 = vector.broadcast %491 : vector<8x1xf32> to vector<8x512xf32>
    %493 = arith.addf %490, %492 : vector<8x512xf32>
    %494 = vector.extract_strided_slice %493 {offsets = [0, 0], sizes = [8, 256], strides = [1, 1]} : vector<8x512xf32> to vector<8x256xf32>
    %cst_368 = arith.constant dense<0xFF800000> : vector<8xf32>
    %495 = vector.multi_reduction <maximumf>, %494, %cst_368 [1] : vector<8x256xf32> to vector<8xf32>
    %496 = vector.shape_cast %495 : vector<8xf32> to vector<8x1xf32>
    %497 = vector.broadcast %496 : vector<8x1xf32> to vector<8x256xf32>
    %498 = arith.subf %494, %497 : vector<8x256xf32>
    %499 = math.exp %498 : vector<8x256xf32>
    %cst_369 = arith.constant dense<0.000000e+00> : vector<8xf32>
    %500 = vector.multi_reduction <add>, %499, %cst_369 [1] : vector<8x256xf32> to vector<8xf32>
    %501 = vector.shape_cast %500 : vector<8xf32> to vector<8x1xf32>
    %502 = vector.broadcast %501 : vector<8x1xf32> to vector<8x256xf32>
    %503 = arith.divf %499, %502 : vector<8x256xf32>
    %c0_370 = arith.constant 0 : index
    %c0_371 = arith.constant 0 : index
    %c0_372 = arith.constant 0 : index
    %c0_373 = arith.constant 0 : index
    %504 = vector.load %arg17[%c0_370, %c0_371, %c0_372, %c0_373] : memref<1x2x8x256xf32, #tpu.memory_space<vmem>>, vector<1x1x8x256xf32>
    %505 = vector.shape_cast %504 : vector<1x1x8x256xf32> to vector<8x256xf32>
    %506 = vector.shape_cast %503 : vector<8x256xf32> to vector<1x1x8x256xf32>
    tpu.vector_store %arg17[%c0_370, %c0_371, %c0_372, %c0_373], %506 {strides = array<i32>} : memref<1x2x8x256xf32, #tpu.memory_space<vmem>>, vector<1x1x8x256xf32>,
    %507 = vector.extract_strided_slice %493 {offsets = [0, 256], sizes = [8, 256], strides = [1, 1]} : vector<8x512xf32> to vector<8x256xf32>
    %cst_374 = arith.constant dense<0xFF800000> : vector<8xf32>
    %508 = vector.multi_reduction <maximumf>, %507, %cst_374 [1] : vector<8x256xf32> to vector<8xf32>
    %509 = vector.shape_cast %508 : vector<8xf32> to vector<8x1xf32>
    %510 = vector.broadcast %509 : vector<8x1xf32> to vector<8x256xf32>
    %511 = arith.subf %507, %510 : vector<8x256xf32>
    %512 = math.exp %511 : vector<8x256xf32>
    %cst_375 = arith.constant dense<0.000000e+00> : vector<8xf32>
    %513 = vector.multi_reduction <add>, %512, %cst_375 [1] : vector<8x256xf32> to vector<8xf32>
    %514 = vector.shape_cast %513 : vector<8xf32> to vector<8x1xf32>
    %515 = vector.broadcast %514 : vector<8x1xf32> to vector<8x256xf32>
    %516 = arith.divf %512, %515 : vector<8x256xf32>
    %c0_376 = arith.constant 0 : index
    %c1_377 = arith.constant 1 : index
    %c0_378 = arith.constant 0 : index
    %c0_379 = arith.constant 0 : index
    %517 = vector.load %arg17[%c0_376, %c1_377, %c0_378, %c0_379] : memref<1x2x8x256xf32, #tpu.memory_space<vmem>>, vector<1x1x8x256xf32>
    %518 = vector.shape_cast %517 : vector<1x1x8x256xf32> to vector<8x256xf32>
    %519 = vector.shape_cast %516 : vector<8x256xf32> to vector<1x1x8x256xf32>
    tpu.vector_store %arg17[%c0_376, %c1_377, %c0_378, %c0_379], %519 {strides = array<i32>} : memref<1x2x8x256xf32, #tpu.memory_space<vmem>>, vector<1x1x8x256xf32>,
    return
  }
  func.func @transform_0(%arg0: i32) -> (i32, i32, i32) {
    %c0_i32 = arith.constant 0 : i32
    %c0_i32_0 = arith.constant 0 : i32
    %c0_i32_1 = arith.constant 0 : i32
    return %arg0, %c0_i32, %c0_i32_0 : i32, i32, i32
  }
  func.func @transform_1(%arg0: i32) -> (i32, i32) {
    %c0_i32 = arith.constant 0 : i32
    %c0_i32_0 = arith.constant 0 : i32
    %c0_i32_1 = arith.constant 0 : i32
    return %c0_i32, %c0_i32_0 : i32, i32
  }
  func.func @transform_2(%arg0: i32) -> (i32, i32, i32) {
    %c0_i32 = arith.constant 0 : i32
    %c0_i32_0 = arith.constant 0 : i32
    %c0_i32_1 = arith.constant 0 : i32
    %c0_i32_2 = arith.constant 0 : i32
    return %c0_i32, %c0_i32_0, %c0_i32_1 : i32, i32, i32
  }
  func.func @transform_3(%arg0: i32) -> (i32, i32) {
    %c0_i32 = arith.constant 0 : i32
    %c0_i32_0 = arith.constant 0 : i32
    %c0_i32_1 = arith.constant 0 : i32
    return %c0_i32, %c0_i32_0 : i32, i32
  }
  func.func @transform_4(%arg0: i32) -> (i32, i32, i32) {
    %c0_i32 = arith.constant 0 : i32
    %c0_i32_0 = arith.constant 0 : i32
    %c0_i32_1 = arith.constant 0 : i32
    %c0_i32_2 = arith.constant 0 : i32
    return %c0_i32, %c0_i32_0, %c0_i32_1 : i32, i32, i32
  }
  func.func @transform_5(%arg0: i32) -> (i32, i32) {
    %c0_i32 = arith.constant 0 : i32
    %c0_i32_0 = arith.constant 0 : i32
    %c0_i32_1 = arith.constant 0 : i32
    return %c0_i32, %c0_i32_0 : i32, i32
  }
  func.func @transform_6(%arg0: i32) -> (i32, i32, i32) {
    %c0_i32 = arith.constant 0 : i32
    %c0_i32_0 = arith.constant 0 : i32
    %c0_i32_1 = arith.constant 0 : i32
    %c0_i32_2 = arith.constant 0 : i32
    return %c0_i32, %c0_i32_0, %c0_i32_1 : i32, i32, i32
  }
  func.func @transform_7(%arg0: i32) -> (i32, i32) {
    %c0_i32 = arith.constant 0 : i32
    %c0_i32_0 = arith.constant 0 : i32
    %c0_i32_1 = arith.constant 0 : i32
    return %c0_i32, %c0_i32_0 : i32, i32
  }
  func.func @transform_8(%arg0: i32) -> (i32, i32, i32) {
    %c0_i32 = arith.constant 0 : i32
    %c0_i32_0 = arith.constant 0 : i32
    %c0_i32_1 = arith.constant 0 : i32
    %c0_i32_2 = arith.constant 0 : i32
    return %c0_i32, %c0_i32_0, %c0_i32_1 : i32, i32, i32
  }
  func.func @transform_9(%arg0: i32) -> (i32, i32) {
    %c0_i32 = arith.constant 0 : i32
    %c0_i32_0 = arith.constant 0 : i32
    %c0_i32_1 = arith.constant 0 : i32
    return %c0_i32, %c0_i32_0 : i32, i32
  }
  func.func @transform_10(%arg0: i32) -> (i32, i32, i32) {
    %c0_i32 = arith.constant 0 : i32
    %c0_i32_0 = arith.constant 0 : i32
    %c0_i32_1 = arith.constant 0 : i32
    %c0_i32_2 = arith.constant 0 : i32
    return %c0_i32, %c0_i32_0, %c0_i32_1 : i32, i32, i32
  }
  func.func @transform_11(%arg0: i32) -> (i32, i32) {
    %c0_i32 = arith.constant 0 : i32
    %c0_i32_0 = arith.constant 0 : i32
    %c0_i32_1 = arith.constant 0 : i32
    return %c0_i32, %c0_i32_0 : i32, i32
  }
  func.func @transform_12(%arg0: i32) -> (i32, i32, i32) {
    %c0_i32 = arith.constant 0 : i32
    %c0_i32_0 = arith.constant 0 : i32
    %c0_i32_1 = arith.constant 0 : i32
    %c0_i32_2 = arith.constant 0 : i32
    return %c0_i32, %c0_i32_0, %c0_i32_1 : i32, i32, i32
  }
  func.func @transform_13(%arg0: i32) -> (i32, i32) {
    %c0_i32 = arith.constant 0 : i32
    %c0_i32_0 = arith.constant 0 : i32
    %c0_i32_1 = arith.constant 0 : i32
    return %c0_i32, %c0_i32_0 : i32, i32
  }
  func.func @transform_14(%arg0: i32) -> (i32, i32) {
    %c0_i32 = arith.constant 0 : i32
    %c0_i32_0 = arith.constant 0 : i32
    %c0_i32_1 = arith.constant 0 : i32
    return %c0_i32, %c0_i32_0 : i32, i32
  }
  func.func @transform_15(%arg0: i32) -> (i32, i32) {
    %c0_i32 = arith.constant 0 : i32
    %c0_i32_0 = arith.constant 0 : i32
    %c0_i32_1 = arith.constant 0 : i32
    return %c0_i32, %c0_i32_0 : i32, i32
  }
  func.func @transform_16(%arg0: i32) -> (i32, i32, i32, i32) {
    %c0_i32 = arith.constant 0 : i32
    %c0_i32_0 = arith.constant 0 : i32
    %c0_i32_1 = arith.constant 0 : i32
    %c0_i32_2 = arith.constant 0 : i32
    return %arg0, %c0_i32, %c0_i32_0, %c0_i32_1 : i32, i32, i32, i32
  }
}

</mosaic_0001>

<bundles_post_ra>
// kernel: forward.1
= control target key start
LH: loop header
LB: loop body
LE: loop exit
PB: predicated region body
PF: predicated region fallthrough
CT: control target
= control target key end

     0   :  { %s8148_s0 = inlined_call_operand.vmem [shape: f32[1,8,512], index: 0, kind: input, shape index: {}]   ;;  %s8149_s1 = inlined_call_operand.vmem [shape: f32[9,512], index: 1, kind: input, shape index: {}]   ;;  %s8150_s2 = inlined_call_operand.vmem [shape: bf16[9,8,8], index: 2, kind: input, shape index: {}]   ;;  %s8151_s3 = inlined_call_operand.hbm [shape: f32[8,1], index: 3, kind: input, shape index: {}]   ;;  %s8152_s4 = inlined_call_operand.vmem [shape: bf16[9,8,8], index: 4, kind: input, shape index: {}]   ;;  %s8153_s5 = inlined_call_operand.hbm [shape: f32[8,1], index: 5, kind: input, shape index: {}]   ;;  %s8154_s6 = inlined_call_operand.vmem [shape: bf16[9,8,8], index: 6, kind: input, shape index: {}]   ;;  %s8155_s7 = inlined_call_operand.vmem [shape: f32[8,1], index: 7, kind: input, shape index: {}]   ;;  %s8156_s8 = inlined_call_operand.vmem [shape: bf16[9,8,8], index: 8, kind: input, shape index: {}]   ;;  %s8157_s9 = inlined_call_operand.vmem [shape: f32[8,1], index: 9, kind: input, shape index: {}]   ;;  %s8158_s10 = inlined_call_operand.vmem [shape: bf16[9,16,8], index: 10, kind: input, shape index: {}]   ;;  %s8159_s11 = inlined_call_operand.vmem [shape: f32[16,1], index: 11, kind: input, shape index: {}]   ;;  %s8160_s12 = inlined_call_operand.vmem [shape: bf16[9,16,16], index: 12, kind: input, shape index: {}]   ;;  %s8161_s13 = inlined_call_operand.vmem [shape: f32[16,1], index: 13, kind: input, shape index: {}]   ;;  %s8162_s14 = inlined_call_operand.vmem [shape: bf16[8,16], index: 14, kind: input, shape index: {}]   ;;  %s8163_s15 = inlined_call_operand.vmem [shape: f32[8,1], index: 15, kind: input, shape index: {}]   ;;  %s8164_s16 = inlined_call_operand.vmem [shape: f32[1,2,8,256], index: 16, kind: output, shape index: {}]  }
   0x1   :  { %8232 = sst [smem:[#allocation44_spill]] %s8148_s0 }
   0x2   :  { %21 = vsyncpa [#allocation3], 0  ;;  %s34_s23 = sshll.u32 %s8151_s3, 4  ;;  %s35_s23 = int_to_ptr.hbm [resolvable:$true] %s34_s23 }
   0x3   :  { %22 = vsyncpa [#allocation5], 0  ;;  %s6020_s24 = smov [#allocation2]   ;;  %s47_s28 = sshll.u32 %s8153_s5, 4  ;;  %s48_s28 = int_to_ptr.hbm [resolvable:$true] %s47_s28 }
   0x4   :  { %s36_s25 = sshll.u32 %s6020_s24, 4  ;;  %s6021_s29 = smov [#allocation4]   ;;  %s37_s25 = int_to_ptr.vmem [resolvable:$true] %s36_s25 }
   0x5   :  { %39 = dma.hbm_to_vmem [thread:$0]  %s35_s23, 128, %s37_s25, [#allocation3]  }
   0x6   :  { %s49_s30 = sshll.u32 %s6021_s29, 4  ;;  %s50_s30 = int_to_ptr.vmem [resolvable:$true] %s49_s30 }
   0x7   :  { %52 = dma.hbm_to_vmem [thread:$0]  %s48_s28, 128, %s50_s30, [#allocation5]  }
   0x8   :  { %6016 = dma.done.wait [#allocation3], 128  }
   0x9   :  { %6017 = vsyncadd [#allocation3], 4294967168 }
   0xa   :  { %6018 = dma.done.wait [#allocation5], 128  }
   0xb   :  { %6019 = vsyncadd [#allocation5], 4294967168  ;;  %s8233_s17 = sld [smem:[#allocation44_spill]]  ;;  %s6022_s5 = smov 17   ;;  %v101_v5 = vlaneseq  ;;  %vm130_vm2 = vcmask 1043456   ;;  %vm126_vm3 = vcmask 64512  }
   0xc   :  { %s6023_s20 = smov 16   ;;  %s6024_s25 = smov 15   ;;  %v5568_v10 = vld [vmem:[%s8149_s1 + $0x1] ss:$8 sm:$0xf]  ;;  %vm4497_vm10 = vcmask 130048  }
   0xd   :  { %s6025_s26 = smov 1   ;;  %s6026_s27 = smov 127   ;;  %v6206_v9 = vand.u32 127, %v101_v5  ;;  %v92_v11 = vld [vmem:[%s8149_s1] ss:$8 sm:$0xf] }
   0xe   :  { %s6027_s28 = smov 113   ;;  %s6028_s29 = smov 112   ;;  %v6215_v12 = vperm.slane %v5568_v10, 2  ;;  %v6220_v14 = vperm.slane %v92_v11, 0  ;;  %v6222_v15 = vperm.slane %v92_v11, 1  ;;  %v6224_v16 = vperm.slane %v92_v11, 2 }
   0xf   :  { %s6029_s30 = smov 111   ;;  %8234 = vst [vmem:[#allocation8_spill] sm:$0xff] %v6206_v9  ;;  %vm272_vm0 = vcmp.lt.s32.totalorder %v6206_v9, 16  ;;  %vm103_vm1 = vcmp.lt.s32.totalorder %v6206_v9, 17  ;;  %v6226_v17 = vperm.slane %v92_v11, 3  ;;  %v6253_v41 = vperm.slane %v5568_v10, 1 }
  0x10   :  { %8235 = vst [vmem:[#allocation9_spill] sm:$0xff] %v6215_v12  ;;  %v6255_v42 = vperm.slane %v5568_v10, 0  ;;  %v6257_v43 = vperm.slane %v5568_v10, 3  ;;  %v125_v48 = vld [vmem:[%s8150_s2] sm:$0xf]  ;;  %vm377_vm4 = vcmp.lt.s32.totalorder %v6206_v9, 15 }
  0x11   :  { %v6125_v0 = vld [vmem:[%s8233_s17 + $0x18] sm:$0xff]  ;;  %v6130_v1 = vld [vmem:[%s8233_s17 + $0x8] sm:$0xff]  ;;  %v6141_v2 = vld [vmem:[%s8233_s17 + $0x10] sm:$0xff]  ;;  %8236 = vst [vmem:[#allocation10_spill] sm:$0xff] %v6220_v14  ;;  %vm482_vm5 = vcmp.lt.s32.totalorder %v6206_v9, 1  ;;  %vm587_vm6 = vcmp.lt.s32.totalorder %v6206_v9, 127 }
  0x12   :  { %99 = vrot.lane.b32.xlu1 %v6125_v0, %s6022_s5  ;;  %95 = vrot.lane.b32.xlu0 %v6130_v1, %s6022_s5  ;;  %v6146_v3 = vld [vmem:[%s8233_s17] sm:$0xff]  ;;  %8237 = vst [vmem:[#allocation11_spill] sm:$0xff] %v6222_v15  ;;  %v89_v19 = vpack.c.bf16 %v6130_v1, %v6130_v1  ;;  %v90_v34 = vpack.c.bf16 %v6141_v2, %v6141_v2  ;;  %vm692_vm7 = vcmp.lt.s32.totalorder %v6206_v9, 113  ;;  %vm797_vm8 = vcmp.lt.s32.totalorder %v6206_v9, 112 }
  0x13   :  { %266 = vrot.lane.b32.xlu2 %v6130_v1, %s6023_s20  ;;  %8238 = vst [vmem:[#allocation12_spill] sm:$0xff] %v6224_v16  ;;  %v88_v18 = vpack.c.bf16 %v6146_v3, %v6146_v3  ;;  %v91_v35 = vpack.c.bf16 %v6125_v0, %v6125_v0  ;;  %v5574_v60 = vld [vmem:[%s8149_s1 + $0x2] ss:$8 sm:$0xf]  ;;  %vm902_vm9 = vcmp.lt.s32.totalorder %v6206_v9, 111 }
  0x14   :  { %8239 = vst [vmem:[#allocation13_spill] sm:$0xff] %v6226_v17  ;;  %v202_v33 = vsel %vm130_vm2, %v89_v19, 0  ;;  %v205_v49 = vsel %vm130_vm2, %v90_v34, 0 }
  0x15   :  { %v199_v32 = vsel %vm130_vm2, %v88_v18, 0  ;;  %8240 = vst [vmem:[#allocation14_spill] sm:$0xff] %v6253_v41  ;;  %v208_v50 = vsel %vm130_vm2, %v91_v35, 0  ;;  %v5580_v35 = vld [vmem:[%s8149_s1 + $0x3] ss:$8 sm:$0xf] }
  0x16   :  { %8241 = vst [vmem:[#allocation15_spill] sm:$0xff] %v6255_v42 }
  0x17   :  { %8242 = vst [vmem:[#allocation16_spill] sm:$0xff] %v6257_v43 }
  0x1a   :  { %97 = vrot.lane.b32.xlu0 %v6141_v2, %s6022_s5  ;;  %93 = vrot.lane.b32.xlu1 %v6146_v3, %s6022_s5 }
  0x1b   :  { %268 = vrot.lane.b32.xlu2 %v6141_v2, %s6023_s20 }
  0x22   :  { %264 = vrot.lane.b32.xlu1 %v6146_v3, %s6023_s20  ;;  %270 = vrot.lane.b32.xlu0 %v6125_v0, %s6023_s20 }
  0x23   :  { %371 = vrot.lane.b32.xlu2 %v6130_v1, %s6024_s25 }
  0x2a   :  { %373 = vrot.lane.b32.xlu0 %v6141_v2, %s6024_s25  ;;  %375 = vrot.lane.b32.xlu1 %v6125_v0, %s6024_s25 }
  0x2b   :  { %369 = vrot.lane.b32.xlu2 %v6146_v3, %s6024_s25 }
  0x32   :  { %476 = vrot.lane.b32.xlu0 %v6130_v1, %s6025_s26  ;;  %478 = vrot.lane.b32.xlu1 %v6141_v2, %s6025_s26 }
  0x33   :  { %480 = vrot.lane.b32.xlu2 %v6125_v0, %s6025_s26 }
  0x3a   :  { %474 = vrot.lane.b32.xlu0 %v6146_v3, %s6025_s26  ;;  %579 = vrot.lane.b32.xlu1 %v6146_v3, %s6026_s27 }
  0x3b   :  { %583 = vrot.lane.b32.xlu2 %v6141_v2, %s6026_s27 }
  0x42   :  { %585 = vrot.lane.b32.xlu0 %v6125_v0, %s6026_s27  ;;  %581 = vrot.lane.b32.xlu1 %v6130_v1, %s6026_s27 }
  0x43   :  { %684 = vrot.lane.b32.xlu2 %v6146_v3, %s6027_s28 }
  0x4a   :  { %688 = vrot.lane.b32.xlu0 %v6141_v2, %s6027_s28  ;;  %690 = vrot.lane.b32.xlu1 %v6125_v0, %s6027_s28 }
  0x4b   :  { %686 = vrot.lane.b32.xlu2 %v6130_v1, %s6027_s28 }
  0x52   :  { %789 = vrot.lane.b32.xlu0 %v6146_v3, %s6028_s29  ;;  %793 = vrot.lane.b32.xlu1 %v6141_v2, %s6028_s29 }
  0x53   :  { %795 = vrot.lane.b32.xlu2 %v6125_v0, %s6028_s29 }
  0x5a   :  { %791 = vrot.lane.b32.xlu0 %v6130_v1, %s6028_s29  ;;  %894 = vrot.lane.b32.xlu1 %v6146_v3, %s6029_s30 }
  0x5b   :  { %898 = vrot.lane.b32.xlu2 %v6141_v2, %s6029_s30  ;;  %v6288_v2 = vperm.slane %v5574_v60, 1 }
  0x5d   :  { %8244 = vst [vmem:[#allocation18_spill] sm:$0xff] %v6288_v2 }
  0x62   :  { %900 = vrot.lane.b32.xlu0 %v6125_v0, %s6029_s30  ;;  %896 = vrot.lane.b32.xlu1 %v6130_v1, %s6029_s30  ;;  %v6286_v1 = vperm.slane %v5574_v60, 2 }
  0x64   :  { %8243 = vst [vmem:[#allocation17_spill] sm:$0xff] %v6286_v1 }
  0x6d   :  { %v267_v4 = vpop.permute.xlu2 %266 }
  0x75   :  { %v269_v6 = vpop.permute.xlu2 %268 }
  0x76   :  { %v274_v13 = vsel %vm272_vm0, %v267_v4, %v269_v6 }
  0x77   :  { %v288_v23 = vmul.f32 %v6215_v12, %v274_v13 }
  0x79   :  { %v292_v40 = vpack.c.bf16 %v288_v23, %v288_v23 }
  0x7b   :  { %v306_v54 = vsel %vm130_vm2, %v292_v40, 0  ;;  %v6332_v40 = vperm.slane %v5580_v35, 0 }
  0x7d   :  { %v6232_v20 = vpop.permute.xlu2 %371  ;;  %8249 = vst [vmem:[#allocation23_spill] sm:$0xff] %v6332_v40 }
  0x84   :  { %v100_v7 = vpop.permute.xlu1 %99  ;;  %v96_v8 = vpop.permute.xlu0 %95 }
  0x85   :  { %v370_v61 = vpop.permute.xlu2 %369 }
  0x86   :  { %v380_v3 = vsel %vm377_vm4, %v370_v61, %v6232_v20 }
  0x87   :  { %v392_v18 = vmul.f32 %v6288_v2, %v380_v3 }
  0x8c   :  { %v98_v21 = vpop.permute.xlu0 %97  ;;  %v94_v22 = vpop.permute.xlu1 %93 }
  0x8d   :  { %v107_v24 = vsel %vm103_vm1, %v100_v7, %v94_v22  ;;  %v106_v25 = vsel %vm103_vm1, %v94_v22, %v96_v8  ;;  %v105_v26 = vsel %vm103_vm1, %v96_v8, %v98_v21  ;;  %v104_v27 = vsel %vm103_vm1, %v98_v21, %v100_v7 }
  0x8e   :  { %v117_v28 = vmul.f32 %v6220_v14, %v107_v24  ;;  %v118_v29 = vmul.f32 %v6222_v15, %v106_v25  ;;  %v119_v30 = vmul.f32 %v6224_v16, %v105_v26  ;;  %v120_v31 = vmul.f32 %v6226_v17, %v104_v27 }
  0x8f   :  { %v6298_v8 = vperm.slane %v5574_v60, 3  ;;  %v396_v26 = vpack.c.bf16 %v392_v18, %v392_v18 }
  0x90   :  { %v121_v36 = vpack.c.bf16 %v117_v28, %v117_v28  ;;  %v122_v37 = vpack.c.bf16 %v118_v29, %v118_v29  ;;  %v123_v38 = vpack.c.bf16 %v119_v30, %v119_v30  ;;  %v124_v39 = vpack.c.bf16 %v120_v31, %v120_v31 }
  0x91   :  { %8246 = vst [vmem:[#allocation20_spill] sm:$0xff] %v6298_v8  ;;  %v408_v31 = vsel %vm130_vm2, %v396_v26, 0 }
  0x92   :  { %v132_v44 = vsel %vm130_vm2, %v121_v36, 0  ;;  %v135_v45 = vsel %vm130_vm2, %v122_v37, 0  ;;  %v138_v46 = vsel %vm130_vm2, %v123_v38, 0  ;;  %v141_v47 = vsel %vm130_vm2, %v124_v39, 0  ;;  %v481_v36 = vpop.permute.xlu2 %480 }
  0x93   :  { %150 = vmatpush.bf16.msra.mxu0 %v132_v44  ;;  %163 = vmatpush.bf16.msra.mxu1 %v135_v45  ;;  %v6326_v37 = vperm.slane %v5580_v35, 2  ;;  %v6328_v38 = vperm.slane %v5580_v35, 1  ;;  %v6334_v44 = vperm.slane %v5580_v35, 3 }
  0x94   :  { %176 = vmatpush.bf16.msra.mxu2 %v138_v46  ;;  %189 = vmatpush.bf16.msra.mxu3 %v141_v47  ;;  %v265_v51 = vpop.permute.xlu1 %264  ;;  %v271_v52 = vpop.permute.xlu0 %270 }
  0x95   :  { %v275_v53 = vsel %vm272_vm0, %v265_v51, %v267_v4  ;;  %v273_v55 = vsel %vm272_vm0, %v269_v6, %v271_v52  ;;  %v276_v56 = vsel %vm272_vm0, %v271_v52, %v265_v51  ;;  %v6293_v4 = vperm.slane %v5574_v60, 0  ;;  %8247 = vst [vmem:[#allocation21_spill] sm:$0xff] %v6326_v37 }
  0x96   :  { %5560 = vmatmul.msk.bf16.vlgmr.msra.gmra.mxu0 %vm126_vm3, %v125_v48  ;;  %5561 = vmatmul.msk.bf16.vlgmr.msra.gmra.mxu1 %vm126_vm3, %v125_v48  ;;  %v287_v57 = vmul.f32 %v6253_v41, %v275_v53  ;;  %v286_v58 = vmul.f32 %v6255_v42, %v276_v56  ;;  %v289_v59 = vmul.f32 %v6257_v43, %v273_v55 }
  0x97   :  { %217 = vmatpush.bf16.msrb.mxu0 %v199_v32  ;;  %230 = vmatpush.bf16.msrb.mxu1 %v202_v33  ;;  %8245 = vst [vmem:[#allocation19_spill] sm:$0xff] %v6293_v4 }
  0x98   :  { %5562 = vmatmul.msk.bf16.vlgmr.msra.gmra.mxu2 %vm126_vm3, %v125_v48  ;;  %5563 = vmatmul.msk.bf16.vlgmr.msra.gmra.mxu3 %vm126_vm3, %v125_v48  ;;  %v291_v62 = vpack.c.bf16 %v287_v57, %v287_v57  ;;  %v290_v63 = vpack.c.bf16 %v286_v58, %v286_v58  ;;  %v293_v0 = vpack.c.bf16 %v289_v59, %v289_v59  ;;  %v5569_v58 = vld [vmem:[%s8150_s2 + $0x4] sm:$0xf] }
  0x99   :  { %243 = vmatpush.bf16.msrb.mxu2 %v205_v49  ;;  %256 = vmatpush.bf16.msrb.mxu3 %v208_v50  ;;  %8248 = vst [vmem:[#allocation22_spill] sm:$0xff] %v6328_v38 }
  0x9a   :  { %v303_v5 = vsel %vm130_vm2, %v291_v62, 0  ;;  %v300_v6 = vsel %vm130_vm2, %v290_v63, 0  ;;  %v309_v7 = vsel %vm130_vm2, %v293_v0, 0  ;;  %8250 = vst [vmem:[#allocation24_spill] sm:$0xff] %v6334_v44  ;;  %v584_v59 = vpop.permute.xlu2 %583 }
  0x9b   :  { %331 = vmatpush.bf16.msra.mxu1 %v303_v5  ;;  %318 = vmatpush.bf16.msra.mxu0 %v300_v6  ;;  %v5586_v0 = vld [vmem:[%s8149_s1 + $0x5] ss:$8 sm:$0xf] }
  0x9c   :  { %v374_v10 = vpop.permute.xlu0 %373  ;;  %v376_v11 = vpop.permute.xlu1 %375  ;;  %v6361_v6 = vperm.slane %v5586_v0, 3 }
  0x9d   :  { %344 = vmatpush.bf16.msra.mxu2 %v306_v54  ;;  %357 = vmatpush.bf16.msra.mxu3 %v309_v7  ;;  %v379_v13 = vsel %vm377_vm4, %v6232_v20, %v374_v10  ;;  %v378_v19 = vsel %vm377_vm4, %v374_v10, %v376_v11  ;;  %v381_v21 = vsel %vm377_vm4, %v376_v11, %v370_v61  ;;  %v5559_v20 = vld [vmem:[%s8150_s2 + $0x10] sm:$0xf]  ;;  %v6363_v7 = vperm.slane %v5586_v0, 0 }
  0x9e   :  { %v393_v22 = vmul.f32 %v6286_v1, %v379_v13  ;;  %v391_v23 = vmul.f32 %v6293_v4, %v381_v21  ;;  %v394_v24 = vmul.f32 %v6298_v8, %v378_v19  ;;  %8251 = vst [vmem:[#allocation25_spill] sm:$0xff] %v6361_v6  ;;  %v6367_v11 = vperm.slane %v5586_v0, 2 }
  0x9f   :  { %8252 = vst [vmem:[#allocation26_spill] sm:$0xff] %v6363_v7  ;;  %v6369_v13 = vperm.slane %v5586_v0, 1 }
  0xa0   :  { %v397_v25 = vpack.c.bf16 %v393_v22, %v393_v22  ;;  %v395_v27 = vpack.c.bf16 %v391_v23, %v391_v23  ;;  %v398_v28 = vpack.c.bf16 %v394_v24, %v394_v24  ;;  %8253 = vst [vmem:[#allocation27_spill] sm:$0xff] %v6367_v11 }
  0xa1   :  { %8254 = vst [vmem:[#allocation28_spill] sm:$0xff] %v6369_v13 }
  0xa2   :  { %v411_v32 = vsel %vm130_vm2, %v397_v25, 0  ;;  %v405_v33 = vsel %vm130_vm2, %v395_v27, 0  ;;  %v414_v34 = vsel %vm130_vm2, %v398_v28, 0  ;;  %v685_v24 = vpop.permute.xlu2 %684 }
  0xa4   :  { %v477_v29 = vpop.permute.xlu0 %476  ;;  %v479_v30 = vpop.permute.xlu1 %478 }
  0xa5   :  { %v484_v39 = vsel %vm482_vm5, %v477_v29, %v479_v30  ;;  %v483_v45 = vsel %vm482_vm5, %v479_v30, %v481_v36  ;;  %v5575_v30 = vld [vmem:[%s8150_s2 + $0x8] sm:$0xf] }
  0xa6   :  { %5564 = vmatmul.msk.bf16.vlgmr.msrb.gmra.mxu0 %vm126_vm3, %v5559_v20  ;;  %5565 = vmatmul.msk.bf16.vlgmr.msrb.gmra.mxu1 %vm126_vm3, %v5559_v20  ;;  %v498_v48 = vmul.f32 %v6326_v37, %v484_v39  ;;  %v499_v53 = vmul.f32 %v6334_v44, %v483_v45 }
  0xa7   :  { %436 = vmatpush.bf16.msrb.mxu1 %v408_v31  ;;  %423 = vmatpush.bf16.msrb.mxu0 %v405_v33 }
  0xa8   :  { %5566 = vmatmul.msk.bf16.vlgmr.msrb.gmra.mxu2 %vm126_vm3, %v5559_v20  ;;  %5567 = vmatmul.msk.bf16.vlgmr.msrb.gmra.mxu3 %vm126_vm3, %v5559_v20  ;;  %v502_v55 = vpack.c.bf16 %v498_v48, %v498_v48  ;;  %v503_v57 = vpack.c.bf16 %v499_v53, %v499_v53 }
  0xa9   :  { %449 = vmatpush.bf16.msrb.mxu2 %v411_v32  ;;  %462 = vmatpush.bf16.msrb.mxu3 %v414_v34 }
  0xaa   :  { %v516_v61 = vsel %vm130_vm2, %v502_v55, 0  ;;  %v519_v63 = vsel %vm130_vm2, %v503_v57, 0  ;;  %v687_v39 = vpop.permute.xlu2 %686 }
  0xac   :  { %v475_v46 = vpop.permute.xlu0 %474  ;;  %v580_v50 = vpop.permute.xlu1 %579 }
  0xad   :  { %v485_v47 = vsel %vm482_vm5, %v475_v46, %v477_v29  ;;  %v486_v49 = vsel %vm482_vm5, %v481_v36, %v475_v46  ;;  %v5592_v36 = vld [vmem:[%s8149_s1 + $0x6] ss:$8 sm:$0xf] }
  0xae   :  { %v497_v51 = vmul.f32 %v6328_v38, %v485_v47  ;;  %v496_v52 = vmul.f32 %v6332_v40, %v486_v49  ;;  %v6396_v46 = vperm.slane %v5592_v36, 0  ;;  %v6398_v47 = vperm.slane %v5592_v36, 3 }
  0xaf   :  { %v6400_v48 = vperm.slane %v5592_v36, 1  ;;  %v695_v49 = vsel %vm692_vm7, %v685_v24, %v687_v39 }
  0xb0   :  { %v501_v54 = vpack.c.bf16 %v497_v51, %v497_v51  ;;  %v500_v56 = vpack.c.bf16 %v496_v52, %v496_v52  ;;  %8255 = vst [vmem:[#allocation29_spill] sm:$0xff] %v6396_v46 }
  0xb1   :  { %8256 = vst [vmem:[#allocation30_spill] sm:$0xff] %v6398_v47 }
  0xb2   :  { %v513_v60 = vsel %vm130_vm2, %v501_v54, 0  ;;  %v510_v62 = vsel %vm130_vm2, %v500_v56, 0  ;;  %8257 = vst [vmem:[#allocation31_spill] sm:$0xff] %v6400_v48  ;;  %v706_v54 = vmul.f32 %v6396_v46, %v695_v49  ;;  %v5587_v49 = vld [vmem:[%s8150_s2 + $0x14] sm:$0xf] }
  0xb4   :  { %v586_v3 = vpop.permute.xlu0 %585  ;;  %v582_v5 = vpop.permute.xlu1 %581 }
  0xb5   :  { %v591_v10 = vsel %vm587_vm6, %v586_v3, %v580_v50  ;;  %v590_v18 = vsel %vm587_vm6, %v580_v50, %v582_v5  ;;  %v588_v19 = vsel %vm587_vm6, %v584_v59, %v586_v3  ;;  %v589_v21 = vsel %vm587_vm6, %v582_v5, %v584_v59 }
  0xb6   :  { %5570 = vmatmul.msk.bf16.vlgmr.msra.gmra.mxu0 %vm126_vm3, %v5569_v58  ;;  %5571 = vmatmul.msk.bf16.vlgmr.msra.gmra.mxu1 %vm126_vm3, %v5569_v58  ;;  %v604_v22 = vmul.f32 %v6361_v6, %v591_v10  ;;  %v601_v23 = vmul.f32 %v6363_v7, %v590_v18  ;;  %v603_v25 = vmul.f32 %v6367_v11, %v588_v19  ;;  %v6404_v50 = vperm.slane %v5592_v36, 2  ;;  %v5598_v19 = vld [vmem:[%s8149_s1 + $0x7] ss:$8 sm:$0xf] }
  0xb7   :  { %541 = vmatpush.bf16.msra.mxu1 %v513_v60  ;;  %528 = vmatpush.bf16.msra.mxu0 %v510_v62  ;;  %v602_v26 = vmul.f32 %v6369_v13, %v589_v21  ;;  %v710_v59 = vpack.c.bf16 %v706_v54, %v706_v54 }
  0xb8   :  { %5572 = vmatmul.msk.bf16.vlgmr.msra.gmra.mxu2 %vm126_vm3, %v5569_v58  ;;  %5573 = vmatmul.msk.bf16.vlgmr.msra.gmra.mxu3 %vm126_vm3, %v5569_v58  ;;  %v608_v27 = vpack.c.bf16 %v604_v22, %v604_v22  ;;  %v605_v28 = vpack.c.bf16 %v601_v23, %v601_v23  ;;  %v607_v20 = vpack.c.bf16 %v603_v25, %v603_v25  ;;  %v796_v22 = vpop.permute.xlu2 %795  ;;  %v6431_v23 = vperm.slane %v5598_v19, 0 }
  0xb9   :  { %554 = vmatpush.bf16.msra.mxu2 %v516_v61  ;;  %567 = vmatpush.bf16.msra.mxu3 %v519_v63  ;;  %v606_v29 = vpack.c.bf16 %v602_v26, %v602_v26  ;;  %8258 = vst [vmem:[#allocation32_spill] sm:$0xff] %v6404_v50  ;;  %v5581_v63 = vld [vmem:[%s8150_s2 + $0xc] sm:$0xf]  ;;  %v720_v3 = vsel %vm130_vm2, %v710_v59, 0 }
  0xba   :  { %v615_v32 = vsel %vm130_vm2, %v605_v28, 0  ;;  %v624_v33 = vsel %vm130_vm2, %v608_v27, 0  ;;  %v621_v35 = vsel %vm130_vm2, %v607_v20, 0  ;;  %8259 = vst [vmem:[#allocation33_spill] sm:$0xff] %v6431_v23  ;;  %v6439_v27 = vperm.slane %v5598_v19, 1 }
  0xbb   :  { %v618_v34 = vsel %vm130_vm2, %v606_v29, 0  ;;  %v6441_v28 = vperm.slane %v5598_v19, 2 }
  0xbc   :  { %v689_v31 = vpop.permute.xlu0 %688  ;;  %v691_v45 = vpop.permute.xlu1 %690  ;;  %8261 = vst [vmem:[#allocation35_spill] sm:$0xff] %v6439_v27 }
  0xbd   :  { %v696_v51 = vsel %vm692_vm7, %v691_v45, %v685_v24  ;;  %v694_v52 = vsel %vm692_vm7, %v687_v39, %v689_v31  ;;  %v693_v53 = vsel %vm692_vm7, %v689_v31, %v691_v45  ;;  %v6433_v24 = vperm.slane %v5598_v19, 3  ;;  %8262 = vst [vmem:[#allocation36_spill] sm:$0xff] %v6441_v28 }
  0xbe   :  { %v709_v55 = vmul.f32 %v6398_v47, %v696_v51  ;;  %v707_v57 = vmul.f32 %v6400_v48, %v694_v52  ;;  %v708_v58 = vmul.f32 %v6404_v50, %v693_v53 }
  0xbf   :  { %8260 = vst [vmem:[#allocation34_spill] sm:$0xff] %v6433_v24 }
  0xc0   :  { %v713_v60 = vpack.c.bf16 %v709_v55, %v709_v55  ;;  %v711_v61 = vpack.c.bf16 %v707_v57, %v707_v57  ;;  %v712_v62 = vpack.c.bf16 %v708_v58, %v708_v58  ;;  %v5604_v55 = vld [vmem:[%s8149_s1 + $0x20] ss:$8 sm:$0xf]  ;;  %v899_v58 = vpop.permute.xlu2 %898 }
  0xc1   :  { %v6466_v59 = vperm.slane %v5604_v55, 3 }
  0xc2   :  { %v729_v5 = vsel %vm130_vm2, %v713_v60, 0  ;;  %v723_v10 = vsel %vm130_vm2, %v711_v61, 0  ;;  %v726_v18 = vsel %vm130_vm2, %v712_v62, 0  ;;  %v6468_v60 = vperm.slane %v5604_v55, 0 }
  0xc3   :  { %8263 = vst [vmem:[#allocation37_spill] sm:$0xff] %v6466_v59 }
  0xc4   :  { %v790_v56 = vpop.permute.xlu0 %789  ;;  %v794_v0 = vpop.permute.xlu1 %793  ;;  %8264 = vst [vmem:[#allocation38_spill] sm:$0xff] %v6468_v60 }
  0xc5   :  { %v801_v26 = vsel %vm797_vm8, %v796_v22, %v790_v56  ;;  %v798_v20 = vsel %vm797_vm8, %v794_v0, %v796_v22 }
  0xc6   :  { %5576 = vmatmul.msk.bf16.vlgmr.msrb.gmra.mxu0 %vm126_vm3, %v5575_v30  ;;  %5577 = vmatmul.msk.bf16.vlgmr.msrb.gmra.mxu1 %vm126_vm3, %v5575_v30  ;;  %v814_v31 = vmul.f32 %v6433_v24, %v801_v26 }
  0xc7   :  { %633 = vmatpush.bf16.msrb.mxu0 %v615_v32  ;;  %646 = vmatpush.bf16.msrb.mxu1 %v618_v34  ;;  %v813_v34 = vmul.f32 %v6441_v28, %v798_v20 }
  0xc8   :  { %5578 = vmatmul.msk.bf16.vlgmr.msrb.gmra.mxu2 %vm126_vm3, %v5575_v30  ;;  %5579 = vmatmul.msk.bf16.vlgmr.msrb.gmra.mxu3 %vm126_vm3, %v5575_v30  ;;  %v818_v36 = vpack.c.bf16 %v814_v31, %v814_v31 }
  0xc9   :  { %672 = vmatpush.bf16.msrb.mxu3 %v624_v33  ;;  %659 = vmatpush.bf16.msrb.mxu2 %v621_v35  ;;  %v817_v45 = vpack.c.bf16 %v813_v34, %v813_v34  ;;  %v5599_v34 = vld [vmem:[%s8150_s2 + $0x1c] sm:$0xf] }
  0xca   :  { %v834_v52 = vsel %vm130_vm2, %v818_v36, 0 }
  0xcb   :  { %v831_v54 = vsel %vm130_vm2, %v817_v45, 0 }
  0xcc   :  { %v792_v21 = vpop.permute.xlu0 %791  ;;  %v895_v32 = vpop.permute.xlu1 %894 }
  0xcd   :  { %v800_v25 = vsel %vm797_vm8, %v790_v56, %v792_v21  ;;  %v799_v29 = vsel %vm797_vm8, %v792_v21, %v794_v0  ;;  %v6476_v0 = vperm.slane %v5604_v55, 2 }
  0xce   :  { %v811_v30 = vmul.f32 %v6431_v23, %v800_v25  ;;  %v812_v33 = vmul.f32 %v6439_v27, %v799_v29  ;;  %v5593_v29 = vld [vmem:[%s8150_s2 + $0x18] sm:$0xf] }
  0xcf   :  { %8266 = vst [vmem:[#allocation40_spill] sm:$0xff] %v6476_v0 }
  0xd0   :  { %v815_v35 = vpack.c.bf16 %v811_v30, %v811_v30  ;;  %v816_v39 = vpack.c.bf16 %v812_v33, %v812_v33 }
  0xd2   :  { %v825_v51 = vsel %vm130_vm2, %v815_v35, 0  ;;  %v828_v53 = vsel %vm130_vm2, %v816_v39, 0  ;;  %v5605_v39 = vld [vmem:[%s8150_s2 + $0x20] sm:$0xf] }
  0xd4   :  { %v901_v56 = vpop.permute.xlu0 %900  ;;  %v897_v57 = vpop.permute.xlu1 %896 }
  0xd5   :  { %v906_v61 = vsel %vm902_vm9, %v901_v56, %v895_v32  ;;  %v905_v62 = vsel %vm902_vm9, %v895_v32, %v897_v57 }
  0xd6   :  { %5582 = vmatmul.msk.bf16.vlgmr.msra.gmra.mxu0 %vm126_vm3, %v5581_v63  ;;  %5583 = vmatmul.msk.bf16.vlgmr.msra.gmra.mxu1 %vm126_vm3, %v5581_v63 }
  0xd7   :  { %738 = vmatpush.bf16.msra.mxu0 %v720_v3  ;;  %751 = vmatpush.bf16.msra.mxu1 %v723_v10  ;;  %v903_v3 = vsel %vm902_vm9, %v899_v58, %v901_v56  ;;  %v919_v10 = vmul.f32 %v6466_v59, %v906_v61 }
  0xd8   :  { %5584 = vmatmul.msk.bf16.vlgmr.msra.gmra.mxu2 %vm126_vm3, %v5581_v63  ;;  %5585 = vmatmul.msk.bf16.vlgmr.msra.gmra.mxu3 %vm126_vm3, %v5581_v63  ;;  %v6474_v63 = vperm.slane %v5604_v55, 1  ;;  %v918_v21 = vmul.f32 %v6476_v0, %v903_v3 }
  0xd9   :  { %777 = vmatpush.bf16.msra.mxu3 %v729_v5  ;;  %764 = vmatpush.bf16.msra.mxu2 %v726_v18  ;;  %v904_v5 = vsel %vm902_vm9, %v897_v57, %v899_v58  ;;  %v916_v18 = vmul.f32 %v6468_v60, %v905_v62  ;;  %v923_v22 = vpack.c.bf16 %v919_v10, %v919_v10 }
  0xda   :  { %8265 = vst [vmem:[#allocation39_spill] sm:$0xff] %v6474_v63  ;;  %v917_v19 = vmul.f32 %v6474_v63, %v904_v5  ;;  %v922_v20 = vpack.c.bf16 %v918_v21, %v918_v21 }
  0xdb   :  { %v920_v25 = vpack.c.bf16 %v916_v18, %v916_v18  ;;  %v939_v31 = vsel %vm130_vm2, %v923_v22, 0 }
  0xdc   :  { %v921_v26 = vpack.c.bf16 %v917_v19, %v917_v19  ;;  %v936_v33 = vsel %vm130_vm2, %v922_v20, 0 }
  0xdd   :  { %v930_v30 = vsel %vm130_vm2, %v920_v25, 0 }
  0xde   :  { %v933_v32 = vsel %vm130_vm2, %v921_v26, 0 }
  0xe6   :  { %5588 = vmatmul.msk.bf16.vlgmr.msrb.gmra.mxu0 %vm126_vm3, %v5587_v49  ;;  %5589 = vmatmul.msk.bf16.vlgmr.msrb.gmra.mxu1 %vm126_vm3, %v5587_v49 }
  0xe7   :  { %843 = vmatpush.bf16.msrb.mxu0 %v825_v51  ;;  %856 = vmatpush.bf16.msrb.mxu1 %v828_v53  ;;  %v6030_v53 = vmov 0  }
  0xe8   :  { %5590 = vmatmul.msk.bf16.vlgmr.msrb.gmra.mxu2 %vm126_vm3, %v5587_v49  ;;  %5591 = vmatmul.msk.bf16.vlgmr.msrb.gmra.mxu3 %vm126_vm3, %v5587_v49 }
  0xe9   :  { %882 = vmatpush.bf16.msrb.mxu3 %v834_v52  ;;  %869 = vmatpush.bf16.msrb.mxu2 %v831_v54  ;;  %v997_v54 = vld [vmem:[#allocation2] sm:$0xff] }
  0xea   :  { %5953 = vset.pattern.permute.xlu2 %v6030_v53  ;;  %5954 = vset.pattern.permute.xlu0 %v6030_v53 }
  0xeb   :  { %1000 = vperm.xlu2 %5953, %v997_v54   ;;  %5955 = vset.pattern.permute.xlu1 %v6030_v53 }
  0xf6   :  { %5594 = vmatmul.msk.bf16.vlgmr.msra.gmra.mxu0 %vm126_vm3, %v5593_v29  ;;  %5595 = vmatmul.msk.bf16.vlgmr.msra.gmra.mxu1 %vm126_vm3, %v5593_v29 }
  0xf7   :  { %948 = vmatpush.bf16.msra.mxu0 %v930_v30  ;;  %961 = vmatpush.bf16.msra.mxu1 %v933_v32 }
  0xf8   :  { %5596 = vmatmul.msk.bf16.vlgmr.msra.gmra.mxu2 %vm126_vm3, %v5593_v29  ;;  %5597 = vmatmul.msk.bf16.vlgmr.msra.gmra.mxu3 %vm126_vm3, %v5593_v29 }
  0xf9   :  { %987 = vmatpush.bf16.msra.mxu3 %v939_v31  ;;  %974 = vmatpush.bf16.msra.mxu2 %v936_v33 }
 0x106   :  { %5600 = vmatmul.msk.bf16.vlgmr.msrb.gmra.mxu0 %vm126_vm3, %v5599_v34  ;;  %5601 = vmatmul.msk.bf16.vlgmr.msrb.gmra.mxu1 %vm126_vm3, %v5599_v34 }
 0x108   :  { %5602 = vmatmul.msk.bf16.vlgmr.msrb.gmra.mxu2 %vm126_vm3, %v5599_v34  ;;  %5603 = vmatmul.msk.bf16.vlgmr.msrb.gmra.mxu3 %vm126_vm3, %v5599_v34 }
 0x113   :  { %v152_v35 = vpop.f32.mrf.mxu0  ;;  %v165_v36 = vpop.f32.mrf.mxu1 }
 0x116   :  { %5606 = vmatmul.msk.bf16.vlgmr.msra.gmra.mxu0 %vm126_vm3, %v5605_v39  ;;  %5607 = vmatmul.msk.bf16.vlgmr.msra.gmra.mxu1 %vm126_vm3, %v5605_v39 }
 0x118   :  { %5608 = vmatmul.msk.bf16.vlgmr.msra.gmra.mxu2 %vm126_vm3, %v5605_v39  ;;  %5609 = vmatmul.msk.bf16.vlgmr.msra.gmra.mxu3 %vm126_vm3, %v5605_v39 }
 0x11b   :  { %v178_v45 = vpop.f32.mrf.mxu2  ;;  %v191_v49 = vpop.f32.mrf.mxu3 }
 0x11c   :  { %v154_v51 = vpop.f32.mrf.mxu0  ;;  %v167_v52 = vpop.f32.mrf.mxu1 }
 0x123   :  { %v180_v55 = vpop.f32.mrf.mxu2  ;;  %v193_v56 = vpop.f32.mrf.mxu3 }
 0x124   :  { %v219_v57 = vpop.f32.mrf.mxu0  ;;  %v232_v58 = vpop.f32.mrf.mxu1 }
 0x125   :  { %v220_v61 = vadd.f32 %v219_v57, %v152_v35  ;;  %v233_v62 = vadd.f32 %v232_v58, %v165_v36 }
 0x12b   :  { %v245_v3 = vpop.f32.mrf.mxu2  ;;  %v258_v5 = vpop.f32.mrf.mxu3 }
 0x12c   :  { %v246_v10 = vadd.f32 %v245_v3, %v178_v45  ;;  %v259_v18 = vadd.f32 %v258_v5, %v191_v49  ;;  %v221_v19 = vpop.f32.mrf.mxu0  ;;  %v234_v21 = vpop.f32.mrf.mxu1 }
 0x133   :  { %v247_v22 = vpop.f32.mrf.mxu2  ;;  %v260_v25 = vpop.f32.mrf.mxu3 }
 0x134   :  { %v320_v26 = vpop.f32.mrf.mxu0  ;;  %v333_v20 = vpop.f32.mrf.mxu1 }
 0x135   :  { %v363_v29 = vadd.f32 %v320_v26, %v220_v61  ;;  %v364_v30 = vadd.f32 %v333_v20, %v233_v62 }
 0x13b   :  { %v346_v31 = vpop.f32.mrf.mxu2  ;;  %v359_v32 = vpop.f32.mrf.mxu3 }
 0x13c   :  { %v365_v33 = vadd.f32 %v346_v31, %v246_v10  ;;  %v366_v34 = vadd.f32 %v359_v32, %v259_v18  ;;  %v322_v39 = vpop.f32.mrf.mxu0  ;;  %v335_v51 = vpop.f32.mrf.mxu1 }
 0x143   :  { %v348_v35 = vpop.f32.mrf.mxu2  ;;  %v361_v36 = vpop.f32.mrf.mxu3 }
 0x144   :  { %v425_v52 = vpop.f32.mrf.mxu0  ;;  %v438_v53 = vpop.f32.mrf.mxu1 }
 0x145   :  { %v468_v45 = vadd.f32 %v425_v52, %v363_v29  ;;  %v469_v49 = vadd.f32 %v438_v53, %v364_v30 }
 0x14b   :  { %v451_v54 = vpop.f32.mrf.mxu2  ;;  %v464_v55 = vpop.f32.mrf.mxu3 }
 0x14c   :  { %v470_v56 = vadd.f32 %v451_v54, %v365_v33  ;;  %v471_v57 = vadd.f32 %v464_v55, %v366_v34  ;;  %v427_v58 = vpop.f32.mrf.mxu0  ;;  %v440_v3 = vpop.f32.mrf.mxu1 }
 0x153   :  { %v453_v61 = vpop.f32.mrf.mxu2  ;;  %v466_v62 = vpop.f32.mrf.mxu3 }
 0x154   :  { %v530_v5 = vpop.f32.mrf.mxu0  ;;  %v543_v19 = vpop.f32.mrf.mxu1 }
 0x155   :  { %v573_v10 = vadd.f32 %v530_v5, %v468_v45 }
 0x15b   :  { %v556_v18 = vpop.f32.mrf.mxu2  ;;  %v569_v21 = vpop.f32.mrf.mxu3 }
 0x15c   :  { %v532_v22 = vpop.f32.mrf.mxu0  ;;  %v545_v25 = vpop.f32.mrf.mxu1  ;;  %v575_v59 = vadd.f32 %v556_v18, %v470_v56  ;;  %v576_v0 = vadd.f32 %v569_v21, %v471_v57 }
 0x163   :  { %v558_v26 = vpop.f32.mrf.mxu2  ;;  %v571_v20 = vpop.f32.mrf.mxu3 }
 0x164   :  { %v635_v31 = vpop.f32.mrf.mxu0  ;;  %v648_v29 = vpop.f32.mrf.mxu1  ;;  %v574_v26 = vadd.f32 %v543_v19, %v469_v49 }
 0x166   :  { %v679_v20 = vadd.f32 %v648_v29, %v574_v26 }
 0x16b   :  { %v661_v30 = vpop.f32.mrf.mxu2  ;;  %v674_v32 = vpop.f32.mrf.mxu3 }
 0x16c   :  { %v637_v39 = vpop.f32.mrf.mxu0  ;;  %v650_v33 = vpop.f32.mrf.mxu1  ;;  %v680_v27 = vadd.f32 %v661_v30, %v575_v59  ;;  %v681_v23 = vadd.f32 %v674_v32, %v576_v0  ;;  %v1823_v32 = vld [vmem:[#allocation4] sm:$0xff] }
 0x16d   :  { %v1001_v33 = vpop.permute.xlu2 %1000 }
 0x173   :  { %v663_v34 = vpop.f32.mrf.mxu2  ;;  %v676_v51 = vpop.f32.mrf.mxu3 }
 0x174   :  { %v740_v35 = vpop.f32.mrf.mxu0  ;;  %v753_v36 = vpop.f32.mrf.mxu1  ;;  %v678_v34 = vadd.f32 %v635_v31, %v573_v10 }
 0x175   :  { %v784_v39 = vadd.f32 %v753_v36, %v679_v20 }
 0x17b   :  { %v766_v52 = vpop.f32.mrf.mxu2  ;;  %v779_v53 = vpop.f32.mrf.mxu3 }
 0x17c   :  { %v742_v54 = vpop.f32.mrf.mxu0  ;;  %v755_v45 = vpop.f32.mrf.mxu1 }
 0x183   :  { %v768_v55 = vpop.f32.mrf.mxu2  ;;  %v781_v58 = vpop.f32.mrf.mxu3 }
 0x184   :  { %v845_v3 = vpop.f32.mrf.mxu0  ;;  %v858_v61 = vpop.f32.mrf.mxu1  ;;  %v783_v55 = vadd.f32 %v740_v35, %v678_v34 }
 0x185   :  { %v889_v51 = vadd.f32 %v858_v61, %v784_v39 }
 0x186   :  { %v888_v28 = vadd.f32 %v845_v3, %v783_v55 }
 0x18b   :  { %v871_v62 = vpop.f32.mrf.mxu2  ;;  %v884_v5 = vpop.f32.mrf.mxu3 }
 0x18c   :  { %v847_v22 = vpop.f32.mrf.mxu0  ;;  %v860_v25 = vpop.f32.mrf.mxu1 }
 0x18d   :  { %v785_v22 = vadd.f32 %v766_v52, %v680_v27  ;;  %v786_v25 = vadd.f32 %v779_v53, %v681_v23 }
 0x18f   :  { %v890_v29 = vadd.f32 %v871_v62, %v785_v22  ;;  %v891_v10 = vadd.f32 %v884_v5, %v786_v25 }
 0x193   :  { %v873_v63 = vpop.f32.mrf.mxu2  ;;  %v886_v60 = vpop.f32.mrf.mxu3 }
 0x194   :  { %v950_v54 = vpop.f32.mrf.mxu0  ;;  %v963_v45 = vpop.f32.mrf.mxu1 }
 0x195   :  { %v994_v58 = vadd.f32 %v963_v45, %v889_v51  ;;  %v993_v49 = vadd.f32 %v950_v54, %v888_v28 }
 0x197   :  { %v1004_v24 = vadd.f32 %v1001_v33, %v994_v58  ;;  %v1003_v59 = vadd.f32 %v1001_v33, %v993_v49 }
 0x199   :  { %v6511_v19 = vmax.f32 %v1004_v24, 0.0  ;;  %v6519_v24 = vmax.f32 %v1003_v59, 0.0 }
 0x19b   :  { %v976_v31 = vpop.f32.mrf.mxu2  ;;  %v989_v63 = vpop.f32.mrf.mxu3  ;;  %1019 = vrot.lane.b32.xlu0 %v6511_v19, %s6022_s5  ;;  %v1014_v25 = vpack.c.bf16 %v6511_v19, %v6511_v19 }
 0x19c   :  { %v995_v60 = vadd.f32 %v976_v31, %v890_v29  ;;  %v996_v56 = vadd.f32 %v989_v63, %v891_v10  ;;  %v952_v57 = vpop.f32.mrf.mxu0  ;;  %v965_v18 = vpop.f32.mrf.mxu1  ;;  %v1013_v31 = vpack.c.bf16 %v6519_v24, %v6519_v24 }
 0x19e   :  { %v1005_v0 = vadd.f32 %v1001_v33, %v995_v60  ;;  %v1006_v21 = vadd.f32 %v1001_v33, %v996_v56 }
 0x1a0   :  { %v6515_v30 = vmax.f32 %v1005_v0, 0.0  ;;  %v6517_v23 = vmax.f32 %v1006_v21, 0.0 }
 0x1a2   :  { %1021 = vrot.lane.b32.xlu1 %v6515_v30, %s6022_s5  ;;  %1023 = vrot.lane.b32.xlu2 %v6517_v23, %s6022_s5  ;;  %v1015_v34 = vpack.c.bf16 %v6515_v30, %v6515_v30  ;;  %v1016_v51 = vpack.c.bf16 %v6517_v23, %v6517_v23 }
 0x1a3   :  { %1017 = vrot.lane.b32.xlu0 %v6519_v24, %s6022_s5  ;;  %v978_v27 = vpop.f32.mrf.mxu2  ;;  %v991_v28 = vpop.f32.mrf.mxu3 }
 0x1a4   :  { %v1115_v63 = vsel %vm130_vm2, %v1015_v34, 0  ;;  %v1118_v60 = vsel %vm130_vm2, %v1016_v51, 0 }
 0x1aa   :  { %1176 = vrot.lane.b32.xlu2 %v6515_v30, %s6023_s20  ;;  %1174 = vrot.lane.b32.xlu1 %v6511_v19, %s6023_s20 }
 0x1ab   :  { %1178 = vrot.lane.b32.xlu0 %v6517_v23, %s6023_s20 }
 0x1b2   :  { %1267 = vrot.lane.b32.xlu2 %v6511_v19, %s6024_s25  ;;  %1172 = vrot.lane.b32.xlu1 %v6519_v24, %s6023_s20 }
 0x1b3   :  { %1269 = vrot.lane.b32.xlu0 %v6515_v30, %s6024_s25 }
 0x1ba   :  { %1265 = vrot.lane.b32.xlu2 %v6519_v24, %s6024_s25  ;;  %1271 = vrot.lane.b32.xlu1 %v6517_v23, %s6024_s25 }
 0x1bb   :  { %1360 = vrot.lane.b32.xlu0 %v6511_v19, %s6025_s26 }
 0x1c2   :  { %1364 = vrot.lane.b32.xlu2 %v6517_v23, %s6025_s26  ;;  %1362 = vrot.lane.b32.xlu1 %v6515_v30, %s6025_s26 }
 0x1c3   :  { %1358 = vrot.lane.b32.xlu0 %v6519_v24, %s6025_s26 }
 0x1ca   :  { %1455 = vrot.lane.b32.xlu2 %v6515_v30, %s6026_s27  ;;  %1451 = vrot.lane.b32.xlu1 %v6519_v24, %s6026_s27 }
 0x1cb   :  { %1457 = vrot.lane.b32.xlu0 %v6517_v23, %s6026_s27 }
 0x1d2   :  { %1544 = vrot.lane.b32.xlu2 %v6519_v24, %s6027_s28  ;;  %1453 = vrot.lane.b32.xlu1 %v6511_v19, %s6026_s27 }
 0x1d3   :  { %1548 = vrot.lane.b32.xlu0 %v6515_v30, %s6027_s28 }
 0x1da   :  { %1546 = vrot.lane.b32.xlu2 %v6511_v19, %s6027_s28  ;;  %1550 = vrot.lane.b32.xlu1 %v6517_v23, %s6027_s28 }
 0x1db   :  { %1637 = vrot.lane.b32.xlu0 %v6519_v24, %s6028_s29 }
 0x1e2   :  { %1643 = vrot.lane.b32.xlu2 %v6517_v23, %s6028_s29  ;;  %1641 = vrot.lane.b32.xlu1 %v6515_v30, %s6028_s29 }
 0x1e3   :  { %1639 = vrot.lane.b32.xlu0 %v6511_v19, %s6028_s29 }
 0x1ea   :  { %1734 = vrot.lane.b32.xlu2 %v6515_v30, %s6029_s30  ;;  %1730 = vrot.lane.b32.xlu1 %v6519_v24, %s6029_s30  ;;  %v1112_v30 = vsel %vm130_vm2, %v1014_v25, 0  ;;  %v1109_v24 = vsel %vm130_vm2, %v1013_v31, 0  ;;  %v5610_v25 = vld [vmem:[%s8152_s4 + $0x10] sm:$0xf] }
 0x1eb   :  { %1736 = vrot.lane.b32.xlu0 %v6517_v23, %s6029_s30 }
 0x1f2   :  { %1826 = vperm.xlu2 %5953, %v1823_v32   ;;  %1732 = vrot.lane.b32.xlu1 %v6511_v19, %s6029_s30  ;;  %v1037_v19 = vld [vmem:[%s8152_s4] sm:$0xf] }
 0x1fc   :  { %v1024_v35 = vpop.permute.xlu2 %1023 }
 0x204   :  { %v1177_v52 = vpop.permute.xlu2 %1176 }
 0x20c   :  { %v1268_v54 = vpop.permute.xlu2 %1267 }
 0x20d   :  { %v1020_v36 = vpop.permute.xlu0 %1019 }
 0x214   :  { %v1022_v53 = vpop.permute.xlu1 %1021 }
 0x215   :  { %v1025_v3 = vsel %vm103_vm1, %v1022_v53, %v1024_v35  ;;  %v1026_v61 = vsel %vm103_vm1, %v1020_v36, %v1022_v53  ;;  %v1018_v62 = vpop.permute.xlu0 %1017 }
 0x216   :  { %v1031_v5 = vmul.f32 %v1026_v61, %v6224_v16  ;;  %v1032_v26 = vmul.f32 %v1025_v3, %v6226_v17  ;;  %v1027_v20 = vsel %vm103_vm1, %v1018_v62, %v1020_v36  ;;  %v1028_v39 = vsel %vm103_vm1, %v1024_v35, %v1018_v62  ;;  %v1266_v35 = vpop.permute.xlu2 %1265 }
 0x217   :  { %v1030_v33 = vmul.f32 %v1027_v20, %v6222_v15  ;;  %v1029_v58 = vmul.f32 %v1028_v39, %v6220_v14 }
 0x218   :  { %v1035_v45 = vpack.c.bf16 %v1031_v5, %v1031_v5  ;;  %v1036_v55 = vpack.c.bf16 %v1032_v26, %v1032_v26 }
 0x219   :  { %v1034_v22 = vpack.c.bf16 %v1030_v33, %v1030_v33  ;;  %v1033_v49 = vpack.c.bf16 %v1029_v58, %v1029_v58 }
 0x21a   :  { %v1048_v29 = vsel %vm130_vm2, %v1035_v45, 0  ;;  %v1051_v10 = vsel %vm130_vm2, %v1036_v55, 0 }
 0x21b   :  { %1086 = vmatpush.bf16.msrb.mxu2 %v1048_v29  ;;  %1099 = vmatpush.bf16.msrb.mxu3 %v1051_v10  ;;  %v1045_v56 = vsel %vm130_vm2, %v1034_v22, 0  ;;  %v1042_v18 = vsel %vm130_vm2, %v1033_v49, 0 }
 0x21c   :  { %v1175_v57 = vpop.permute.xlu1 %1174  ;;  %1060 = vmatpush.bf16.msrb.mxu0 %v1042_v18  ;;  %1073 = vmatpush.bf16.msrb.mxu1 %v1045_v56 }
 0x21d   :  { %v1181_v59 = vsel %vm272_vm0, %v1175_v57, %v1177_v52  ;;  %v1179_v0 = vpop.permute.xlu0 %1178 }
 0x21e   :  { %v1186_v21 = vmul.f32 %v1181_v59, %v6215_v12  ;;  %5613 = vmatmul.msk.bf16.vlgmr.msrb.gmra.mxu2 %vm126_vm3, %v1037_v19  ;;  %5614 = vmatmul.msk.bf16.vlgmr.msrb.gmra.mxu3 %vm126_vm3, %v1037_v19  ;;  %v1180_v23 = vsel %vm272_vm0, %v1177_v52, %v1179_v0  ;;  %v1275_v52 = vsel %vm377_vm4, %v1266_v35, %v1268_v54 }
 0x21f   :  { %1153 = vmatpush.bf16.msra.mxu2 %v1115_v63  ;;  %1166 = vmatpush.bf16.msra.mxu3 %v1118_v60  ;;  %v1187_v27 = vmul.f32 %v1180_v23, %v6257_v43  ;;  %v1278_v34 = vmul.f32 %v1275_v52, %v6288_v2 }
 0x220   :  { %1140 = vmatpush.bf16.msra.mxu1 %v1112_v30  ;;  %1127 = vmatpush.bf16.msra.mxu0 %v1109_v24  ;;  %v1190_v28 = vpack.c.bf16 %v1186_v21, %v1186_v21  ;;  %v1365_v21 = vpop.permute.xlu2 %1364 }
 0x221   :  { %5611 = vmatmul.msk.bf16.vlgmr.msrb.gmra.mxu0 %vm126_vm3, %v1037_v19  ;;  %5612 = vmatmul.msk.bf16.vlgmr.msrb.gmra.mxu1 %vm126_vm3, %v1037_v19  ;;  %v1191_v32 = vpack.c.bf16 %v1187_v27, %v1187_v27  ;;  %v1282_v49 = vpack.c.bf16 %v1278_v34, %v1278_v34 }
 0x222   :  { %v1204_v36 = vsel %vm130_vm2, %v1190_v28, 0 }
 0x223   :  { %1242 = vmatpush.bf16.msrb.mxu2 %v1204_v36  ;;  %v1207_v53 = vsel %vm130_vm2, %v1191_v32, 0  ;;  %v1294_v18 = vsel %vm130_vm2, %v1282_v49, 0 }
 0x224   :  { %v1173_v3 = vpop.permute.xlu1 %1172  ;;  %1255 = vmatpush.bf16.msrb.mxu3 %v1207_v53 }
 0x225   :  { %v1182_v61 = vsel %vm272_vm0, %v1173_v3, %v1175_v57  ;;  %v1183_v62 = vsel %vm272_vm0, %v1179_v0, %v1173_v3  ;;  %v1270_v5 = vpop.permute.xlu0 %1269 }
 0x226   :  { %v1184_v26 = vmul.f32 %v1183_v62, %v6255_v42  ;;  %v1185_v20 = vmul.f32 %v1182_v61, %v6253_v41  ;;  %v1274_v39 = vsel %vm377_vm4, %v1268_v54, %v1270_v5  ;;  %v5619_v62 = vld [vmem:[%s8152_s4 + $0x4] sm:$0xf] }
 0x227   :  { %v1279_v33 = vmul.f32 %v1274_v39, %v6286_v1 }
 0x228   :  { %v1188_v51 = vpack.c.bf16 %v1184_v26, %v1184_v26  ;;  %v1189_v45 = vpack.c.bf16 %v1185_v20, %v1185_v20  ;;  %v1456_v39 = vpop.permute.xlu2 %1455 }
 0x229   :  { %v1283_v55 = vpack.c.bf16 %v1279_v33, %v1279_v33 }
 0x22a   :  { %v1198_v58 = vsel %vm130_vm2, %v1188_v51, 0  ;;  %v1201_v22 = vsel %vm130_vm2, %v1189_v45, 0 }
 0x22b   :  { %1216 = vmatpush.bf16.msrb.mxu0 %v1198_v58  ;;  %1229 = vmatpush.bf16.msrb.mxu1 %v1201_v22  ;;  %v1297_v54 = vsel %vm130_vm2, %v1283_v55, 0 }
 0x22c   :  { %v1272_v29 = vpop.permute.xlu1 %1271 }
 0x22d   :  { %v1273_v10 = vsel %vm377_vm4, %v1270_v5, %v1272_v29  ;;  %v1276_v31 = vsel %vm377_vm4, %v1272_v29, %v1266_v35  ;;  %v1361_v63 = vpop.permute.xlu0 %1360 }
 0x22e   :  { %v1277_v60 = vmul.f32 %v1276_v31, %v6293_v4  ;;  %v1280_v56 = vmul.f32 %v1273_v10, %v6298_v8  ;;  %5617 = vmatmul.msk.bf16.vlgmr.msra.gmra.mxu2 %vm126_vm3, %v5610_v25  ;;  %5618 = vmatmul.msk.bf16.vlgmr.msra.gmra.mxu3 %vm126_vm3, %v5610_v25 }
 0x22f   :  { %1335 = vmatpush.bf16.msra.mxu2 %v1297_v54 }
 0x230   :  { %v1281_v19 = vpack.c.bf16 %v1277_v60, %v1277_v60  ;;  %v1284_v57 = vpack.c.bf16 %v1280_v56, %v1280_v56  ;;  %v1545_v31 = vpop.permute.xlu2 %1544 }
 0x231   :  { %5615 = vmatmul.msk.bf16.vlgmr.msra.gmra.mxu0 %vm126_vm3, %v5610_v25  ;;  %5616 = vmatmul.msk.bf16.vlgmr.msra.gmra.mxu1 %vm126_vm3, %v5610_v25 }
 0x232   :  { %1322 = vmatpush.bf16.msra.mxu1 %v1294_v18  ;;  %v1291_v59 = vsel %vm130_vm2, %v1281_v19, 0  ;;  %v1300_v0 = vsel %vm130_vm2, %v1284_v57, 0  ;;  %v5624_v57 = vld [vmem:[%s8152_s4 + $0x8] sm:$0xf] }
 0x233   :  { %1309 = vmatpush.bf16.msra.mxu0 %v1291_v59  ;;  %1348 = vmatpush.bf16.msra.mxu3 %v1300_v0 }
 0x234   :  { %v1363_v30 = vpop.permute.xlu1 %1362 }
 0x235   :  { %v1366_v23 = vsel %vm482_vm5, %v1363_v30, %v1365_v21  ;;  %v1367_v24 = vsel %vm482_vm5, %v1361_v63, %v1363_v30  ;;  %v1359_v27 = vpop.permute.xlu0 %1358 }
 0x236   :  { %v1372_v28 = vmul.f32 %v1367_v24, %v6326_v37  ;;  %v1373_v32 = vmul.f32 %v1366_v23, %v6334_v44  ;;  %v1368_v35 = vsel %vm482_vm5, %v1359_v27, %v1361_v63  ;;  %v1369_v36 = vsel %vm482_vm5, %v1365_v21, %v1359_v27 }
 0x237   :  { %v1370_v53 = vmul.f32 %v1369_v36, %v6332_v40  ;;  %v1371_v3 = vmul.f32 %v1368_v35, %v6328_v38 }
 0x238   :  { %v1376_v52 = vpack.c.bf16 %v1372_v28, %v1372_v28  ;;  %v1377_v61 = vpack.c.bf16 %v1373_v32, %v1373_v32  ;;  %v1547_v28 = vpop.permute.xlu2 %1546 }
 0x239   :  { %v1374_v5 = vpack.c.bf16 %v1370_v53, %v1370_v53  ;;  %v1375_v26 = vpack.c.bf16 %v1371_v3, %v1371_v3  ;;  %v1554_v36 = vsel %vm692_vm7, %v1545_v31, %v1547_v28 }
 0x23a   :  { %v1390_v33 = vsel %vm130_vm2, %v1376_v52, 0  ;;  %v1393_v34 = vsel %vm130_vm2, %v1377_v61, 0  ;;  %v1556_v61 = vmul.f32 %v1554_v36, %v6396_v46 }
 0x23b   :  { %v1384_v45 = vsel %vm130_vm2, %v1374_v5, 0  ;;  %v1387_v55 = vsel %vm130_vm2, %v1375_v26, 0 }
 0x23c   :  { %v1452_v20 = vpop.permute.xlu1 %1451 }
 0x23d   :  { %v1458_v51 = vpop.permute.xlu0 %1457 }
 0x23e   :  { %5622 = vmatmul.msk.bf16.vlgmr.msrb.gmra.mxu2 %vm126_vm3, %v5619_v62  ;;  %5623 = vmatmul.msk.bf16.vlgmr.msrb.gmra.mxu3 %vm126_vm3, %v5619_v62  ;;  %v1459_v58 = vsel %vm587_vm6, %v1456_v39, %v1458_v51  ;;  %v1462_v22 = vsel %vm587_vm6, %v1458_v51, %v1452_v20 }
 0x23f   :  { %1428 = vmatpush.bf16.msrb.mxu2 %v1390_v33  ;;  %1441 = vmatpush.bf16.msrb.mxu3 %v1393_v34  ;;  %v1465_v54 = vmul.f32 %v1459_v58, %v6367_v11  ;;  %v1466_v10 = vmul.f32 %v1462_v22, %v6361_v6  ;;  %v1560_v33 = vpack.c.bf16 %v1556_v61, %v1556_v61 }
 0x241   :  { %5620 = vmatmul.msk.bf16.vlgmr.msrb.gmra.mxu0 %vm126_vm3, %v5619_v62  ;;  %5621 = vmatmul.msk.bf16.vlgmr.msrb.gmra.mxu1 %vm126_vm3, %v5619_v62  ;;  %v1469_v56 = vpack.c.bf16 %v1465_v54, %v1465_v54  ;;  %v1470_v19 = vpack.c.bf16 %v1466_v10, %v1466_v10  ;;  %v1570_v58 = vsel %vm130_vm2, %v1560_v33, 0 }
 0x242   :  { %1402 = vmatpush.bf16.msrb.mxu0 %v1384_v45  ;;  %1415 = vmatpush.bf16.msrb.mxu1 %v1387_v55 }
 0x243   :  { %v1483_v21 = vsel %vm130_vm2, %v1469_v56, 0  ;;  %v1486_v30 = vsel %vm130_vm2, %v1470_v19, 0  ;;  %v8268_v56 = vld [vmem:[#allocation36_spill] sm:$0xff] }
 0x244   :  { %v1454_v25 = vpop.permute.xlu1 %1453 }
 0x245   :  { %v1460_v49 = vsel %vm587_vm6, %v1454_v25, %v1456_v39  ;;  %v1461_v29 = vsel %vm587_vm6, %v1452_v20, %v1454_v25  ;;  %v1549_v0 = vpop.permute.xlu0 %1548  ;;  %v5629_v39 = vld [vmem:[%s8152_s4 + $0xc] sm:$0xf]  ;;  %v1644_v25 = vpop.permute.xlu2 %1643 }
 0x246   :  { %v1463_v63 = vmul.f32 %v1461_v29, %v6363_v7  ;;  %v1464_v60 = vmul.f32 %v1460_v49, %v6369_v13  ;;  %v1553_v53 = vsel %vm692_vm7, %v1547_v28, %v1549_v0 }
 0x247   :  { %v1557_v62 = vmul.f32 %v1553_v53, %v6400_v48 }
 0x248   :  { %v1467_v18 = vpack.c.bf16 %v1463_v63, %v1463_v63  ;;  %v1468_v59 = vpack.c.bf16 %v1464_v60, %v1464_v60  ;;  %v8267_v63 = vld [vmem:[#allocation34_spill] sm:$0xff] }
 0x249   :  { %v1561_v34 = vpack.c.bf16 %v1557_v62, %v1557_v62 }
 0x24a   :  { %v1477_v24 = vsel %vm130_vm2, %v1467_v18, 0  ;;  %v1480_v27 = vsel %vm130_vm2, %v1468_v59, 0  ;;  %v8270_v59 = vld [vmem:[#allocation35_spill] sm:$0xff] }
 0x24b   :  { %v1573_v22 = vsel %vm130_vm2, %v1561_v34, 0  ;;  %v8272_v34 = vld [vmem:[#allocation37_spill] sm:$0xff] }
 0x24c   :  { %v1551_v23 = vpop.permute.xlu1 %1550 }
 0x24d   :  { %v1552_v32 = vsel %vm692_vm7, %v1549_v0, %v1551_v23  ;;  %v1555_v35 = vsel %vm692_vm7, %v1551_v23, %v1545_v31  ;;  %v1638_v5 = vpop.permute.xlu0 %1637 }
 0x24e   :  { %5627 = vmatmul.msk.bf16.vlgmr.msra.gmra.mxu2 %vm126_vm3, %v5624_v57  ;;  %5628 = vmatmul.msk.bf16.vlgmr.msra.gmra.mxu3 %vm126_vm3, %v5624_v57  ;;  %v1558_v3 = vmul.f32 %v1552_v32, %v6404_v50  ;;  %v1559_v52 = vmul.f32 %v1555_v35, %v6398_v47  ;;  %v1648_v29 = vsel %vm797_vm8, %v1644_v25, %v1638_v5 }
 0x24f   :  { %1521 = vmatpush.bf16.msra.mxu2 %v1483_v21  ;;  %1534 = vmatpush.bf16.msra.mxu3 %v1486_v30  ;;  %v1652_v60 = vmul.f32 %v1648_v29, %v8267_v63  ;;  %v5639_v29 = vld [vmem:[%s8152_s4 + $0x18] sm:$0xf] }
 0x250   :  { %v1562_v26 = vpack.c.bf16 %v1558_v3, %v1558_v3  ;;  %v1563_v20 = vpack.c.bf16 %v1559_v52, %v1559_v52  ;;  %v1735_v52 = vpop.permute.xlu2 %1734 }
 0x251   :  { %5625 = vmatmul.msk.bf16.vlgmr.msra.gmra.mxu0 %vm126_vm3, %v5624_v57  ;;  %5626 = vmatmul.msk.bf16.vlgmr.msra.gmra.mxu1 %vm126_vm3, %v5624_v57  ;;  %v8269_v57 = vld [vmem:[#allocation33_spill] sm:$0xff]  ;;  %v1656_v30 = vpack.c.bf16 %v1652_v60, %v1652_v60 }
 0x252   :  { %1495 = vmatpush.bf16.msra.mxu0 %v1477_v24  ;;  %1508 = vmatpush.bf16.msra.mxu1 %v1480_v27  ;;  %v1576_v45 = vsel %vm130_vm2, %v1562_v26, 0  ;;  %v1579_v55 = vsel %vm130_vm2, %v1563_v20, 0  ;;  %v5634_v24 = vld [vmem:[%s8152_s4 + $0x14] sm:$0xf] }
 0x253   :  { %v1672_v35 = vsel %vm130_vm2, %v1656_v30, 0 }
 0x254   :  { %v1642_v51 = vpop.permute.xlu1 %1641 }
 0x255   :  { %v1640_v49 = vpop.permute.xlu0 %1639  ;;  %v1645_v54 = vsel %vm797_vm8, %v1642_v51, %v1644_v25 }
 0x256   :  { %v1646_v10 = vsel %vm797_vm8, %v1640_v49, %v1642_v51  ;;  %v1647_v31 = vsel %vm797_vm8, %v1638_v5, %v1640_v49  ;;  %v1651_v19 = vmul.f32 %v1645_v54, %v8268_v56 }
 0x257   :  { %v1649_v18 = vmul.f32 %v1647_v31, %v8269_v57  ;;  %v1650_v0 = vmul.f32 %v1646_v10, %v8270_v59 }
 0x258   :  { %v1655_v23 = vpack.c.bf16 %v1651_v19, %v1651_v19  ;;  %v1827_v63 = vpop.permute.xlu2 %1826 }
 0x259   :  { %v1653_v27 = vpack.c.bf16 %v1649_v18, %v1649_v18  ;;  %v1654_v28 = vpack.c.bf16 %v1650_v0, %v1650_v0  ;;  %v5644_v0 = vld [vmem:[%s8152_s4 + $0x1c] sm:$0xf] }
 0x25a   :  { %v1669_v32 = vsel %vm130_vm2, %v1655_v23, 0 }
 0x25b   :  { %v1663_v53 = vsel %vm130_vm2, %v1653_v27, 0  ;;  %v1666_v3 = vsel %vm130_vm2, %v1654_v28, 0 }
 0x25c   :  { %v1731_v21 = vpop.permute.xlu1 %1730 }
 0x25d   :  { %v1737_v36 = vpop.permute.xlu0 %1736 }
 0x25e   :  { %5632 = vmatmul.msk.bf16.vlgmr.msrb.gmra.mxu2 %vm126_vm3, %v5629_v39  ;;  %5633 = vmatmul.msk.bf16.vlgmr.msrb.gmra.mxu3 %vm126_vm3, %v5629_v39  ;;  %v1738_v62 = vsel %vm902_vm9, %v1735_v52, %v1737_v36  ;;  %v1741_v5 = vsel %vm902_vm9, %v1737_v36, %v1731_v21 }
 0x25f   :  { %1614 = vmatpush.bf16.msrb.mxu2 %v1576_v45  ;;  %1627 = vmatpush.bf16.msrb.mxu3 %v1579_v55  ;;  %v1745_v51 = vmul.f32 %v1741_v5, %v8272_v34  ;;  %v8273_v45 = vld [vmem:[#allocation38_spill] sm:$0xff] }
 0x261   :  { %5630 = vmatmul.msk.bf16.vlgmr.msrb.gmra.mxu0 %vm126_vm3, %v5629_v39  ;;  %5631 = vmatmul.msk.bf16.vlgmr.msrb.gmra.mxu1 %vm126_vm3, %v5629_v39  ;;  %v8271_v39 = vld [vmem:[#allocation40_spill] sm:$0xff]  ;;  %v1749_v49 = vpack.c.bf16 %v1745_v51, %v1745_v51 }
 0x262   :  { %1588 = vmatpush.bf16.msrb.mxu0 %v1570_v58  ;;  %1601 = vmatpush.bf16.msrb.mxu1 %v1573_v22  ;;  %v1744_v33 = vmul.f32 %v1738_v62, %v8271_v39  ;;  %v8274_v58 = vld [vmem:[#allocation39_spill] sm:$0xff] }
 0x263   :  { %v1765_v60 = vsel %vm130_vm2, %v1749_v49, 0 }
 0x264   :  { %v1733_v61 = vpop.permute.xlu1 %1732  ;;  %v1748_v25 = vpack.c.bf16 %v1744_v33, %v1744_v33 }
 0x265   :  { %v1739_v26 = vsel %vm902_vm9, %v1733_v61, %v1735_v52  ;;  %v1740_v20 = vsel %vm902_vm9, %v1731_v21, %v1733_v61  ;;  %v5649_v21 = vld [vmem:[%s8152_s4 + $0x20] sm:$0xf] }
 0x266   :  { %v1742_v55 = vmul.f32 %v1740_v20, %v8273_v45  ;;  %v1743_v22 = vmul.f32 %v1739_v26, %v8274_v58  ;;  %v1762_v31 = vsel %vm130_vm2, %v1748_v25, 0 }
 0x268   :  { %v1746_v54 = vpack.c.bf16 %v1742_v55, %v1742_v55  ;;  %v1747_v10 = vpack.c.bf16 %v1743_v22, %v1743_v22 }
 0x26a   :  { %v1756_v19 = vsel %vm130_vm2, %v1746_v54, 0  ;;  %v1759_v18 = vsel %vm130_vm2, %v1747_v10, 0 }
 0x26e   :  { %5637 = vmatmul.msk.bf16.vlgmr.msra.gmra.mxu2 %vm126_vm3, %v5634_v24  ;;  %5638 = vmatmul.msk.bf16.vlgmr.msra.gmra.mxu3 %vm126_vm3, %v5634_v24 }
 0x26f   :  { %1707 = vmatpush.bf16.msra.mxu2 %v1669_v32  ;;  %1720 = vmatpush.bf16.msra.mxu3 %v1672_v35 }
 0x271   :  { %5635 = vmatmul.msk.bf16.vlgmr.msra.gmra.mxu0 %vm126_vm3, %v5634_v24  ;;  %5636 = vmatmul.msk.bf16.vlgmr.msra.gmra.mxu1 %vm126_vm3, %v5634_v24 }
 0x272   :  { %1681 = vmatpush.bf16.msra.mxu0 %v1663_v53  ;;  %1694 = vmatpush.bf16.msra.mxu1 %v1666_v3 }
 0x27e   :  { %5642 = vmatmul.msk.bf16.vlgmr.msrb.gmra.mxu2 %vm126_vm3, %v5639_v29  ;;  %5643 = vmatmul.msk.bf16.vlgmr.msrb.gmra.mxu3 %vm126_vm3, %v5639_v29 }
 0x27f   :  { %1800 = vmatpush.bf16.msrb.mxu2 %v1762_v31  ;;  %1813 = vmatpush.bf16.msrb.mxu3 %v1765_v60 }
 0x281   :  { %5640 = vmatmul.msk.bf16.vlgmr.msrb.gmra.mxu0 %vm126_vm3, %v5639_v29  ;;  %5641 = vmatmul.msk.bf16.vlgmr.msrb.gmra.mxu1 %vm126_vm3, %v5639_v29 }
 0x282   :  { %1774 = vmatpush.bf16.msrb.mxu0 %v1756_v19  ;;  %1787 = vmatpush.bf16.msrb.mxu1 %v1759_v18 }
 0x28e   :  { %5647 = vmatmul.msk.bf16.vlgmr.msra.gmra.mxu2 %vm126_vm3, %v5644_v0  ;;  %5648 = vmatmul.msk.bf16.vlgmr.msra.gmra.mxu3 %vm126_vm3, %v5644_v0 }
 0x291   :  { %5645 = vmatmul.msk.bf16.vlgmr.msra.gmra.mxu0 %vm126_vm3, %v5644_v0  ;;  %5646 = vmatmul.msk.bf16.vlgmr.msra.gmra.mxu1 %vm126_vm3, %v5644_v0 }
 0x29e   :  { %v1062_v30 = vpop.f32.mrf.mxu0  ;;  %v1075_v23 = vpop.f32.mrf.mxu1  ;;  %5652 = vmatmul.msk.bf16.vlgmr.msrb.gmra.mxu2 %vm126_vm3, %v5649_v21  ;;  %5653 = vmatmul.msk.bf16.vlgmr.msrb.gmra.mxu3 %vm126_vm3, %v5649_v21 }
 0x2a1   :  { %5650 = vmatmul.msk.bf16.vlgmr.msrb.gmra.mxu0 %vm126_vm3, %v5649_v21  ;;  %5651 = vmatmul.msk.bf16.vlgmr.msrb.gmra.mxu1 %vm126_vm3, %v5649_v21  ;;  %v1088_v24 = vpop.f32.mrf.mxu2  ;;  %v1101_v27 = vpop.f32.mrf.mxu3 }
 0x2a6   :  { %v1064_v28 = vpop.f32.mrf.mxu0  ;;  %v1077_v32 = vpop.f32.mrf.mxu1 }
 0x2a9   :  { %v1090_v35 = vpop.f32.mrf.mxu2  ;;  %v1103_v36 = vpop.f32.mrf.mxu3 }
 0x2ae   :  { %v1129_v53 = vpop.f32.mrf.mxu0  ;;  %v1142_v3 = vpop.f32.mrf.mxu1 }
 0x2af   :  { %v1130_v52 = vadd.f32 %v1129_v53, %v1062_v30  ;;  %v1143_v61 = vadd.f32 %v1142_v3, %v1075_v23 }
 0x2b1   :  { %v1155_v62 = vpop.f32.mrf.mxu2  ;;  %v1168_v5 = vpop.f32.mrf.mxu3 }
 0x2b2   :  { %v1156_v26 = vadd.f32 %v1155_v62, %v1088_v24  ;;  %v1169_v20 = vadd.f32 %v1168_v5, %v1101_v27 }
 0x2b6   :  { %v1131_v33 = vpop.f32.mrf.mxu0  ;;  %v1144_v51 = vpop.f32.mrf.mxu1 }
 0x2b9   :  { %v1157_v55 = vpop.f32.mrf.mxu2  ;;  %v1170_v22 = vpop.f32.mrf.mxu3 }
 0x2be   :  { %v1218_v25 = vpop.f32.mrf.mxu0  ;;  %v1231_v49 = vpop.f32.mrf.mxu1 }
 0x2bf   :  { %v1261_v29 = vadd.f32 %v1218_v25, %v1130_v52  ;;  %v1262_v54 = vadd.f32 %v1231_v49, %v1143_v61 }
 0x2c1   :  { %v1244_v10 = vpop.f32.mrf.mxu2  ;;  %v1257_v31 = vpop.f32.mrf.mxu3 }
 0x2c2   :  { %v1263_v60 = vadd.f32 %v1244_v10, %v1156_v26  ;;  %v1264_v19 = vadd.f32 %v1257_v31, %v1169_v20 }
 0x2c6   :  { %v1220_v18 = vpop.f32.mrf.mxu0  ;;  %v1233_v0 = vpop.f32.mrf.mxu1 }
 0x2c9   :  { %v1246_v21 = vpop.f32.mrf.mxu2  ;;  %v1259_v30 = vpop.f32.mrf.mxu3 }
 0x2ce   :  { %v1311_v23 = vpop.f32.mrf.mxu0  ;;  %v1324_v28 = vpop.f32.mrf.mxu1 }
 0x2cf   :  { %v1354_v24 = vadd.f32 %v1311_v23, %v1261_v29  ;;  %v1355_v27 = vadd.f32 %v1324_v28, %v1262_v54 }
 0x2d1   :  { %v1337_v32 = vpop.f32.mrf.mxu2  ;;  %v1350_v35 = vpop.f32.mrf.mxu3 }
 0x2d2   :  { %v1356_v36 = vadd.f32 %v1337_v32, %v1263_v60  ;;  %v1357_v53 = vadd.f32 %v1350_v35, %v1264_v19 }
 0x2d6   :  { %v1313_v3 = vpop.f32.mrf.mxu0  ;;  %v1326_v62 = vpop.f32.mrf.mxu1 }
 0x2d9   :  { %v1339_v52 = vpop.f32.mrf.mxu2  ;;  %v1352_v61 = vpop.f32.mrf.mxu3 }
 0x2de   :  { %v1404_v5 = vpop.f32.mrf.mxu0  ;;  %v1417_v33 = vpop.f32.mrf.mxu1 }
 0x2df   :  { %v1447_v26 = vadd.f32 %v1404_v5, %v1354_v24 }
 0x2e1   :  { %v1430_v20 = vpop.f32.mrf.mxu2  ;;  %v1443_v51 = vpop.f32.mrf.mxu3 }
 0x2e6   :  { %v1406_v55 = vpop.f32.mrf.mxu0  ;;  %v1419_v22 = vpop.f32.mrf.mxu1 }
 0x2e9   :  { %v1432_v25 = vpop.f32.mrf.mxu2  ;;  %v1445_v49 = vpop.f32.mrf.mxu3 }
 0x2ea   :  { %v1448_v25 = vadd.f32 %v1417_v33, %v1355_v27 }
 0x2ee   :  { %v1497_v10 = vpop.f32.mrf.mxu0  ;;  %v1510_v29 = vpop.f32.mrf.mxu1 }
 0x2ef   :  { %v1541_v49 = vadd.f32 %v1510_v29, %v1448_v25  ;;  %v1540_v45 = vadd.f32 %v1497_v10, %v1447_v26 }
 0x2f1   :  { %v1523_v54 = vpop.f32.mrf.mxu2  ;;  %v1536_v31 = vpop.f32.mrf.mxu3 }
 0x2f6   :  { %v1499_v18 = vpop.f32.mrf.mxu0  ;;  %v1512_v60 = vpop.f32.mrf.mxu1 }
 0x2f9   :  { %v1525_v19 = vpop.f32.mrf.mxu2  ;;  %v1538_v0 = vpop.f32.mrf.mxu3 }
 0x2fa   :  { %v1449_v19 = vadd.f32 %v1430_v20, %v1356_v36  ;;  %v1450_v0 = vadd.f32 %v1443_v51, %v1357_v53 }
 0x2fc   :  { %v1542_v34 = vadd.f32 %v1523_v54, %v1449_v19  ;;  %v1543_v39 = vadd.f32 %v1536_v31, %v1450_v0 }
 0x2fe   :  { %v1590_v21 = vpop.f32.mrf.mxu0  ;;  %v1603_v30 = vpop.f32.mrf.mxu1 }
 0x2ff   :  { %v1634_v58 = vadd.f32 %v1603_v30, %v1541_v49 }
 0x301   :  { %v1616_v23 = vpop.f32.mrf.mxu2  ;;  %v1629_v28 = vpop.f32.mrf.mxu3 }
 0x302   :  { %v1635_v59 = vadd.f32 %v1616_v23, %v1542_v34  ;;  %v1636_v57 = vadd.f32 %v1629_v28, %v1543_v39 }
 0x306   :  { %v1592_v32 = vpop.f32.mrf.mxu0  ;;  %v1605_v24 = vpop.f32.mrf.mxu1 }
 0x309   :  { %v1618_v35 = vpop.f32.mrf.mxu2  ;;  %v1631_v3 = vpop.f32.mrf.mxu3 }
 0x30a   :  { %v1633_v3 = vadd.f32 %v1590_v21, %v1540_v45 }
 0x30e   :  { %v1683_v62 = vpop.f32.mrf.mxu0  ;;  %v1696_v52 = vpop.f32.mrf.mxu1 }
 0x30f   :  { %v1727_v32 = vadd.f32 %v1696_v52, %v1634_v58 }
 0x311   :  { %v1709_v61 = vpop.f32.mrf.mxu2  ;;  %v1722_v5 = vpop.f32.mrf.mxu3 }
 0x312   :  { %v1729_v27 = vadd.f32 %v1722_v5, %v1636_v57 }
 0x316   :  { %v1685_v55 = vpop.f32.mrf.mxu0  ;;  %v1698_v22 = vpop.f32.mrf.mxu1 }
 0x317   :  { %v1726_v55 = vadd.f32 %v1683_v62, %v1633_v3  ;;  %v1728_v22 = vadd.f32 %v1709_v61, %v1635_v59 }
 0x319   :  { %v1711_v18 = vpop.f32.mrf.mxu2  ;;  %v1724_v60 = vpop.f32.mrf.mxu3 }
 0x31e   :  { %v1776_v24 = vpop.f32.mrf.mxu0  ;;  %v1789_v35 = vpop.f32.mrf.mxu1 }
 0x31f   :  { %v1820_v56 = vadd.f32 %v1789_v35, %v1727_v32  ;;  %v1819_v36 = vadd.f32 %v1776_v24, %v1726_v55 }
 0x321   :  { %v1830_v33 = vadd.f32 %v1827_v63, %v1820_v56  ;;  %v1802_v29 = vpop.f32.mrf.mxu2  ;;  %v1815_v25 = vpop.f32.mrf.mxu3  ;;  %v1829_v45 = vadd.f32 %v1827_v63, %v1819_v36 }
 0x322   :  { %v1821_v26 = vadd.f32 %v1802_v29, %v1728_v22  ;;  %v1822_v20 = vadd.f32 %v1815_v25, %v1729_v27  ;;  %v1863_v29 = vld [vmem:[%s8154_s6] sm:$0xf] }
 0x323   :  { %v6786_v53 = vmax.f32 %v1830_v33, 0.0  ;;  %v6792_v59 = vmax.f32 %v1829_v45, 0.0 }
 0x324   :  { %v1831_v51 = vadd.f32 %v1827_v63, %v1821_v26  ;;  %v1832_v58 = vadd.f32 %v1827_v63, %v1822_v20  ;;  %v2649_v63 = vld [vmem:[%s8155_s7] sm:$0xff] }
 0x325   :  { %1845 = vrot.lane.b32.xlu0 %v6786_v53, %s6022_s5  ;;  %v1840_v25 = vpack.c.bf16 %v6786_v53, %v6786_v53  ;;  %v1839_v36 = vpack.c.bf16 %v6792_v59, %v6792_v59 }
 0x326   :  { %v1778_v34 = vpop.f32.mrf.mxu0  ;;  %v1791_v39 = vpop.f32.mrf.mxu1  ;;  %v1835_v10 = vmax.f32 %v1831_v51, 0.0  ;;  %v1836_v54 = vmax.f32 %v1832_v58, 0.0 }
 0x327   :  { %v1938_v45 = vsel %vm130_vm2, %v1840_v25, 0 }
 0x328   :  { %1849 = vrot.lane.b32.xlu2 %v1836_v54, %s6022_s5  ;;  %1847 = vrot.lane.b32.xlu1 %v1835_v10, %s6022_s5  ;;  %v1842_v5 = vpack.c.bf16 %v1836_v54, %v1836_v54  ;;  %v1841_v49 = vpack.c.bf16 %v1835_v10, %v1835_v10 }
 0x329   :  { %v1804_v56 = vpop.f32.mrf.mxu2  ;;  %v1817_v57 = vpop.f32.mrf.mxu3 }
 0x32a   :  { %v1944_v27 = vsel %vm130_vm2, %v1842_v5, 0  ;;  %v1941_v33 = vsel %vm130_vm2, %v1841_v49, 0 }
 0x32d   :  { %1843 = vrot.lane.b32.xlu0 %v6792_v59, %s6022_s5 }
 0x330   :  { %2002 = vrot.lane.b32.xlu2 %v1835_v10, %s6023_s20  ;;  %2000 = vrot.lane.b32.xlu1 %v6786_v53, %s6023_s20 }
 0x335   :  { %2004 = vrot.lane.b32.xlu0 %v1836_v54, %s6023_s20 }
 0x338   :  { %2093 = vrot.lane.b32.xlu2 %v6786_v53, %s6024_s25  ;;  %1998 = vrot.lane.b32.xlu1 %v6792_v59, %s6023_s20 }
 0x33d   :  { %2095 = vrot.lane.b32.xlu0 %v1835_v10, %s6024_s25 }
 0x340   :  { %2091 = vrot.lane.b32.xlu2 %v6792_v59, %s6024_s25  ;;  %2097 = vrot.lane.b32.xlu1 %v1836_v54, %s6024_s25 }
 0x345   :  { %2186 = vrot.lane.b32.xlu0 %v6786_v53, %s6025_s26 }
 0x348   :  { %2190 = vrot.lane.b32.xlu2 %v1836_v54, %s6025_s26  ;;  %2188 = vrot.lane.b32.xlu1 %v1835_v10, %s6025_s26 }
 0x34d   :  { %2184 = vrot.lane.b32.xlu0 %v6792_v59, %s6025_s26 }
 0x350   :  { %2281 = vrot.lane.b32.xlu2 %v1835_v10, %s6026_s27  ;;  %2277 = vrot.lane.b32.xlu1 %v6792_v59, %s6026_s27 }
 0x355   :  { %2283 = vrot.lane.b32.xlu0 %v1836_v54, %s6026_s27 }
 0x358   :  { %2370 = vrot.lane.b32.xlu2 %v6792_v59, %s6027_s28  ;;  %2279 = vrot.lane.b32.xlu1 %v6786_v53, %s6026_s27 }
 0x35d   :  { %2374 = vrot.lane.b32.xlu0 %v1835_v10, %s6027_s28 }
 0x360   :  { %2372 = vrot.lane.b32.xlu2 %v6786_v53, %s6027_s28  ;;  %2376 = vrot.lane.b32.xlu1 %v1836_v54, %s6027_s28 }
 0x365   :  { %2463 = vrot.lane.b32.xlu0 %v6792_v59, %s6028_s29 }
 0x368   :  { %2469 = vrot.lane.b32.xlu2 %v1836_v54, %s6028_s29  ;;  %2467 = vrot.lane.b32.xlu1 %v1835_v10, %s6028_s29 }
 0x36d   :  { %2465 = vrot.lane.b32.xlu0 %v6786_v53, %s6028_s29 }
 0x370   :  { %2560 = vrot.lane.b32.xlu2 %v1835_v10, %s6029_s30  ;;  %2556 = vrot.lane.b32.xlu1 %v6792_v59, %s6029_s30  ;;  %v1935_v10 = vsel %vm130_vm2, %v1839_v36, 0 }
 0x375   :  { %2562 = vrot.lane.b32.xlu0 %v1836_v54, %s6029_s30 }
 0x378   :  { %2652 = vperm.xlu2 %5953, %v2649_v63   ;;  %2558 = vrot.lane.b32.xlu1 %v6786_v53, %s6029_s30 }
 0x382   :  { %v1850_v31 = vpop.permute.xlu2 %1849 }
 0x38a   :  { %v2003_v21 = vpop.permute.xlu2 %2002 }
 0x392   :  { %v2094_v24 = vpop.permute.xlu2 %2093 }
 0x397   :  { %v1846_v30 = vpop.permute.xlu0 %1845 }
 0x39a   :  { %v1848_v23 = vpop.permute.xlu1 %1847 }
 0x39b   :  { %v1851_v28 = vsel %vm103_vm1, %v1848_v23, %v1850_v31  ;;  %v1852_v62 = vsel %vm103_vm1, %v1846_v30, %v1848_v23 }
 0x39c   :  { %v1857_v52 = vmul.f32 %v1852_v62, %v6224_v16  ;;  %v1858_v61 = vmul.f32 %v1851_v28, %v6226_v17 }
 0x39e   :  { %v1861_v18 = vpack.c.bf16 %v1857_v52, %v1857_v52  ;;  %v1862_v60 = vpack.c.bf16 %v1858_v61, %v1858_v61 }
 0x39f   :  { %v1844_v19 = vpop.permute.xlu0 %1843 }
 0x3a0   :  { %v1853_v0 = vsel %vm103_vm1, %v1844_v19, %v1846_v30  ;;  %v1854_v32 = vsel %vm103_vm1, %v1850_v31, %v1844_v19  ;;  %v1874_v55 = vsel %vm130_vm2, %v1861_v18, 0  ;;  %v1877_v22 = vsel %vm130_vm2, %v1862_v60, 0  ;;  %v2092_v31 = vpop.permute.xlu2 %2091 }
 0x3a1   :  { %v1855_v35 = vmul.f32 %v1854_v32, %v6220_v14  ;;  %v1856_v3 = vmul.f32 %v1853_v0, %v6222_v15  ;;  %1912 = vmatpush.bf16.msra.mxu2 %v1874_v55  ;;  %1925 = vmatpush.bf16.msra.mxu3 %v1877_v22  ;;  %v2101_v5 = vsel %vm377_vm4, %v2092_v31, %v2094_v24  ;;  %v5654_v55 = vld [vmem:[%s8154_s6 + $0x10] sm:$0xf] }
 0x3a2   :  { %v2001_v51 = vpop.permute.xlu1 %2000  ;;  %v2104_v0 = vmul.f32 %v2101_v5, %v6288_v2 }
 0x3a3   :  { %v1859_v26 = vpack.c.bf16 %v1855_v35, %v1855_v35  ;;  %v1860_v20 = vpack.c.bf16 %v1856_v3, %v1856_v3  ;;  %v2007_v58 = vsel %vm272_vm0, %v2001_v51, %v2003_v21 }
 0x3a4   :  { %v2012_v34 = vmul.f32 %v2007_v58, %v6215_v12  ;;  %5657 = vmatmul.msk.bf16.vlgmr.msra.gmra.mxu2 %vm126_vm3, %v1863_v29  ;;  %5658 = vmatmul.msk.bf16.vlgmr.msra.gmra.mxu3 %vm126_vm3, %v1863_v29 }
 0x3a5   :  { %1992 = vmatpush.bf16.msrb.mxu3 %v1944_v27  ;;  %1979 = vmatpush.bf16.msrb.mxu2 %v1941_v33  ;;  %v1868_v39 = vsel %vm130_vm2, %v1859_v26, 0  ;;  %v1871_v53 = vsel %vm130_vm2, %v1860_v20, 0 }
 0x3a6   :  { %1886 = vmatpush.bf16.msra.mxu0 %v1868_v39  ;;  %1899 = vmatpush.bf16.msra.mxu1 %v1871_v53  ;;  %v2016_v54 = vpack.c.bf16 %v2012_v34, %v2012_v34 }
 0x3a7   :  { %v2005_v56 = vpop.permute.xlu0 %2004 }
 0x3a8   :  { %v2006_v57 = vsel %vm272_vm0, %v2003_v21, %v2005_v56  ;;  %v2030_v63 = vsel %vm130_vm2, %v2016_v54, 0 }
 0x3a9   :  { %v2013_v59 = vmul.f32 %v2006_v57, %v6257_v43  ;;  %5655 = vmatmul.msk.bf16.vlgmr.msra.gmra.mxu0 %vm126_vm3, %v1863_v29  ;;  %5656 = vmatmul.msk.bf16.vlgmr.msra.gmra.mxu1 %vm126_vm3, %v1863_v29  ;;  %v2108_v29 = vpack.c.bf16 %v2104_v0, %v2104_v0 }
 0x3aa   :  { %1966 = vmatpush.bf16.msrb.mxu1 %v1938_v45  ;;  %1953 = vmatpush.bf16.msrb.mxu0 %v1935_v10  ;;  %v1999_v23 = vpop.permute.xlu1 %1998  ;;  %v2191_v45 = vpop.permute.xlu2 %2190 }
 0x3ab   :  { %2068 = vmatpush.bf16.msra.mxu2 %v2030_v63  ;;  %v2017_v30 = vpack.c.bf16 %v2013_v59, %v2013_v59  ;;  %v2008_v28 = vsel %vm272_vm0, %v1999_v23, %v2001_v51  ;;  %v2009_v62 = vsel %vm272_vm0, %v2005_v56, %v1999_v23  ;;  %v2120_v34 = vsel %vm130_vm2, %v2108_v29, 0 }
 0x3ac   :  { %v2010_v21 = vmul.f32 %v2009_v62, %v6255_v42  ;;  %v2011_v52 = vmul.f32 %v2008_v28, %v6253_v41 }
 0x3ad   :  { %v2033_v61 = vsel %vm130_vm2, %v2017_v30, 0 }
 0x3ae   :  { %2081 = vmatpush.bf16.msra.mxu3 %v2033_v61  ;;  %v2014_v49 = vpack.c.bf16 %v2010_v21, %v2010_v21  ;;  %v2015_v18 = vpack.c.bf16 %v2011_v52, %v2011_v52  ;;  %v5663_v52 = vld [vmem:[%s8154_s6 + $0x4] sm:$0xf] }
 0x3af   :  { %v2096_v60 = vpop.permute.xlu0 %2095 }
 0x3b0   :  { %v2100_v19 = vsel %vm377_vm4, %v2094_v24, %v2096_v60  ;;  %v2024_v35 = vsel %vm130_vm2, %v2014_v49, 0  ;;  %v2027_v3 = vsel %vm130_vm2, %v2015_v18, 0 }
 0x3b1   :  { %v2105_v32 = vmul.f32 %v2100_v19, %v6286_v1  ;;  %2042 = vmatpush.bf16.msra.mxu0 %v2024_v35  ;;  %2055 = vmatpush.bf16.msra.mxu1 %v2027_v3 }
 0x3b2   :  { %v2098_v27 = vpop.permute.xlu1 %2097  ;;  %v2282_v19 = vpop.permute.xlu2 %2281 }
 0x3b3   :  { %v2109_v22 = vpack.c.bf16 %v2105_v32, %v2105_v32  ;;  %v2099_v33 = vsel %vm377_vm4, %v2096_v60, %v2098_v27  ;;  %v2102_v24 = vsel %vm377_vm4, %v2098_v27, %v2092_v31 }
 0x3b4   :  { %v2103_v25 = vmul.f32 %v2102_v24, %v6293_v4  ;;  %v2106_v36 = vmul.f32 %v2099_v33, %v6298_v8  ;;  %5661 = vmatmul.msk.bf16.vlgmr.msrb.gmra.mxu2 %vm126_vm3, %v5654_v55  ;;  %5662 = vmatmul.msk.bf16.vlgmr.msrb.gmra.mxu3 %vm126_vm3, %v5654_v55 }
 0x3b5   :  { %v2123_v26 = vsel %vm130_vm2, %v2109_v22, 0 }
 0x3b6   :  { %2161 = vmatpush.bf16.msrb.mxu2 %v2123_v26  ;;  %v2107_v20 = vpack.c.bf16 %v2103_v25, %v2103_v25  ;;  %v2110_v51 = vpack.c.bf16 %v2106_v36, %v2106_v36 }
 0x3b7   :  { %v2187_v58 = vpop.permute.xlu0 %2186 }
 0x3b8   :  { %v2117_v39 = vsel %vm130_vm2, %v2107_v20, 0  ;;  %v2126_v53 = vsel %vm130_vm2, %v2110_v51, 0 }
 0x3b9   :  { %5659 = vmatmul.msk.bf16.vlgmr.msrb.gmra.mxu0 %vm126_vm3, %v5654_v55  ;;  %5660 = vmatmul.msk.bf16.vlgmr.msrb.gmra.mxu1 %vm126_vm3, %v5654_v55 }
 0x3ba   :  { %2148 = vmatpush.bf16.msrb.mxu1 %v2120_v34  ;;  %2135 = vmatpush.bf16.msrb.mxu0 %v2117_v39  ;;  %v2189_v10 = vpop.permute.xlu1 %2188  ;;  %v2371_v25 = vpop.permute.xlu2 %2370 }
 0x3bb   :  { %2174 = vmatpush.bf16.msrb.mxu3 %v2126_v53  ;;  %v2192_v54 = vsel %vm482_vm5, %v2189_v10, %v2191_v45  ;;  %v2193_v56 = vsel %vm482_vm5, %v2187_v58, %v2189_v10 }
 0x3bc   :  { %v2198_v57 = vmul.f32 %v2193_v56, %v6326_v37  ;;  %v2199_v59 = vmul.f32 %v2192_v54, %v6334_v44 }
 0x3be   :  { %v2202_v23 = vpack.c.bf16 %v2198_v57, %v2198_v57  ;;  %v2203_v28 = vpack.c.bf16 %v2199_v59, %v2199_v59 }
 0x3bf   :  { %v2185_v63 = vpop.permute.xlu0 %2184 }
 0x3c0   :  { %v2194_v31 = vsel %vm482_vm5, %v2185_v63, %v2187_v58  ;;  %v2195_v30 = vsel %vm482_vm5, %v2191_v45, %v2185_v63  ;;  %v2216_v18 = vsel %vm130_vm2, %v2202_v23, 0  ;;  %v2219_v60 = vsel %vm130_vm2, %v2203_v28, 0  ;;  %v5668_v58 = vld [vmem:[%s8154_s6 + $0x8] sm:$0xf] }
 0x3c1   :  { %v2196_v62 = vmul.f32 %v2195_v30, %v6332_v40  ;;  %v2197_v21 = vmul.f32 %v2194_v31, %v6328_v38 }
 0x3c2   :  { %v2278_v61 = vpop.permute.xlu1 %2277  ;;  %v2373_v31 = vpop.permute.xlu2 %2372 }
 0x3c3   :  { %v2200_v5 = vpack.c.bf16 %v2196_v62, %v2196_v62  ;;  %v2201_v49 = vpack.c.bf16 %v2197_v21, %v2197_v21  ;;  %v2380_v28 = vsel %vm692_vm7, %v2371_v25, %v2373_v31 }
 0x3c4   :  { %5666 = vmatmul.msk.bf16.vlgmr.msra.gmra.mxu2 %vm126_vm3, %v5663_v52  ;;  %5667 = vmatmul.msk.bf16.vlgmr.msra.gmra.mxu3 %vm126_vm3, %v5663_v52  ;;  %v2382_v21 = vmul.f32 %v2380_v28, %v6396_v46 }
 0x3c5   :  { %2254 = vmatpush.bf16.msra.mxu2 %v2216_v18  ;;  %2267 = vmatpush.bf16.msra.mxu3 %v2219_v60  ;;  %v2210_v32 = vsel %vm130_vm2, %v2200_v5, 0  ;;  %v2213_v35 = vsel %vm130_vm2, %v2201_v49, 0  ;;  %v5673_v18 = vld [vmem:[%s8154_s6 + $0xc] sm:$0xf] }
 0x3c6   :  { %v2386_v60 = vpack.c.bf16 %v2382_v21, %v2382_v21 }
 0x3c7   :  { %v2284_v0 = vpop.permute.xlu0 %2283 }
 0x3c8   :  { %v2285_v3 = vsel %vm587_vm6, %v2282_v19, %v2284_v0  ;;  %v2288_v55 = vsel %vm587_vm6, %v2284_v0, %v2278_v61 }
 0x3c9   :  { %5664 = vmatmul.msk.bf16.vlgmr.msra.gmra.mxu0 %vm126_vm3, %v5663_v52  ;;  %5665 = vmatmul.msk.bf16.vlgmr.msra.gmra.mxu1 %vm126_vm3, %v5663_v52  ;;  %v2291_v27 = vmul.f32 %v2285_v3, %v6367_v11  ;;  %v2292_v33 = vmul.f32 %v2288_v55, %v6361_v6  ;;  %v2396_v55 = vsel %vm130_vm2, %v2386_v60, 0 }
 0x3ca   :  { %2228 = vmatpush.bf16.msra.mxu0 %v2210_v32  ;;  %2241 = vmatpush.bf16.msra.mxu1 %v2213_v35  ;;  %v2280_v22 = vpop.permute.xlu1 %2279  ;;  %v2470_v3 = vpop.permute.xlu2 %2469 }
 0x3cb   :  { %v2286_v24 = vsel %vm587_vm6, %v2280_v22, %v2282_v19  ;;  %v2287_v29 = vsel %vm587_vm6, %v2278_v61, %v2280_v22  ;;  %v2295_v36 = vpack.c.bf16 %v2291_v27, %v2291_v27  ;;  %v2296_v26 = vpack.c.bf16 %v2292_v33, %v2292_v33 }
 0x3cc   :  { %v2289_v20 = vmul.f32 %v2287_v29, %v6363_v7  ;;  %v2290_v51 = vmul.f32 %v2286_v24, %v6369_v13  ;;  %v8275_v29 = vld [vmem:[#allocation34_spill] sm:$0xff] }
 0x3cd   :  { %v2309_v53 = vsel %vm130_vm2, %v2295_v36, 0  ;;  %v2312_v45 = vsel %vm130_vm2, %v2296_v26, 0  ;;  %v8276_v36 = vld [vmem:[#allocation36_spill] sm:$0xff] }
 0x3ce   :  { %v2293_v34 = vpack.c.bf16 %v2289_v20, %v2289_v20  ;;  %v2294_v39 = vpack.c.bf16 %v2290_v51, %v2290_v51 }
 0x3cf   :  { %v2375_v10 = vpop.permute.xlu0 %2374 }
 0x3d0   :  { %v2303_v56 = vsel %vm130_vm2, %v2293_v34, 0  ;;  %v2306_v57 = vsel %vm130_vm2, %v2294_v39, 0  ;;  %v2379_v62 = vsel %vm692_vm7, %v2373_v31, %v2375_v10  ;;  %v8277_v39 = vld [vmem:[#allocation33_spill] sm:$0xff] }
 0x3d1   :  { %v2383_v52 = vmul.f32 %v2379_v62, %v6400_v48 }
 0x3d2   :  { %v2377_v54 = vpop.permute.xlu1 %2376 }
 0x3d3   :  { %v2378_v59 = vsel %vm692_vm7, %v2375_v10, %v2377_v54  ;;  %v2381_v63 = vsel %vm692_vm7, %v2377_v54, %v2371_v25  ;;  %v2387_v19 = vpack.c.bf16 %v2383_v52, %v2383_v52 }
 0x3d4   :  { %5671 = vmatmul.msk.bf16.vlgmr.msrb.gmra.mxu2 %vm126_vm3, %v5668_v58  ;;  %5672 = vmatmul.msk.bf16.vlgmr.msrb.gmra.mxu3 %vm126_vm3, %v5668_v58  ;;  %v2384_v30 = vmul.f32 %v2378_v59, %v6404_v50  ;;  %v2385_v23 = vmul.f32 %v2381_v63, %v6398_v47 }
 0x3d5   :  { %2347 = vmatpush.bf16.msrb.mxu2 %v2309_v53  ;;  %2360 = vmatpush.bf16.msrb.mxu3 %v2312_v45  ;;  %v2399_v22 = vsel %vm130_vm2, %v2387_v19, 0  ;;  %v8278_v45 = vld [vmem:[#allocation35_spill] sm:$0xff] }
 0x3d6   :  { %v2388_v61 = vpack.c.bf16 %v2384_v30, %v2384_v30  ;;  %v2389_v5 = vpack.c.bf16 %v2385_v23, %v2385_v23  ;;  %v2561_v23 = vpop.permute.xlu2 %2560 }
 0x3d7   :  { %v2464_v49 = vpop.permute.xlu0 %2463 }
 0x3d8   :  { %v2402_v0 = vsel %vm130_vm2, %v2388_v61, 0  ;;  %v2405_v32 = vsel %vm130_vm2, %v2389_v5, 0  ;;  %v2474_v27 = vsel %vm797_vm8, %v2470_v3, %v2464_v49  ;;  %v8279_v5 = vld [vmem:[#allocation40_spill] sm:$0xff] }
 0x3d9   :  { %5669 = vmatmul.msk.bf16.vlgmr.msrb.gmra.mxu0 %vm126_vm3, %v5668_v58  ;;  %5670 = vmatmul.msk.bf16.vlgmr.msrb.gmra.mxu1 %vm126_vm3, %v5668_v58  ;;  %v2478_v25 = vmul.f32 %v2474_v27, %v8275_v29 }
 0x3da   :  { %2321 = vmatpush.bf16.msrb.mxu0 %v2303_v56  ;;  %2334 = vmatpush.bf16.msrb.mxu1 %v2306_v57  ;;  %v2468_v35 = vpop.permute.xlu1 %2467  ;;  %v5678_v56 = vld [vmem:[%s8154_s6 + $0x14] sm:$0xf] }
 0x3db   :  { %v2471_v33 = vsel %vm797_vm8, %v2468_v35, %v2470_v3  ;;  %v2482_v58 = vpack.c.bf16 %v2478_v25, %v2478_v25  ;;  %v8281_v3 = vld [vmem:[#allocation38_spill] sm:$0xff] }
 0x3dc   :  { %v2477_v26 = vmul.f32 %v2471_v33, %v8276_v36  ;;  %v5683_v33 = vld [vmem:[%s8154_s6 + $0x18] sm:$0xf] }
 0x3dd   :  { %v2498_v31 = vsel %vm130_vm2, %v2482_v58, 0 }
 0x3de   :  { %v2481_v34 = vpack.c.bf16 %v2477_v26, %v2477_v26 }
 0x3df   :  { %v2466_v24 = vpop.permute.xlu0 %2465 }
 0x3e0   :  { %v2472_v20 = vsel %vm797_vm8, %v2466_v24, %v2468_v35  ;;  %v2473_v51 = vsel %vm797_vm8, %v2464_v49, %v2466_v24  ;;  %v2495_v63 = vsel %vm130_vm2, %v2481_v34, 0  ;;  %v5688_v34 = vld [vmem:[%s8154_s6 + $0x1c] sm:$0xf] }
 0x3e1   :  { %v2475_v53 = vmul.f32 %v2473_v51, %v8277_v39  ;;  %v2476_v10 = vmul.f32 %v2472_v20, %v8278_v45  ;;  %v2653_v39 = vpop.permute.xlu2 %2652 }
 0x3e2   :  { %v2557_v54 = vpop.permute.xlu1 %2556 }
 0x3e3   :  { %v2479_v57 = vpack.c.bf16 %v2475_v53, %v2475_v53  ;;  %v2480_v59 = vpack.c.bf16 %v2476_v10, %v2476_v10  ;;  %v5693_v53 = vld [vmem:[%s8154_s6 + $0x20] sm:$0xf] }
 0x3e4   :  { %5676 = vmatmul.msk.bf16.vlgmr.msra.gmra.mxu2 %vm126_vm3, %v5673_v18  ;;  %5677 = vmatmul.msk.bf16.vlgmr.msra.gmra.mxu3 %vm126_vm3, %v5673_v18 }
 0x3e5   :  { %2440 = vmatpush.bf16.msra.mxu2 %v2402_v0  ;;  %2453 = vmatpush.bf16.msra.mxu3 %v2405_v32  ;;  %v2489_v28 = vsel %vm130_vm2, %v2479_v57, 0  ;;  %v2492_v62 = vsel %vm130_vm2, %v2480_v59, 0 }
 0x3e7   :  { %v2563_v30 = vpop.permute.xlu0 %2562 }
 0x3e8   :  { %v2564_v21 = vsel %vm902_vm9, %v2561_v23, %v2563_v30  ;;  %v2567_v52 = vsel %vm902_vm9, %v2563_v30, %v2557_v54 }
 0x3e9   :  { %5674 = vmatmul.msk.bf16.vlgmr.msra.gmra.mxu0 %vm126_vm3, %v5673_v18  ;;  %5675 = vmatmul.msk.bf16.vlgmr.msra.gmra.mxu1 %vm126_vm3, %v5673_v18  ;;  %v2570_v49 = vmul.f32 %v2564_v21, %v8279_v5  ;;  %v8280_v18 = vld [vmem:[#allocation37_spill] sm:$0xff] }
 0x3ea   :  { %2414 = vmatpush.bf16.msra.mxu0 %v2396_v55  ;;  %2427 = vmatpush.bf16.msra.mxu1 %v2399_v22  ;;  %v2559_v61 = vpop.permute.xlu1 %2558  ;;  %v2571_v60 = vmul.f32 %v2567_v52, %v8280_v18  ;;  %v8282_v22 = vld [vmem:[#allocation39_spill] sm:$0xff] }
 0x3eb   :  { %v2565_v19 = vsel %vm902_vm9, %v2559_v61, %v2561_v23  ;;  %v2566_v0 = vsel %vm902_vm9, %v2557_v54, %v2559_v61  ;;  %v2574_v32 = vpack.c.bf16 %v2570_v49, %v2570_v49 }
 0x3ec   :  { %v2575_v35 = vpack.c.bf16 %v2571_v60, %v2571_v60  ;;  %v2568_v55 = vmul.f32 %v2566_v0, %v8281_v3  ;;  %v2569_v27 = vmul.f32 %v2565_v19, %v8282_v22 }
 0x3ed   :  { %v2588_v26 = vsel %vm130_vm2, %v2574_v32, 0 }
 0x3ee   :  { %v2572_v24 = vpack.c.bf16 %v2568_v55, %v2568_v55  ;;  %v2573_v25 = vpack.c.bf16 %v2569_v27, %v2569_v27  ;;  %v2591_v20 = vsel %vm130_vm2, %v2575_v35, 0 }
 0x3f0   :  { %v2582_v51 = vsel %vm130_vm2, %v2572_v24, 0  ;;  %v2585_v58 = vsel %vm130_vm2, %v2573_v25, 0 }
 0x3f4   :  { %5681 = vmatmul.msk.bf16.vlgmr.msrb.gmra.mxu2 %vm126_vm3, %v5678_v56  ;;  %5682 = vmatmul.msk.bf16.vlgmr.msrb.gmra.mxu3 %vm126_vm3, %v5678_v56 }
 0x3f5   :  { %2533 = vmatpush.bf16.msrb.mxu2 %v2495_v63  ;;  %2546 = vmatpush.bf16.msrb.mxu3 %v2498_v31 }
 0x3f9   :  { %5679 = vmatmul.msk.bf16.vlgmr.msrb.gmra.mxu0 %vm126_vm3, %v5678_v56  ;;  %5680 = vmatmul.msk.bf16.vlgmr.msrb.gmra.mxu1 %vm126_vm3, %v5678_v56 }
 0x3fa   :  { %2507 = vmatpush.bf16.msrb.mxu0 %v2489_v28  ;;  %2520 = vmatpush.bf16.msrb.mxu1 %v2492_v62 }
 0x404   :  { %5686 = vmatmul.msk.bf16.vlgmr.msra.gmra.mxu2 %vm126_vm3, %v5683_v33  ;;  %5687 = vmatmul.msk.bf16.vlgmr.msra.gmra.mxu3 %vm126_vm3, %v5683_v33 }
 0x405   :  { %2626 = vmatpush.bf16.msra.mxu2 %v2588_v26  ;;  %2639 = vmatpush.bf16.msra.mxu3 %v2591_v20 }
 0x409   :  { %5684 = vmatmul.msk.bf16.vlgmr.msra.gmra.mxu0 %vm126_vm3, %v5683_v33  ;;  %5685 = vmatmul.msk.bf16.vlgmr.msra.gmra.mxu1 %vm126_vm3, %v5683_v33 }
 0x40a   :  { %2600 = vmatpush.bf16.msra.mxu0 %v2582_v51  ;;  %2613 = vmatpush.bf16.msra.mxu1 %v2585_v58 }
 0x414   :  { %5691 = vmatmul.msk.bf16.vlgmr.msrb.gmra.mxu2 %vm126_vm3, %v5688_v34  ;;  %5692 = vmatmul.msk.bf16.vlgmr.msrb.gmra.mxu3 %vm126_vm3, %v5688_v34 }
 0x419   :  { %5689 = vmatmul.msk.bf16.vlgmr.msrb.gmra.mxu0 %vm126_vm3, %v5688_v34  ;;  %5690 = vmatmul.msk.bf16.vlgmr.msrb.gmra.mxu1 %vm126_vm3, %v5688_v34 }
 0x424   :  { %5696 = vmatmul.msk.bf16.vlgmr.msra.gmra.mxu2 %vm126_vm3, %v5693_v53  ;;  %5697 = vmatmul.msk.bf16.vlgmr.msra.gmra.mxu3 %vm126_vm3, %v5693_v53 }
 0x426   :  { %v1888_v10 = vpop.f32.mrf.mxu0  ;;  %v1901_v54 = vpop.f32.mrf.mxu1 }
 0x427   :  { %v1914_v56 = vpop.f32.mrf.mxu2  ;;  %v1927_v57 = vpop.f32.mrf.mxu3 }
 0x429   :  { %5694 = vmatmul.msk.bf16.vlgmr.msra.gmra.mxu0 %vm126_vm3, %v5693_v53  ;;  %5695 = vmatmul.msk.bf16.vlgmr.msra.gmra.mxu1 %vm126_vm3, %v5693_v53 }
 0x42e   :  { %v1890_v59 = vpop.f32.mrf.mxu0  ;;  %v1903_v63 = vpop.f32.mrf.mxu1 }
 0x42f   :  { %v1916_v31 = vpop.f32.mrf.mxu2  ;;  %v1929_v30 = vpop.f32.mrf.mxu3 }
 0x436   :  { %v1955_v23 = vpop.f32.mrf.mxu0  ;;  %v1968_v28 = vpop.f32.mrf.mxu1 }
 0x437   :  { %v1956_v62 = vadd.f32 %v1955_v23, %v1888_v10  ;;  %v1969_v21 = vadd.f32 %v1968_v28, %v1901_v54  ;;  %v1981_v52 = vpop.f32.mrf.mxu2  ;;  %v1994_v61 = vpop.f32.mrf.mxu3 }
 0x438   :  { %v1982_v49 = vadd.f32 %v1981_v52, %v1914_v56  ;;  %v1995_v60 = vadd.f32 %v1994_v61, %v1927_v57 }
 0x43e   :  { %v1957_v19 = vpop.f32.mrf.mxu0  ;;  %v1970_v0 = vpop.f32.mrf.mxu1 }
 0x43f   :  { %v1983_v32 = vpop.f32.mrf.mxu2  ;;  %v1996_v35 = vpop.f32.mrf.mxu3 }
 0x446   :  { %v2044_v55 = vpop.f32.mrf.mxu0  ;;  %v2057_v27 = vpop.f32.mrf.mxu1 }
 0x447   :  { %v2087_v33 = vadd.f32 %v2044_v55, %v1956_v62  ;;  %v2088_v24 = vadd.f32 %v2057_v27, %v1969_v21  ;;  %v2070_v25 = vpop.f32.mrf.mxu2  ;;  %v2083_v26 = vpop.f32.mrf.mxu3 }
 0x448   :  { %v2089_v20 = vadd.f32 %v2070_v25, %v1982_v49  ;;  %v2090_v51 = vadd.f32 %v2083_v26, %v1995_v60 }
 0x44e   :  { %v2046_v58 = vpop.f32.mrf.mxu0  ;;  %v2059_v34 = vpop.f32.mrf.mxu1 }
 0x44f   :  { %v2072_v53 = vpop.f32.mrf.mxu2  ;;  %v2085_v10 = vpop.f32.mrf.mxu3 }
 0x456   :  { %v2137_v54 = vpop.f32.mrf.mxu0  ;;  %v2150_v59 = vpop.f32.mrf.mxu1 }
 0x457   :  { %v2180_v56 = vadd.f32 %v2137_v54, %v2087_v33  ;;  %v2181_v57 = vadd.f32 %v2150_v59, %v2088_v24  ;;  %v2163_v63 = vpop.f32.mrf.mxu2  ;;  %v2176_v31 = vpop.f32.mrf.mxu3 }
 0x458   :  { %v2182_v30 = vadd.f32 %v2163_v63, %v2089_v20  ;;  %v2183_v23 = vadd.f32 %v2176_v31, %v2090_v51 }
 0x45e   :  { %v2139_v28 = vpop.f32.mrf.mxu0  ;;  %v2152_v52 = vpop.f32.mrf.mxu1 }
 0x45f   :  { %v2165_v62 = vpop.f32.mrf.mxu2  ;;  %v2178_v21 = vpop.f32.mrf.mxu3 }
 0x466   :  { %v2230_v61 = vpop.f32.mrf.mxu0  ;;  %v2243_v19 = vpop.f32.mrf.mxu1 }
 0x467   :  { %v2273_v49 = vadd.f32 %v2230_v61, %v2180_v56  ;;  %v2256_v60 = vpop.f32.mrf.mxu2  ;;  %v2269_v0 = vpop.f32.mrf.mxu3 }
 0x46e   :  { %v2232_v32 = vpop.f32.mrf.mxu0  ;;  %v2245_v35 = vpop.f32.mrf.mxu1 }
 0x46f   :  { %v2258_v55 = vpop.f32.mrf.mxu2  ;;  %v2271_v27 = vpop.f32.mrf.mxu3 }
 0x470   :  { %v2274_v55 = vadd.f32 %v2243_v19, %v2181_v57 }
 0x476   :  { %v2323_v25 = vpop.f32.mrf.mxu0  ;;  %v2336_v33 = vpop.f32.mrf.mxu1 }
 0x477   :  { %v2349_v24 = vpop.f32.mrf.mxu2  ;;  %v2362_v26 = vpop.f32.mrf.mxu3  ;;  %v2366_v5 = vadd.f32 %v2323_v25, %v2273_v49 }
 0x47e   :  { %v2325_v58 = vpop.f32.mrf.mxu0  ;;  %v2338_v20 = vpop.f32.mrf.mxu1 }
 0x47f   :  { %v2351_v51 = vpop.f32.mrf.mxu2  ;;  %v2364_v34 = vpop.f32.mrf.mxu3  ;;  %v2275_v20 = vadd.f32 %v2256_v60, %v2182_v30 }
 0x480   :  { %v2276_v51 = vadd.f32 %v2269_v0, %v2183_v23  ;;  %v2367_v34 = vadd.f32 %v2336_v33, %v2274_v55 }
 0x481   :  { %v2368_v22 = vadd.f32 %v2349_v24, %v2275_v20 }
 0x482   :  { %v2369_v3 = vadd.f32 %v2362_v26, %v2276_v51 }
 0x486   :  { %v2416_v53 = vpop.f32.mrf.mxu0  ;;  %v2429_v10 = vpop.f32.mrf.mxu1 }
 0x487   :  { %v2442_v54 = vpop.f32.mrf.mxu2  ;;  %v2455_v59 = vpop.f32.mrf.mxu3  ;;  %v2460_v18 = vadd.f32 %v2429_v10, %v2367_v34  ;;  %v2459_v36 = vadd.f32 %v2416_v53, %v2366_v5 }
 0x48e   :  { %v2418_v63 = vpop.f32.mrf.mxu0  ;;  %v2431_v56 = vpop.f32.mrf.mxu1 }
 0x48f   :  { %v2444_v31 = vpop.f32.mrf.mxu2  ;;  %v2457_v28 = vpop.f32.mrf.mxu3  ;;  %v2461_v63 = vadd.f32 %v2442_v54, %v2368_v22  ;;  %v2462_v56 = vadd.f32 %v2455_v59, %v2369_v3 }
 0x496   :  { %v2509_v52 = vpop.f32.mrf.mxu0  ;;  %v2522_v62 = vpop.f32.mrf.mxu1 }
 0x497   :  { %v2535_v21 = vpop.f32.mrf.mxu2  ;;  %v2548_v61 = vpop.f32.mrf.mxu3  ;;  %v2553_v31 = vadd.f32 %v2522_v62, %v2460_v18 }
 0x498   :  { %v2554_v29 = vadd.f32 %v2535_v21, %v2461_v63 }
 0x49e   :  { %v2511_v32 = vpop.f32.mrf.mxu0  ;;  %v2524_v35 = vpop.f32.mrf.mxu1 }
 0x49f   :  { %v2537_v27 = vpop.f32.mrf.mxu2  ;;  %v2550_v58 = vpop.f32.mrf.mxu3  ;;  %v2555_v32 = vadd.f32 %v2548_v61, %v2462_v56 }
 0x4a0   :  { %v2552_v27 = vadd.f32 %v2509_v52, %v2459_v36 }
 0x4a6   :  { %v2602_v28 = vpop.f32.mrf.mxu0  ;;  %v2615_v45 = vpop.f32.mrf.mxu1 }
 0x4a7   :  { %v2646_v35 = vadd.f32 %v2615_v45, %v2553_v31  ;;  %v2628_v57 = vpop.f32.mrf.mxu2  ;;  %v2641_v19 = vpop.f32.mrf.mxu3  ;;  %v2645_v0 = vadd.f32 %v2602_v28, %v2552_v27 }
 0x4a8   :  { %v2647_v23 = vadd.f32 %v2628_v57, %v2554_v29  ;;  %v2648_v60 = vadd.f32 %v2641_v19, %v2555_v32 }
 0x4a9   :  { %v2656_v30 = vadd.f32 %v2653_v39, %v2646_v35  ;;  %v2655_v45 = vadd.f32 %v2653_v39, %v2645_v0  ;;  %v2689_v35 = vld [vmem:[%s8156_s8] sm:$0xf] }
 0x4aa   :  { %v2657_v49 = vadd.f32 %v2653_v39, %v2647_v23  ;;  %v2658_v22 = vadd.f32 %v2653_v39, %v2648_v60  ;;  %v3475_v39 = vld [vmem:[%s8157_s9] sm:$0xff] }
 0x4ab   :  { %v7040_v33 = vmax.f32 %v2656_v30, 0.0  ;;  %v7049_v24 = vmax.f32 %v2655_v45, 0.0 }
 0x4ac   :  { %v7042_v3 = vmax.f32 %v2657_v49, 0.0  ;;  %v2662_v18 = vmax.f32 %v2658_v22, 0.0 }
 0x4ad   :  { %2671 = vrot.lane.b32.xlu0 %v7040_v33, %s6022_s5  ;;  %v2666_v60 = vpack.c.bf16 %v7040_v33, %v7040_v33  ;;  %v2665_v0 = vpack.c.bf16 %v7049_v24, %v7049_v24 }
 0x4ae   :  { %v2604_v5 = vpop.f32.mrf.mxu0  ;;  %v2617_v25 = vpop.f32.mrf.mxu1  ;;  %2675 = vrot.lane.b32.xlu2 %v2662_v18, %s6022_s5  ;;  %2673 = vrot.lane.b32.xlu1 %v7042_v3, %s6022_s5  ;;  %v2668_v61 = vpack.c.bf16 %v2662_v18, %v2662_v18  ;;  %v2667_v55 = vpack.c.bf16 %v7042_v3, %v7042_v3 }
 0x4af   :  { %v2630_v29 = vpop.f32.mrf.mxu2  ;;  %v2643_v36 = vpop.f32.mrf.mxu3  ;;  %v2761_v45 = vsel %vm130_vm2, %v2665_v0, 0 }
 0x4b0   :  { %v2770_v28 = vsel %vm130_vm2, %v2668_v61, 0  ;;  %v2767_v32 = vsel %vm130_vm2, %v2667_v55, 0 }
 0x4b5   :  { %2669 = vrot.lane.b32.xlu0 %v7049_v24, %s6022_s5 }
 0x4b6   :  { %2828 = vrot.lane.b32.xlu2 %v7042_v3, %s6023_s20  ;;  %2826 = vrot.lane.b32.xlu1 %v7040_v33, %s6023_s20 }
 0x4bd   :  { %2830 = vrot.lane.b32.xlu0 %v2662_v18, %s6023_s20 }
 0x4be   :  { %2919 = vrot.lane.b32.xlu2 %v7040_v33, %s6024_s25  ;;  %2824 = vrot.lane.b32.xlu1 %v7049_v24, %s6023_s20 }
 0x4c5   :  { %2921 = vrot.lane.b32.xlu0 %v7042_v3, %s6024_s25 }
 0x4c6   :  { %2917 = vrot.lane.b32.xlu2 %v7049_v24, %s6024_s25  ;;  %2923 = vrot.lane.b32.xlu1 %v2662_v18, %s6024_s25 }
 0x4cd   :  { %3012 = vrot.lane.b32.xlu0 %v7040_v33, %s6025_s26 }
 0x4ce   :  { %3016 = vrot.lane.b32.xlu2 %v2662_v18, %s6025_s26  ;;  %3014 = vrot.lane.b32.xlu1 %v7042_v3, %s6025_s26 }
 0x4d5   :  { %3010 = vrot.lane.b32.xlu0 %v7049_v24, %s6025_s26 }
 0x4d6   :  { %3107 = vrot.lane.b32.xlu2 %v7042_v3, %s6026_s27  ;;  %3103 = vrot.lane.b32.xlu1 %v7049_v24, %s6026_s27 }
 0x4dd   :  { %3109 = vrot.lane.b32.xlu0 %v2662_v18, %s6026_s27 }
 0x4de   :  { %3196 = vrot.lane.b32.xlu2 %v7049_v24, %s6027_s28  ;;  %3105 = vrot.lane.b32.xlu1 %v7040_v33, %s6026_s27 }
 0x4e5   :  { %3200 = vrot.lane.b32.xlu0 %v7042_v3, %s6027_s28 }
 0x4e6   :  { %3198 = vrot.lane.b32.xlu2 %v7040_v33, %s6027_s28  ;;  %3202 = vrot.lane.b32.xlu1 %v2662_v18, %s6027_s28 }
 0x4ed   :  { %3289 = vrot.lane.b32.xlu0 %v7049_v24, %s6028_s29 }
 0x4ee   :  { %3295 = vrot.lane.b32.xlu2 %v2662_v18, %s6028_s29  ;;  %3293 = vrot.lane.b32.xlu1 %v7042_v3, %s6028_s29 }
 0x4f5   :  { %3291 = vrot.lane.b32.xlu0 %v7040_v33, %s6028_s29 }
 0x4f6   :  { %3386 = vrot.lane.b32.xlu2 %v7042_v3, %s6029_s30  ;;  %3382 = vrot.lane.b32.xlu1 %v7049_v24, %s6029_s30 }
 0x4fd   :  { %3388 = vrot.lane.b32.xlu0 %v2662_v18, %s6029_s30 }
 0x4fe   :  { %3478 = vperm.xlu2 %5953, %v3475_v39   ;;  %3384 = vrot.lane.b32.xlu1 %v7040_v33, %s6029_s30  ;;  %v2764_v33 = vsel %vm130_vm2, %v2666_v60, 0 }
 0x508   :  { %v2676_v26 = vpop.permute.xlu2 %2675 }
 0x510   :  { %v2829_v53 = vpop.permute.xlu2 %2828 }
 0x518   :  { %v2920_v57 = vpop.permute.xlu2 %2919 }
 0x51f   :  { %v2672_v10 = vpop.permute.xlu0 %2671 }
 0x520   :  { %v2674_v54 = vpop.permute.xlu1 %2673 }
 0x521   :  { %v2677_v59 = vsel %vm103_vm1, %v2674_v54, %v2676_v26  ;;  %v2678_v52 = vsel %vm103_vm1, %v2672_v10, %v2674_v54 }
 0x522   :  { %v2683_v62 = vmul.f32 %v2678_v52, %v6224_v16  ;;  %v2684_v21 = vmul.f32 %v2677_v59, %v6226_v17  ;;  %v2918_v59 = vpop.permute.xlu2 %2917 }
 0x524   :  { %v2687_v58 = vpack.c.bf16 %v2683_v62, %v2683_v62  ;;  %v2688_v20 = vpack.c.bf16 %v2684_v21, %v2684_v21 }
 0x526   :  { %v2700_v34 = vsel %vm130_vm2, %v2687_v58, 0  ;;  %v2703_v63 = vsel %vm130_vm2, %v2688_v20, 0  ;;  %v2927_v58 = vsel %vm377_vm4, %v2918_v59, %v2920_v57 }
 0x527   :  { %v2670_v51 = vpop.permute.xlu0 %2669  ;;  %2738 = vmatpush.bf16.msrb.mxu2 %v2700_v34  ;;  %2751 = vmatpush.bf16.msrb.mxu3 %v2703_v63 }
 0x528   :  { %v2679_v56 = vsel %vm103_vm1, %v2670_v51, %v2672_v10  ;;  %v2680_v31 = vsel %vm103_vm1, %v2676_v26, %v2670_v51  ;;  %v2827_v30 = vpop.permute.xlu1 %2826 }
 0x529   :  { %v2681_v19 = vmul.f32 %v2680_v31, %v6220_v14  ;;  %v2682_v27 = vmul.f32 %v2679_v56, %v6222_v15  ;;  %v2833_v23 = vsel %vm272_vm0, %v2827_v30, %v2829_v53  ;;  %v5698_v56 = vld [vmem:[%s8156_s8 + $0x10] sm:$0xf]  ;;  %v2930_v31 = vmul.f32 %v2927_v58, %v6288_v2 }
 0x52a   :  { %v2838_v3 = vmul.f32 %v2833_v23, %v6215_v12  ;;  %5701 = vmatmul.msk.bf16.vlgmr.msrb.gmra.mxu2 %vm126_vm3, %v2689_v35  ;;  %5702 = vmatmul.msk.bf16.vlgmr.msrb.gmra.mxu3 %vm126_vm3, %v2689_v35 }
 0x52b   :  { %2818 = vmatpush.bf16.msra.mxu3 %v2770_v28  ;;  %2805 = vmatpush.bf16.msra.mxu2 %v2767_v32  ;;  %v2685_v49 = vpack.c.bf16 %v2681_v19, %v2681_v19  ;;  %v2686_v22 = vpack.c.bf16 %v2682_v27, %v2682_v27  ;;  %v2934_v23 = vpack.c.bf16 %v2930_v31, %v2930_v31 }
 0x52c   :  { %v2842_v18 = vpack.c.bf16 %v2838_v3, %v2838_v3 }
 0x52d   :  { %v2694_v5 = vsel %vm130_vm2, %v2685_v49, 0  ;;  %v2697_v25 = vsel %vm130_vm2, %v2686_v22, 0 }
 0x52e   :  { %2712 = vmatpush.bf16.msrb.mxu0 %v2694_v5  ;;  %2725 = vmatpush.bf16.msrb.mxu1 %v2697_v25  ;;  %v2856_v36 = vsel %vm130_vm2, %v2842_v18, 0  ;;  %v3017_v5 = vpop.permute.xlu2 %3016 }
 0x52f   :  { %v2831_v29 = vpop.permute.xlu0 %2830  ;;  %2894 = vmatpush.bf16.msrb.mxu2 %v2856_v36 }
 0x530   :  { %v2832_v24 = vsel %vm272_vm0, %v2829_v53, %v2831_v29  ;;  %v2825_v26 = vpop.permute.xlu1 %2824 }
 0x531   :  { %v2839_v39 = vmul.f32 %v2832_v24, %v6257_v43  ;;  %5699 = vmatmul.msk.bf16.vlgmr.msrb.gmra.mxu0 %vm126_vm3, %v2689_v35  ;;  %5700 = vmatmul.msk.bf16.vlgmr.msrb.gmra.mxu1 %vm126_vm3, %v2689_v35  ;;  %v2834_v10 = vsel %vm272_vm0, %v2825_v26, %v2827_v30  ;;  %v2835_v54 = vsel %vm272_vm0, %v2831_v29, %v2825_v26 }
 0x532   :  { %2792 = vmatpush.bf16.msra.mxu1 %v2764_v33  ;;  %2779 = vmatpush.bf16.msra.mxu0 %v2761_v45  ;;  %v2836_v62 = vmul.f32 %v2835_v54, %v6255_v42  ;;  %v2837_v53 = vmul.f32 %v2834_v10, %v6253_v41  ;;  %v2946_v33 = vsel %vm130_vm2, %v2934_v23, 0 }
 0x533   :  { %v2843_v52 = vpack.c.bf16 %v2839_v39, %v2839_v39 }
 0x534   :  { %v2840_v21 = vpack.c.bf16 %v2836_v62, %v2836_v62  ;;  %v2841_v61 = vpack.c.bf16 %v2837_v53, %v2837_v53 }
 0x535   :  { %v2859_v55 = vsel %vm130_vm2, %v2843_v52, 0  ;;  %v5707_v52 = vld [vmem:[%s8156_s8 + $0x4] sm:$0xf] }
 0x536   :  { %2907 = vmatpush.bf16.msrb.mxu3 %v2859_v55  ;;  %v2850_v51 = vsel %vm130_vm2, %v2840_v21, 0  ;;  %v2853_v34 = vsel %vm130_vm2, %v2841_v61, 0 }
 0x537   :  { %v2922_v20 = vpop.permute.xlu0 %2921  ;;  %2868 = vmatpush.bf16.msrb.mxu0 %v2850_v51  ;;  %2881 = vmatpush.bf16.msrb.mxu1 %v2853_v34  ;;  %v3108_v51 = vpop.permute.xlu2 %3107 }
 0x538   :  { %v2926_v63 = vsel %vm377_vm4, %v2920_v57, %v2922_v20  ;;  %v2924_v32 = vpop.permute.xlu1 %2923 }
 0x539   :  { %v2931_v28 = vmul.f32 %v2926_v63, %v6286_v1  ;;  %v2925_v35 = vsel %vm377_vm4, %v2922_v20, %v2924_v32  ;;  %v2928_v19 = vsel %vm377_vm4, %v2924_v32, %v2918_v59 }
 0x53a   :  { %v2929_v57 = vmul.f32 %v2928_v19, %v6293_v4  ;;  %v2932_v30 = vmul.f32 %v2925_v35, %v6298_v8  ;;  %5705 = vmatmul.msk.bf16.vlgmr.msra.gmra.mxu2 %vm126_vm3, %v5698_v56  ;;  %5706 = vmatmul.msk.bf16.vlgmr.msra.gmra.mxu3 %vm126_vm3, %v5698_v56 }
 0x53b   :  { %v2935_v27 = vpack.c.bf16 %v2931_v28, %v2931_v28 }
 0x53c   :  { %v2933_v60 = vpack.c.bf16 %v2929_v57, %v2929_v57  ;;  %v2936_v0 = vpack.c.bf16 %v2932_v30, %v2932_v30 }
 0x53d   :  { %v2949_v49 = vsel %vm130_vm2, %v2935_v27, 0 }
 0x53e   :  { %2987 = vmatpush.bf16.msra.mxu2 %v2949_v49  ;;  %v2952_v3 = vsel %vm130_vm2, %v2936_v0, 0  ;;  %v2943_v18 = vsel %vm130_vm2, %v2933_v60, 0  ;;  %v5712_v60 = vld [vmem:[%s8156_s8 + $0x8] sm:$0xf] }
 0x53f   :  { %v3013_v22 = vpop.permute.xlu0 %3012  ;;  %3000 = vmatpush.bf16.msra.mxu3 %v2952_v3  ;;  %v3197_v0 = vpop.permute.xlu2 %3196 }
 0x540   :  { %v3015_v25 = vpop.permute.xlu1 %3014 }
 0x541   :  { %5703 = vmatmul.msk.bf16.vlgmr.msra.gmra.mxu0 %vm126_vm3, %v5698_v56  ;;  %5704 = vmatmul.msk.bf16.vlgmr.msra.gmra.mxu1 %vm126_vm3, %v5698_v56  ;;  %v3018_v45 = vsel %vm482_vm5, %v3015_v25, %v3017_v5  ;;  %v3019_v29 = vsel %vm482_vm5, %v3013_v22, %v3015_v25 }
 0x542   :  { %2961 = vmatpush.bf16.msra.mxu0 %v2943_v18  ;;  %2974 = vmatpush.bf16.msra.mxu1 %v2946_v33  ;;  %v3024_v36 = vmul.f32 %v3019_v29, %v6326_v37  ;;  %v3025_v24 = vmul.f32 %v3018_v45, %v6334_v44 }
 0x544   :  { %v3028_v39 = vpack.c.bf16 %v3024_v36, %v3024_v36  ;;  %v3029_v26 = vpack.c.bf16 %v3025_v24, %v3025_v24 }
 0x546   :  { %v3042_v61 = vsel %vm130_vm2, %v3028_v39, 0  ;;  %v3045_v55 = vsel %vm130_vm2, %v3029_v26, 0 }
 0x547   :  { %v3011_v10 = vpop.permute.xlu0 %3010  ;;  %v3199_v26 = vpop.permute.xlu2 %3198 }
 0x548   :  { %v3020_v54 = vsel %vm482_vm5, %v3011_v10, %v3013_v22  ;;  %v3021_v59 = vsel %vm482_vm5, %v3017_v5, %v3011_v10  ;;  %v3104_v21 = vpop.permute.xlu1 %3103 }
 0x549   :  { %v3022_v62 = vmul.f32 %v3021_v59, %v6332_v40  ;;  %v3023_v53 = vmul.f32 %v3020_v54, %v6328_v38  ;;  %v3206_v59 = vsel %vm692_vm7, %v3197_v0, %v3199_v26 }
 0x54a   :  { %5710 = vmatmul.msk.bf16.vlgmr.msrb.gmra.mxu2 %vm126_vm3, %v5707_v52  ;;  %5711 = vmatmul.msk.bf16.vlgmr.msrb.gmra.mxu3 %vm126_vm3, %v5707_v52 }
 0x54b   :  { %3080 = vmatpush.bf16.msrb.mxu2 %v3042_v61  ;;  %3093 = vmatpush.bf16.msrb.mxu3 %v3045_v55  ;;  %v3026_v58 = vpack.c.bf16 %v3022_v62, %v3022_v62  ;;  %v3027_v20 = vpack.c.bf16 %v3023_v53, %v3023_v53  ;;  %v3208_v61 = vmul.f32 %v3206_v59, %v6396_v46 }
 0x54d   :  { %v3036_v31 = vsel %vm130_vm2, %v3026_v58, 0  ;;  %v3039_v28 = vsel %vm130_vm2, %v3027_v20, 0 }
 0x54f   :  { %v3110_v34 = vpop.permute.xlu0 %3109 }
 0x550   :  { %v3111_v63 = vsel %vm587_vm6, %v3108_v51, %v3110_v34  ;;  %v3114_v56 = vsel %vm587_vm6, %v3110_v34, %v3104_v21  ;;  %v3106_v19 = vpop.permute.xlu1 %3105  ;;  %v3212_v34 = vpack.c.bf16 %v3208_v61, %v3208_v61 }
 0x551   :  { %5708 = vmatmul.msk.bf16.vlgmr.msrb.gmra.mxu0 %vm126_vm3, %v5707_v52  ;;  %5709 = vmatmul.msk.bf16.vlgmr.msrb.gmra.mxu1 %vm126_vm3, %v5707_v52  ;;  %v3117_v32 = vmul.f32 %v3111_v63, %v6367_v11  ;;  %v3118_v35 = vmul.f32 %v3114_v56, %v6361_v6  ;;  %v3112_v27 = vsel %vm587_vm6, %v3106_v19, %v3108_v51 }
 0x552   :  { %3054 = vmatpush.bf16.msrb.mxu0 %v3036_v31  ;;  %3067 = vmatpush.bf16.msrb.mxu1 %v3039_v28  ;;  %v3113_v57 = vsel %vm587_vm6, %v3104_v21, %v3106_v19  ;;  %v3116_v22 = vmul.f32 %v3112_v27, %v6369_v13  ;;  %v5717_v21 = vld [vmem:[%s8156_s8 + $0xc] sm:$0xf]  ;;  %v3296_v31 = vpop.permute.xlu2 %3295  ;;  %v8283_v27 = vld [vmem:[#allocation34_spill] sm:$0xff] }
 0x553   :  { %v3121_v30 = vpack.c.bf16 %v3117_v32, %v3117_v32  ;;  %v3122_v23 = vpack.c.bf16 %v3118_v35, %v3118_v35  ;;  %v3115_v49 = vmul.f32 %v3113_v57, %v6363_v7  ;;  %v3222_v35 = vsel %vm130_vm2, %v3212_v34, 0 }
 0x554   :  { %v3120_v25 = vpack.c.bf16 %v3116_v22, %v3116_v22 }
 0x555   :  { %v3135_v3 = vsel %vm130_vm2, %v3121_v30, 0  ;;  %v3138_v18 = vsel %vm130_vm2, %v3122_v23, 0  ;;  %v3119_v5 = vpack.c.bf16 %v3115_v49, %v3115_v49  ;;  %v8284_v30 = vld [vmem:[#allocation36_spill] sm:$0xff] }
 0x556   :  { %v3132_v39 = vsel %vm130_vm2, %v3120_v25, 0 }
 0x557   :  { %v3201_v45 = vpop.permute.xlu0 %3200  ;;  %v3129_v24 = vsel %vm130_vm2, %v3119_v5, 0  ;;  %v8285_v5 = vld [vmem:[#allocation33_spill] sm:$0xff] }
 0x558   :  { %v3203_v33 = vpop.permute.xlu1 %3202  ;;  %v3205_v52 = vsel %vm692_vm7, %v3199_v26, %v3201_v45 }
 0x559   :  { %v3204_v29 = vsel %vm692_vm7, %v3201_v45, %v3203_v33  ;;  %v3207_v36 = vsel %vm692_vm7, %v3203_v33, %v3197_v0  ;;  %v3209_v55 = vmul.f32 %v3205_v52, %v6400_v48  ;;  %v8286_v33 = vld [vmem:[#allocation35_spill] sm:$0xff] }
 0x55a   :  { %5715 = vmatmul.msk.bf16.vlgmr.msra.gmra.mxu2 %vm126_vm3, %v5712_v60  ;;  %5716 = vmatmul.msk.bf16.vlgmr.msra.gmra.mxu3 %vm126_vm3, %v5712_v60  ;;  %v3210_v10 = vmul.f32 %v3204_v29, %v6404_v50  ;;  %v3211_v54 = vmul.f32 %v3207_v36, %v6398_v47 }
 0x55b   :  { %3173 = vmatpush.bf16.msra.mxu2 %v3135_v3  ;;  %3186 = vmatpush.bf16.msra.mxu3 %v3138_v18  ;;  %v3213_v63 = vpack.c.bf16 %v3209_v55, %v3209_v55  ;;  %v5722_v18 = vld [vmem:[%s8156_s8 + $0x14] sm:$0xf]  ;;  %v8288_v55 = vld [vmem:[#allocation37_spill] sm:$0xff] }
 0x55c   :  { %v3214_v62 = vpack.c.bf16 %v3210_v10, %v3210_v10  ;;  %v3215_v53 = vpack.c.bf16 %v3211_v54, %v3211_v54  ;;  %v3387_v54 = vpop.permute.xlu2 %3386 }
 0x55d   :  { %v3225_v19 = vsel %vm130_vm2, %v3213_v63, 0 }
 0x55e   :  { %v3228_v20 = vsel %vm130_vm2, %v3214_v62, 0  ;;  %v3231_v51 = vsel %vm130_vm2, %v3215_v53, 0 }
 0x55f   :  { %v3290_v58 = vpop.permute.xlu0 %3289 }
 0x560   :  { %v3294_v56 = vpop.permute.xlu1 %3293  ;;  %v3300_v28 = vsel %vm797_vm8, %v3296_v31, %v3290_v58 }
 0x561   :  { %5713 = vmatmul.msk.bf16.vlgmr.msra.gmra.mxu0 %vm126_vm3, %v5712_v60  ;;  %5714 = vmatmul.msk.bf16.vlgmr.msra.gmra.mxu1 %vm126_vm3, %v5712_v60  ;;  %v3297_v32 = vsel %vm797_vm8, %v3294_v56, %v3296_v31  ;;  %v3304_v57 = vmul.f32 %v3300_v28, %v8283_v27  ;;  %v5727_v31 = vld [vmem:[%s8156_s8 + $0x18] sm:$0xf]  ;;  %v8289_v28 = vld [vmem:[#allocation38_spill] sm:$0xff] }
 0x562   :  { %3147 = vmatpush.bf16.msra.mxu0 %v3129_v24  ;;  %3160 = vmatpush.bf16.msra.mxu1 %v3132_v39  ;;  %v3303_v23 = vmul.f32 %v3297_v32, %v8284_v30 }
 0x563   :  { %v3308_v22 = vpack.c.bf16 %v3304_v57, %v3304_v57 }
 0x564   :  { %v3307_v3 = vpack.c.bf16 %v3303_v23, %v3303_v23 }
 0x565   :  { %v3324_v24 = vsel %vm130_vm2, %v3308_v22, 0 }
 0x566   :  { %v3321_v36 = vsel %vm130_vm2, %v3307_v3, 0  ;;  %v5732_v3 = vld [vmem:[%s8156_s8 + $0x1c] sm:$0xf] }
 0x567   :  { %v3292_v60 = vpop.permute.xlu0 %3291 }
 0x568   :  { %v3298_v0 = vsel %vm797_vm8, %v3292_v60, %v3294_v56  ;;  %v3299_v49 = vsel %vm797_vm8, %v3290_v58, %v3292_v60  ;;  %v3383_v29 = vpop.permute.xlu1 %3382 }
 0x569   :  { %v3301_v25 = vmul.f32 %v3299_v49, %v8285_v5  ;;  %v3302_v45 = vmul.f32 %v3298_v0, %v8286_v33 }
 0x56a   :  { %5720 = vmatmul.msk.bf16.vlgmr.msrb.gmra.mxu2 %vm126_vm3, %v5717_v21  ;;  %5721 = vmatmul.msk.bf16.vlgmr.msrb.gmra.mxu3 %vm126_vm3, %v5717_v21 }
 0x56b   :  { %3266 = vmatpush.bf16.msrb.mxu2 %v3228_v20  ;;  %3279 = vmatpush.bf16.msrb.mxu3 %v3231_v51  ;;  %v3305_v39 = vpack.c.bf16 %v3301_v25, %v3301_v25  ;;  %v3306_v26 = vpack.c.bf16 %v3302_v45, %v3302_v45 }
 0x56d   :  { %v3315_v62 = vsel %vm130_vm2, %v3305_v39, 0  ;;  %v3318_v53 = vsel %vm130_vm2, %v3306_v26, 0 }
 0x56f   :  { %v3389_v10 = vpop.permute.xlu0 %3388 }
 0x570   :  { %v3390_v59 = vsel %vm902_vm9, %v3387_v54, %v3389_v10  ;;  %v3393_v52 = vsel %vm902_vm9, %v3389_v10, %v3383_v29  ;;  %v3385_v20 = vpop.permute.xlu1 %3384 }
 0x571   :  { %5718 = vmatmul.msk.bf16.vlgmr.msrb.gmra.mxu0 %vm126_vm3, %v5717_v21  ;;  %5719 = vmatmul.msk.bf16.vlgmr.msrb.gmra.mxu1 %vm126_vm3, %v5717_v21  ;;  %v8287_v21 = vld [vmem:[#allocation40_spill] sm:$0xff]  ;;  %v3397_v58 = vmul.f32 %v3393_v52, %v8288_v55  ;;  %v3391_v51 = vsel %vm902_vm9, %v3385_v20, %v3387_v54  ;;  %v3392_v34 = vsel %vm902_vm9, %v3383_v29, %v3385_v20 }
 0x572   :  { %3240 = vmatpush.bf16.msrb.mxu0 %v3222_v35  ;;  %3253 = vmatpush.bf16.msrb.mxu1 %v3225_v19  ;;  %v3396_v61 = vmul.f32 %v3390_v59, %v8287_v21  ;;  %v3394_v32 = vmul.f32 %v3392_v34, %v8289_v28  ;;  %v8290_v35 = vld [vmem:[#allocation39_spill] sm:$0xff] }
 0x573   :  { %v3401_v56 = vpack.c.bf16 %v3397_v58, %v3397_v58  ;;  %v3395_v19 = vmul.f32 %v3391_v51, %v8290_v35 }
 0x574   :  { %v3400_v63 = vpack.c.bf16 %v3396_v61, %v3396_v61  ;;  %v3398_v60 = vpack.c.bf16 %v3394_v32, %v3394_v32 }
 0x575   :  { %v3417_v23 = vsel %vm130_vm2, %v3401_v56, 0  ;;  %v3399_v0 = vpack.c.bf16 %v3395_v19, %v3395_v19 }
 0x576   :  { %v3414_v57 = vsel %vm130_vm2, %v3400_v63, 0  ;;  %v3408_v49 = vsel %vm130_vm2, %v3398_v60, 0 }
 0x577   :  { %v3411_v22 = vsel %vm130_vm2, %v3399_v0, 0 }
 0x57a   :  { %5725 = vmatmul.msk.bf16.vlgmr.msra.gmra.mxu2 %vm126_vm3, %v5722_v18  ;;  %5726 = vmatmul.msk.bf16.vlgmr.msra.gmra.mxu3 %vm126_vm3, %v5722_v18 }
 0x57b   :  { %3359 = vmatpush.bf16.msra.mxu2 %v3321_v36  ;;  %3372 = vmatpush.bf16.msra.mxu3 %v3324_v24 }
 0x581   :  { %5723 = vmatmul.msk.bf16.vlgmr.msra.gmra.mxu0 %vm126_vm3, %v5722_v18  ;;  %5724 = vmatmul.msk.bf16.vlgmr.msra.gmra.mxu1 %vm126_vm3, %v5722_v18  ;;  %v5737_v18 = vld [vmem:[%s8156_s8 + $0x20] sm:$0xf] }
 0x582   :  { %3333 = vmatpush.bf16.msra.mxu0 %v3315_v62  ;;  %3346 = vmatpush.bf16.msra.mxu1 %v3318_v53 }
 0x58a   :  { %5730 = vmatmul.msk.bf16.vlgmr.msrb.gmra.mxu2 %vm126_vm3, %v5727_v31  ;;  %5731 = vmatmul.msk.bf16.vlgmr.msrb.gmra.mxu3 %vm126_vm3, %v5727_v31 }
 0x58b   :  { %3452 = vmatpush.bf16.msrb.mxu2 %v3414_v57  ;;  %3465 = vmatpush.bf16.msrb.mxu3 %v3417_v23 }
 0x591   :  { %5728 = vmatmul.msk.bf16.vlgmr.msrb.gmra.mxu0 %vm126_vm3, %v5727_v31  ;;  %5729 = vmatmul.msk.bf16.vlgmr.msrb.gmra.mxu1 %vm126_vm3, %v5727_v31 }
 0x592   :  { %3426 = vmatpush.bf16.msrb.mxu0 %v3408_v49  ;;  %3439 = vmatpush.bf16.msrb.mxu1 %v3411_v22 }
 0x59a   :  { %5735 = vmatmul.msk.bf16.vlgmr.msra.gmra.mxu2 %vm126_vm3, %v5732_v3  ;;  %5736 = vmatmul.msk.bf16.vlgmr.msra.gmra.mxu3 %vm126_vm3, %v5732_v3 }
 0x5a1   :  { %5733 = vmatmul.msk.bf16.vlgmr.msra.gmra.mxu0 %vm126_vm3, %v5732_v3  ;;  %5734 = vmatmul.msk.bf16.vlgmr.msra.gmra.mxu1 %vm126_vm3, %v5732_v3 }
 0x5aa   :  { %5740 = vmatmul.msk.bf16.vlgmr.msrb.gmra.mxu2 %vm126_vm3, %v5737_v18  ;;  %5741 = vmatmul.msk.bf16.vlgmr.msrb.gmra.mxu3 %vm126_vm3, %v5737_v18 }
 0x5ad   :  { %v2740_v29 = vpop.f32.mrf.mxu2  ;;  %v2753_v36 = vpop.f32.mrf.mxu3 }
 0x5ae   :  { %v2714_v25 = vpop.f32.mrf.mxu0  ;;  %v2727_v45 = vpop.f32.mrf.mxu1 }
 0x5b1   :  { %5738 = vmatmul.msk.bf16.vlgmr.msrb.gmra.mxu0 %vm126_vm3, %v5737_v18  ;;  %5739 = vmatmul.msk.bf16.vlgmr.msrb.gmra.mxu1 %vm126_vm3, %v5737_v18 }
 0x5b5   :  { %v2742_v26 = vpop.f32.mrf.mxu2  ;;  %v2755_v10 = vpop.f32.mrf.mxu3 }
 0x5b6   :  { %v2716_v24 = vpop.f32.mrf.mxu0  ;;  %v2729_v39 = vpop.f32.mrf.mxu1 }
 0x5bd   :  { %v2807_v53 = vpop.f32.mrf.mxu2  ;;  %v2820_v61 = vpop.f32.mrf.mxu3 }
 0x5be   :  { %v2781_v54 = vpop.f32.mrf.mxu0  ;;  %v2794_v59 = vpop.f32.mrf.mxu1  ;;  %v2808_v58 = vadd.f32 %v2807_v53, %v2740_v29  ;;  %v2821_v20 = vadd.f32 %v2820_v61, %v2753_v36 }
 0x5bf   :  { %v2782_v52 = vadd.f32 %v2781_v54, %v2714_v25  ;;  %v2795_v62 = vadd.f32 %v2794_v59, %v2727_v45 }
 0x5c5   :  { %v2809_v63 = vpop.f32.mrf.mxu2  ;;  %v2822_v56 = vpop.f32.mrf.mxu3 }
 0x5c6   :  { %v2783_v51 = vpop.f32.mrf.mxu0  ;;  %v2796_v34 = vpop.f32.mrf.mxu1 }
 0x5cd   :  { %v2896_v23 = vpop.f32.mrf.mxu2  ;;  %v2909_v60 = vpop.f32.mrf.mxu3 }
 0x5ce   :  { %v2870_v31 = vpop.f32.mrf.mxu0  ;;  %v2883_v32 = vpop.f32.mrf.mxu1  ;;  %v2915_v0 = vadd.f32 %v2896_v23, %v2808_v58  ;;  %v2916_v49 = vadd.f32 %v2909_v60, %v2821_v20 }
 0x5cf   :  { %v2913_v19 = vadd.f32 %v2870_v31, %v2782_v52  ;;  %v2914_v57 = vadd.f32 %v2883_v32, %v2795_v62 }
 0x5d5   :  { %v2898_v18 = vpop.f32.mrf.mxu2  ;;  %v2911_v25 = vpop.f32.mrf.mxu3 }
 0x5d6   :  { %v2872_v22 = vpop.f32.mrf.mxu0  ;;  %v2885_v3 = vpop.f32.mrf.mxu1 }
 0x5dd   :  { %v2989_v39 = vpop.f32.mrf.mxu2  ;;  %v3002_v26 = vpop.f32.mrf.mxu3 }
 0x5de   :  { %v2963_v45 = vpop.f32.mrf.mxu0  ;;  %v2976_v24 = vpop.f32.mrf.mxu1  ;;  %v3008_v10 = vadd.f32 %v2989_v39, %v2915_v0  ;;  %v3009_v54 = vadd.f32 %v3002_v26, %v2916_v49 }
 0x5df   :  { %v3006_v29 = vadd.f32 %v2963_v45, %v2913_v19  ;;  %v3007_v36 = vadd.f32 %v2976_v24, %v2914_v57 }
 0x5e5   :  { %v2991_v52 = vpop.f32.mrf.mxu2  ;;  %v3004_v62 = vpop.f32.mrf.mxu3 }
 0x5e6   :  { %v2965_v59 = vpop.f32.mrf.mxu0  ;;  %v2978_v53 = vpop.f32.mrf.mxu1 }
 0x5ed   :  { %v3082_v20 = vpop.f32.mrf.mxu2  ;;  %v3095_v34 = vpop.f32.mrf.mxu3 }
 0x5ee   :  { %v3056_v61 = vpop.f32.mrf.mxu0  ;;  %v3069_v51 = vpop.f32.mrf.mxu1 }
 0x5ef   :  { %v3099_v58 = vadd.f32 %v3056_v61, %v3006_v29 }
 0x5f5   :  { %v3084_v31 = vpop.f32.mrf.mxu2  ;;  %v3097_v32 = vpop.f32.mrf.mxu3 }
 0x5f6   :  { %v3058_v63 = vpop.f32.mrf.mxu0  ;;  %v3071_v56 = vpop.f32.mrf.mxu1  ;;  %v3100_v31 = vadd.f32 %v3069_v51, %v3007_v36 }
 0x5f7   :  { %v3479_v51 = vpop.permute.xlu2 %3478 }
 0x5fd   :  { %v3175_v57 = vpop.f32.mrf.mxu2  ;;  %v3188_v60 = vpop.f32.mrf.mxu3 }
 0x5fe   :  { %v3149_v23 = vpop.f32.mrf.mxu0  ;;  %v3162_v19 = vpop.f32.mrf.mxu1 }
 0x605   :  { %v3177_v49 = vpop.f32.mrf.mxu2  ;;  %v3190_v3 = vpop.f32.mrf.mxu3 }
 0x606   :  { %v3151_v22 = vpop.f32.mrf.mxu0  ;;  %v3164_v0 = vpop.f32.mrf.mxu1  ;;  %v3102_v49 = vadd.f32 %v3095_v34, %v3009_v54  ;;  %v3193_v3 = vadd.f32 %v3162_v19, %v3100_v31 }
 0x607   :  { %v3101_v0 = vadd.f32 %v3082_v20, %v3008_v10 }
 0x608   :  { %v3195_v28 = vadd.f32 %v3188_v60, %v3102_v49 }
 0x609   :  { %v3194_v35 = vadd.f32 %v3175_v57, %v3101_v0 }
 0x60d   :  { %v3268_v45 = vpop.f32.mrf.mxu2  ;;  %v3281_v24 = vpop.f32.mrf.mxu3 }
 0x60e   :  { %v3242_v18 = vpop.f32.mrf.mxu0  ;;  %v3255_v25 = vpop.f32.mrf.mxu1  ;;  %v3287_v21 = vadd.f32 %v3268_v45, %v3194_v35 }
 0x60f   :  { %v3286_v55 = vadd.f32 %v3255_v25, %v3193_v3 }
 0x615   :  { %v3270_v26 = vpop.f32.mrf.mxu2  ;;  %v3283_v59 = vpop.f32.mrf.mxu3 }
 0x616   :  { %v3244_v39 = vpop.f32.mrf.mxu0  ;;  %v3257_v29 = vpop.f32.mrf.mxu1 }
 0x617   :  { %v3288_v39 = vadd.f32 %v3281_v24, %v3195_v28  ;;  %v3192_v29 = vadd.f32 %v3149_v23, %v3099_v58 }
 0x619   :  { %v3285_v30 = vadd.f32 %v3242_v18, %v3192_v29 }
 0x61d   :  { %v3361_v62 = vpop.f32.mrf.mxu2  ;;  %v3374_v61 = vpop.f32.mrf.mxu3 }
 0x61e   :  { %v3335_v53 = vpop.f32.mrf.mxu0  ;;  %v3348_v52 = vpop.f32.mrf.mxu1  ;;  %v3380_v59 = vadd.f32 %v3361_v62, %v3287_v21  ;;  %v3381_v33 = vadd.f32 %v3374_v61, %v3288_v39  ;;  %v5925_v39 = vld [vmem:[%s8158_s10] sm:$0xff] }
 0x61f   :  { %v3379_v26 = vadd.f32 %v3348_v52, %v3286_v55  ;;  %v3378_v54 = vadd.f32 %v3335_v53, %v3285_v30 }
 0x625   :  { %v3363_v32 = vpop.f32.mrf.mxu2  ;;  %v3376_v22 = vpop.f32.mrf.mxu3 }
 0x626   :  { %v3337_v63 = vpop.f32.mrf.mxu0  ;;  %v3350_v56 = vpop.f32.mrf.mxu1 }
 0x62d   :  { %v3454_v56 = vpop.f32.mrf.mxu2  ;;  %v3467_v36 = vpop.f32.mrf.mxu3 }
 0x62e   :  { %v3428_v5 = vpop.f32.mrf.mxu0  ;;  %v3441_v27 = vpop.f32.mrf.mxu1  ;;  %v3473_v32 = vadd.f32 %v3454_v56, %v3380_v59  ;;  %v3474_v10 = vadd.f32 %v3467_v36, %v3381_v33 }
 0x62f   :  { %v3472_v63 = vadd.f32 %v3441_v27, %v3379_v26  ;;  %v3471_v57 = vadd.f32 %v3428_v5, %v3378_v54  ;;  %v4419_v5 = vld [vmem:[%s8159_s11] sm:$0xff] }
 0x630   :  { %v3483_v34 = vadd.f32 %v3479_v51, %v3473_v32  ;;  %v3484_v19 = vadd.f32 %v3479_v51, %v3474_v10 }
 0x631   :  { %v3482_v20 = vadd.f32 %v3479_v51, %v3472_v63  ;;  %v3481_v58 = vadd.f32 %v3479_v51, %v3471_v57 }
 0x632   :  { %v3487_v28 = vmax.f32 %v3483_v34, 0.0  ;;  %v3488_v55 = vmax.f32 %v3484_v19, 0.0 }
 0x633   :  { %v7306_v35 = vmax.f32 %v3482_v20, 0.0  ;;  %v7312_v23 = vmax.f32 %v3481_v58, 0.0 }
 0x634   :  { %3502 = vrot.lane.b32.xlu2 %v3488_v55, %s6022_s5  ;;  %3500 = vrot.lane.b32.xlu1 %v3487_v28, %s6022_s5  ;;  %v3495_v61 = vpack.c.bf16 %v3488_v55, %v3488_v55  ;;  %v3494_v31 = vpack.c.bf16 %v3487_v28, %v3487_v28 }
 0x635   :  { %3498 = vrot.lane.b32.xlu0 %v7306_v35, %s6022_s5  ;;  %v3456_v33 = vpop.f32.mrf.mxu2  ;;  %v3469_v30 = vpop.f32.mrf.mxu3  ;;  %v3493_v34 = vpack.c.bf16 %v7306_v35, %v7306_v35 }
 0x636   :  { %v3430_v27 = vpop.f32.mrf.mxu0  ;;  %v3443_v21 = vpop.f32.mrf.mxu1  ;;  %v3612_v29 = vsel %vm130_vm2, %v3495_v61, 0  ;;  %v3609_v26 = vsel %vm130_vm2, %v3494_v31, 0 }
 0x637   :  { %v3606_v33 = vsel %vm130_vm2, %v3493_v34, 0 }
 0x63c   :  { %3674 = vrot.lane.b32.xlu2 %v3487_v28, %s6023_s20  ;;  %3672 = vrot.lane.b32.xlu1 %v7306_v35, %s6023_s20 }
 0x63d   :  { %3496 = vrot.lane.b32.xlu0 %v7312_v23, %s6022_s5 }
 0x644   :  { %3779 = vrot.lane.b32.xlu2 %v7306_v35, %s6024_s25  ;;  %3670 = vrot.lane.b32.xlu1 %v7312_v23, %s6023_s20 }
 0x645   :  { %3676 = vrot.lane.b32.xlu0 %v3488_v55, %s6023_s20 }
 0x64c   :  { %3777 = vrot.lane.b32.xlu2 %v7312_v23, %s6024_s25  ;;  %3783 = vrot.lane.b32.xlu1 %v3488_v55, %s6024_s25 }
 0x64d   :  { %3781 = vrot.lane.b32.xlu0 %v3487_v28, %s6024_s25 }
 0x654   :  { %3890 = vrot.lane.b32.xlu2 %v3488_v55, %s6025_s26  ;;  %3888 = vrot.lane.b32.xlu1 %v3487_v28, %s6025_s26 }
 0x655   :  { %3886 = vrot.lane.b32.xlu0 %v7306_v35, %s6025_s26 }
 0x65c   :  { %3995 = vrot.lane.b32.xlu2 %v3487_v28, %s6026_s27  ;;  %3991 = vrot.lane.b32.xlu1 %v7312_v23, %s6026_s27 }
 0x65d   :  { %3884 = vrot.lane.b32.xlu0 %v7312_v23, %s6025_s26 }
 0x664   :  { %4098 = vrot.lane.b32.xlu2 %v7312_v23, %s6027_s28  ;;  %3993 = vrot.lane.b32.xlu1 %v7306_v35, %s6026_s27 }
 0x665   :  { %3997 = vrot.lane.b32.xlu0 %v3488_v55, %s6026_s27 }
 0x66c   :  { %4100 = vrot.lane.b32.xlu2 %v7306_v35, %s6027_s28  ;;  %4104 = vrot.lane.b32.xlu1 %v3488_v55, %s6027_s28 }
 0x66d   :  { %4102 = vrot.lane.b32.xlu0 %v3487_v28, %s6027_s28 }
 0x674   :  { %4211 = vrot.lane.b32.xlu2 %v3488_v55, %s6028_s29  ;;  %4209 = vrot.lane.b32.xlu1 %v3487_v28, %s6028_s29 }
 0x675   :  { %4205 = vrot.lane.b32.xlu0 %v7312_v23, %s6028_s29 }
 0x67c   :  { %4316 = vrot.lane.b32.xlu2 %v3487_v28, %s6029_s30  ;;  %4312 = vrot.lane.b32.xlu1 %v7312_v23, %s6029_s30  ;;  %v3492_v28 = vpack.c.bf16 %v7312_v23, %v7312_v23 }
 0x67d   :  { %4207 = vrot.lane.b32.xlu0 %v7306_v35, %s6028_s29 }
 0x684   :  { %4423 = vperm.xlu2 %5953, %v4419_v5   ;;  %4314 = vrot.lane.b32.xlu1 %v7306_v35, %s6029_s30  ;;  %v3603_v35 = vsel %vm130_vm2, %v3492_v28, 0 }
 0x685   :  { %4318 = vrot.lane.b32.xlu0 %v3488_v55, %s6029_s30 }
 0x68e   :  { %v3503_v60 = vpop.permute.xlu2 %3502 }
 0x696   :  { %v3675_v18 = vpop.permute.xlu2 %3674 }
 0x69e   :  { %v3780_v51 = vpop.permute.xlu2 %3779 }
 0x6a6   :  { %v3501_v45 = vpop.permute.xlu1 %3500 }
 0x6a7   :  { %v3499_v25 = vpop.permute.xlu0 %3498  ;;  %v3504_v24 = vsel %vm103_vm1, %v3501_v45, %v3503_v60 }
 0x6a8   :  { %v3505_v53 = vsel %vm103_vm1, %v3499_v25, %v3501_v45  ;;  %v3511_v52 = vmul.f32 %v3504_v24, %v6226_v17 }
 0x6a9   :  { %v3510_v62 = vmul.f32 %v3505_v53, %v6224_v16 }
 0x6aa   :  { %v3515_v22 = vpack.c.bf16 %v3511_v52, %v3511_v52  ;;  %v3778_v52 = vpop.permute.xlu2 %3777 }
 0x6ab   :  { %v3514_v0 = vpack.c.bf16 %v3510_v62, %v3510_v62 }
 0x6ac   :  { %v3536_v3 = vsel %vm130_vm2, %v3515_v22, 0  ;;  %v3787_v22 = vsel %vm377_vm4, %v3778_v52, %v3780_v51 }
 0x6ad   :  { %v3533_v49 = vsel %vm130_vm2, %v3514_v0, 0  ;;  %3587 = vmatpush.bf16.msra.mxu3 %v3536_v3  ;;  %v5924_v3 = vld [vmem:[%s8158_s10 + $0x20] sm:$0xff] }
 0x6ae   :  { %3573 = vmatpush.bf16.msra.mxu2 %v3533_v49  ;;  %v3673_v63 = vpop.permute.xlu1 %3672 }
 0x6af   :  { %v3497_v59 = vpop.permute.xlu0 %3496  ;;  %v3679_v32 = vsel %vm272_vm0, %v3673_v63, %v3675_v18 }
 0x6b0   :  { %v3506_v56 = vsel %vm103_vm1, %v3497_v59, %v3499_v25  ;;  %v3507_v36 = vsel %vm103_vm1, %v3503_v60, %v3497_v59  ;;  %v3684_v20 = vmul.f32 %v3679_v32, %v6215_v12  ;;  %5751 = vmatmul.msk.bf16.vlgmr.msra.gmra.mxu3 %vm126_vm3, %v5925_v39  ;;  %v3790_v59 = vmul.f32 %v3787_v22, %v6288_v2 }
 0x6b1   :  { %3663 = vmatpush.bf16.msrb.mxu3 %v3612_v29  ;;  %v3508_v10 = vmul.f32 %v3507_v36, %v6220_v14  ;;  %v3509_v54 = vmul.f32 %v3506_v56, %v6222_v15  ;;  %5750 = vmatmul.msk.bf16.vlgmr.msra.gmra.mxu2 %vm126_vm3, %v5925_v39 }
 0x6b2   :  { %3649 = vmatpush.bf16.msrb.mxu2 %v3609_v26  ;;  %v3688_v55 = vpack.c.bf16 %v3684_v20, %v3684_v20  ;;  %v3794_v20 = vpack.c.bf16 %v3790_v59, %v3790_v59 }
 0x6b3   :  { %v3512_v19 = vpack.c.bf16 %v3508_v10, %v3508_v10  ;;  %v3513_v57 = vpack.c.bf16 %v3509_v54, %v3509_v54 }
 0x6b4   :  { %v3708_v58 = vsel %vm130_vm2, %v3688_v55, 0  ;;  %v3891_v55 = vpop.permute.xlu2 %3890 }
 0x6b5   :  { %v3527_v27 = vsel %vm130_vm2, %v3512_v19, 0  ;;  %v3530_v21 = vsel %vm130_vm2, %v3513_v57, 0 }
 0x6b6   :  { %3545 = vmatpush.bf16.msra.mxu0 %v3527_v27  ;;  %3559 = vmatpush.bf16.msra.mxu1 %v3530_v21  ;;  %v3671_v5 = vpop.permute.xlu1 %3670 }
 0x6b7   :  { %3748 = vmatpush.bf16.msra.mxu2 %v3708_v58  ;;  %v3677_v30 = vpop.permute.xlu0 %3676  ;;  %v3680_v60 = vsel %vm272_vm0, %v3671_v5, %v3673_v63 }
 0x6b8   :  { %v3678_v23 = vsel %vm272_vm0, %v3675_v18, %v3677_v30  ;;  %v3681_v25 = vsel %vm272_vm0, %v3677_v30, %v3671_v5  ;;  %v3683_v24 = vmul.f32 %v3680_v60, %v6253_v41  ;;  %v3812_v30 = vsel %vm130_vm2, %v3794_v20, 0 }
 0x6b9   :  { %v3685_v45 = vmul.f32 %v3678_v23, %v6257_v43  ;;  %5748 = vmatmul.msk.bf16.vlgmr.msra.gmra.mxu0 %vm126_vm3, %v5925_v39  ;;  %5749 = vmatmul.msk.bf16.vlgmr.msra.gmra.mxu1 %vm126_vm3, %v5925_v39  ;;  %v3682_v53 = vmul.f32 %v3681_v25, %v6255_v42  ;;  %v5926_v25 = vld [vmem:[%s8158_s10 + $0x8] sm:$0xff] }
 0x6ba   :  { %3635 = vmatpush.bf16.msrb.mxu1 %v3606_v33  ;;  %3621 = vmatpush.bf16.msrb.mxu0 %v3603_v35  ;;  %v3687_v18 = vpack.c.bf16 %v3683_v24, %v3683_v24 }
 0x6bb   :  { %v3689_v62 = vpack.c.bf16 %v3685_v45, %v3685_v45  ;;  %v3686_v61 = vpack.c.bf16 %v3682_v53, %v3682_v53 }
 0x6bc   :  { %v3705_v49 = vsel %vm130_vm2, %v3687_v18, 0 }
 0x6bd   :  { %v3711_v31 = vsel %vm130_vm2, %v3689_v62, 0  ;;  %v3702_v0 = vsel %vm130_vm2, %v3686_v61, 0 }
 0x6be   :  { %3762 = vmatpush.bf16.msra.mxu3 %v3711_v31  ;;  %3720 = vmatpush.bf16.msra.mxu0 %v3702_v0  ;;  %v3784_v29 = vpop.permute.xlu1 %3783 }
 0x6bf   :  { %3734 = vmatpush.bf16.msra.mxu1 %v3705_v49  ;;  %v3782_v39 = vpop.permute.xlu0 %3781  ;;  %v3788_v63 = vsel %vm377_vm4, %v3784_v29, %v3778_v52  ;;  %v3996_v49 = vpop.permute.xlu2 %3995 }
 0x6c0   :  { %v3786_v26 = vsel %vm377_vm4, %v3780_v51, %v3782_v39  ;;  %v3785_v56 = vsel %vm377_vm4, %v3782_v39, %v3784_v29  ;;  %v3789_v32 = vmul.f32 %v3788_v63, %v6293_v4  ;;  %5759 = vmatmul.msk.bf16.vlgmr.msrb.gmra.mxu3 %vm126_vm3, %v5924_v3 }
 0x6c1   :  { %v3791_v36 = vmul.f32 %v3786_v26, %v6286_v1  ;;  %v3792_v10 = vmul.f32 %v3785_v56, %v6298_v8  ;;  %5758 = vmatmul.msk.bf16.vlgmr.msrb.gmra.mxu2 %vm126_vm3, %v5924_v3 }
 0x6c2   :  { %v3793_v34 = vpack.c.bf16 %v3789_v32, %v3789_v32 }
 0x6c3   :  { %v3795_v54 = vpack.c.bf16 %v3791_v36, %v3791_v36  ;;  %v3796_v51 = vpack.c.bf16 %v3792_v10, %v3792_v10 }
 0x6c4   :  { %v3809_v33 = vsel %vm130_vm2, %v3793_v34, 0 }
 0x6c5   :  { %v3815_v19 = vsel %vm130_vm2, %v3795_v54, 0  ;;  %v3818_v57 = vsel %vm130_vm2, %v3796_v51, 0  ;;  %v5927_v51 = vld [vmem:[%s8158_s10 + $0x10] sm:$0xff] }
 0x6c6   :  { %3855 = vmatpush.bf16.msrb.mxu2 %v3815_v19  ;;  %3869 = vmatpush.bf16.msrb.mxu3 %v3818_v57  ;;  %v3889_v27 = vpop.permute.xlu1 %3888 }
 0x6c7   :  { %v3887_v28 = vpop.permute.xlu0 %3886  ;;  %v3892_v21 = vsel %vm482_vm5, %v3889_v27, %v3891_v55  ;;  %v4099_v34 = vpop.permute.xlu2 %4098 }
 0x6c8   :  { %v3893_v58 = vsel %vm482_vm5, %v3887_v28, %v3889_v27  ;;  %v3899_v35 = vmul.f32 %v3892_v21, %v6334_v44 }
 0x6c9   :  { %5756 = vmatmul.msk.bf16.vlgmr.msrb.gmra.mxu0 %vm126_vm3, %v5924_v3  ;;  %5757 = vmatmul.msk.bf16.vlgmr.msrb.gmra.mxu1 %vm126_vm3, %v5924_v3  ;;  %v3898_v5 = vmul.f32 %v3893_v58, %v6326_v37 }
 0x6ca   :  { %3827 = vmatpush.bf16.msrb.mxu0 %v3809_v33  ;;  %3841 = vmatpush.bf16.msrb.mxu1 %v3812_v30  ;;  %v3903_v23 = vpack.c.bf16 %v3899_v35, %v3899_v35 }
 0x6cb   :  { %v3902_v60 = vpack.c.bf16 %v3898_v5, %v3898_v5 }
 0x6cc   :  { %v3925_v31 = vsel %vm130_vm2, %v3903_v23, 0 }
 0x6cd   :  { %v3922_v61 = vsel %vm130_vm2, %v3902_v60, 0 }
 0x6ce   :  { %v3992_v24 = vpop.permute.xlu1 %3991 }
 0x6cf   :  { %v3885_v45 = vpop.permute.xlu0 %3884 }
 0x6d0   :  { %v3894_v53 = vsel %vm482_vm5, %v3885_v45, %v3887_v28  ;;  %v3895_v52 = vsel %vm482_vm5, %v3891_v55, %v3885_v45  ;;  %5769 = vmatmul.msk.bf16.vlgmr.msra.gmra.mxu3 %vm126_vm3, %v5926_v25  ;;  %v4101_v45 = vpop.permute.xlu2 %4100 }
 0x6d1   :  { %v3896_v62 = vmul.f32 %v3895_v52, %v6332_v40  ;;  %v3897_v18 = vmul.f32 %v3894_v53, %v6328_v38  ;;  %5768 = vmatmul.msk.bf16.vlgmr.msra.gmra.mxu2 %vm126_vm3, %v5926_v25  ;;  %3976 = vmatpush.bf16.msra.mxu3 %v3925_v31 }
 0x6d2   :  { %3962 = vmatpush.bf16.msra.mxu2 %v3922_v61 }
 0x6d3   :  { %v3900_v22 = vpack.c.bf16 %v3896_v62, %v3896_v62  ;;  %v3901_v0 = vpack.c.bf16 %v3897_v18, %v3897_v18  ;;  %v5928_v62 = vld [vmem:[%s8158_s10 + $0x18] sm:$0xff] }
 0x6d5   :  { %v3916_v26 = vsel %vm130_vm2, %v3900_v22, 0  ;;  %v3919_v36 = vsel %vm130_vm2, %v3901_v0, 0 }
 0x6d6   :  { %v3994_v59 = vpop.permute.xlu1 %3993 }
 0x6d7   :  { %v3998_v3 = vpop.permute.xlu0 %3997  ;;  %v4001_v32 = vsel %vm587_vm6, %v3992_v24, %v3994_v59  ;;  %v4000_v20 = vsel %vm587_vm6, %v3994_v59, %v3996_v49 }
 0x6d8   :  { %v3999_v39 = vsel %vm587_vm6, %v3996_v49, %v3998_v3  ;;  %v4002_v29 = vsel %vm587_vm6, %v3998_v3, %v3992_v24  ;;  %v4003_v19 = vmul.f32 %v4001_v32, %v6363_v7  ;;  %v4004_v57 = vmul.f32 %v4000_v20, %v6369_v13 }
 0x6d9   :  { %5766 = vmatmul.msk.bf16.vlgmr.msra.gmra.mxu0 %vm126_vm3, %v5926_v25  ;;  %v4005_v63 = vmul.f32 %v3999_v39, %v6367_v11  ;;  %v4006_v56 = vmul.f32 %v4002_v29, %v6361_v6  ;;  %5767 = vmatmul.msk.bf16.vlgmr.msra.gmra.mxu1 %vm126_vm3, %v5926_v25  ;;  %v4108_v24 = vsel %vm692_vm7, %v4099_v34, %v4101_v45  ;;  %v4212_v29 = vpop.permute.xlu2 %4211 }
 0x6da   :  { %3934 = vmatpush.bf16.msra.mxu0 %v3916_v26  ;;  %3948 = vmatpush.bf16.msra.mxu1 %v3919_v36  ;;  %v4007_v58 = vpack.c.bf16 %v4003_v19, %v4003_v19  ;;  %v4008_v33 = vpack.c.bf16 %v4004_v57, %v4004_v57  ;;  %v4110_v31 = vmul.f32 %v4108_v24, %v6396_v46  ;;  %v8291_v36 = vld [vmem:[#allocation36_spill] sm:$0xff] }
 0x6db   :  { %v4009_v10 = vpack.c.bf16 %v4005_v63, %v4005_v63  ;;  %v4010_v54 = vpack.c.bf16 %v4006_v56, %v4006_v56 }
 0x6dc   :  { %v4023_v5 = vsel %vm130_vm2, %v4007_v58, 0  ;;  %v4026_v25 = vsel %vm130_vm2, %v4008_v33, 0  ;;  %v4114_v39 = vpack.c.bf16 %v4110_v31, %v4110_v31  ;;  %v8294_v33 = vld [vmem:[#allocation35_spill] sm:$0xff] }
 0x6dd   :  { %v4029_v28 = vsel %vm130_vm2, %v4009_v10, 0  ;;  %v4032_v55 = vsel %vm130_vm2, %v4010_v54, 0  ;;  %v8292_v10 = vld [vmem:[#allocation34_spill] sm:$0xff] }
 0x6de   :  { %v4105_v27 = vpop.permute.xlu1 %4104  ;;  %v4130_v56 = vsel %vm130_vm2, %v4114_v39, 0 }
 0x6df   :  { %v4103_v21 = vpop.permute.xlu0 %4102  ;;  %v4109_v30 = vsel %vm692_vm7, %v4105_v27, %v4099_v34 }
 0x6e0   :  { %5779 = vmatmul.msk.bf16.vlgmr.msrb.gmra.mxu3 %vm126_vm3, %v5927_v51  ;;  %v4106_v35 = vsel %vm692_vm7, %v4103_v21, %v4105_v27  ;;  %v4113_v23 = vmul.f32 %v4109_v30, %v6398_v47  ;;  %v4107_v18 = vsel %vm692_vm7, %v4101_v45, %v4103_v21  ;;  %v8293_v21 = vld [vmem:[#allocation33_spill] sm:$0xff] }
 0x6e1   :  { %5778 = vmatmul.msk.bf16.vlgmr.msrb.gmra.mxu2 %vm126_vm3, %v5927_v51  ;;  %4083 = vmatpush.bf16.msrb.mxu3 %v4032_v55  ;;  %v4112_v60 = vmul.f32 %v4106_v35, %v6404_v50  ;;  %v4111_v22 = vmul.f32 %v4107_v18, %v6400_v48 }
 0x6e2   :  { %4069 = vmatpush.bf16.msrb.mxu2 %v4029_v28  ;;  %v4117_v53 = vpack.c.bf16 %v4113_v23, %v4113_v23  ;;  %v5929_v28 = vld [vmem:[%s8158_s10 + $0x28] sm:$0xff] }
 0x6e3   :  { %v4116_v52 = vpack.c.bf16 %v4112_v60, %v4112_v60  ;;  %v4115_v26 = vpack.c.bf16 %v4111_v22, %v4111_v22 }
 0x6e4   :  { %v4139_v49 = vsel %vm130_vm2, %v4117_v53, 0 }
 0x6e5   :  { %v4136_v0 = vsel %vm130_vm2, %v4116_v52, 0  ;;  %v4133_v20 = vsel %vm130_vm2, %v4115_v26, 0 }
 0x6e6   :  { %v4210_v3 = vpop.permute.xlu1 %4209 }
 0x6e7   :  { %v4206_v61 = vpop.permute.xlu0 %4205  ;;  %v4213_v59 = vsel %vm797_vm8, %v4210_v3, %v4212_v29 }
 0x6e8   :  { %v4216_v63 = vsel %vm797_vm8, %v4212_v29, %v4206_v61  ;;  %v4219_v32 = vmul.f32 %v4213_v59, %v8291_v36  ;;  %v5930_v29 = vld [vmem:[%s8158_s10 + $0x30] sm:$0xff]  ;;  %v8297_v59 = vld [vmem:[#allocation38_spill] sm:$0xff] }
 0x6e9   :  { %5776 = vmatmul.msk.bf16.vlgmr.msrb.gmra.mxu0 %vm126_vm3, %v5927_v51  ;;  %5777 = vmatmul.msk.bf16.vlgmr.msrb.gmra.mxu1 %vm126_vm3, %v5927_v51  ;;  %v4220_v54 = vmul.f32 %v4216_v63, %v8292_v10 }
 0x6ea   :  { %4041 = vmatpush.bf16.msrb.mxu0 %v4023_v5  ;;  %4055 = vmatpush.bf16.msrb.mxu1 %v4026_v25  ;;  %v4223_v34 = vpack.c.bf16 %v4219_v32, %v4219_v32  ;;  %v4317_v25 = vpop.permute.xlu2 %4316 }
 0x6eb   :  { %v4224_v19 = vpack.c.bf16 %v4220_v54, %v4220_v54 }
 0x6ec   :  { %v4243_v35 = vsel %vm130_vm2, %v4223_v34, 0 }
 0x6ed   :  { %v4246_v5 = vsel %vm130_vm2, %v4224_v19, 0 }
 0x6ee   :  { %v4313_v27 = vpop.permute.xlu1 %4312 }
 0x6ef   :  { %v4208_v51 = vpop.permute.xlu0 %4207 }
 0x6f0   :  { %5789 = vmatmul.msk.bf16.vlgmr.msra.gmra.mxu3 %vm126_vm3, %v5928_v62  ;;  %v4215_v57 = vsel %vm797_vm8, %v4206_v61, %v4208_v51  ;;  %v4214_v55 = vsel %vm797_vm8, %v4208_v51, %v4210_v3  ;;  %v8296_v61 = vld [vmem:[#allocation37_spill] sm:$0xff] }
 0x6f1   :  { %5788 = vmatmul.msk.bf16.vlgmr.msra.gmra.mxu2 %vm126_vm3, %v5928_v62  ;;  %4190 = vmatpush.bf16.msra.mxu3 %v4139_v49  ;;  %v4217_v58 = vmul.f32 %v4215_v57, %v8293_v21  ;;  %v4218_v30 = vmul.f32 %v4214_v55, %v8294_v33  ;;  %v4420_v55 = vld [vmem:[%s8159_s11 + $0x8] sm:$0xff] }
 0x6f2   :  { %4176 = vmatpush.bf16.msra.mxu2 %v4136_v0  ;;  %4428 = vperm.xlu0 %5954, %v4420_v55  }
 0x6f3   :  { %v4221_v60 = vpack.c.bf16 %v4217_v58, %v4217_v58  ;;  %v4222_v45 = vpack.c.bf16 %v4218_v30, %v4218_v30 }
 0x6f5   :  { %v4237_v52 = vsel %vm130_vm2, %v4221_v60, 0  ;;  %v4240_v22 = vsel %vm130_vm2, %v4222_v45, 0 }
 0x6f6   :  { %v4315_v0 = vpop.permute.xlu1 %4314 }
 0x6f7   :  { %v4319_v23 = vpop.permute.xlu0 %4318  ;;  %v4322_v49 = vsel %vm902_vm9, %v4313_v27, %v4315_v0  ;;  %v4321_v26 = vsel %vm902_vm9, %v4315_v0, %v4317_v25 }
 0x6f8   :  { %v4320_v24 = vsel %vm902_vm9, %v4317_v25, %v4319_v23  ;;  %v4323_v53 = vsel %vm902_vm9, %v4319_v23, %v4313_v27  ;;  %v4324_v63 = vmul.f32 %v4322_v49, %v8297_v59  ;;  %v5932_v27 = vld [vmem:[%s8158_s10 + $0x40] sm:$0xff] }
 0x6f9   :  { %5786 = vmatmul.msk.bf16.vlgmr.msra.gmra.mxu0 %vm126_vm3, %v5928_v62  ;;  %5787 = vmatmul.msk.bf16.vlgmr.msra.gmra.mxu1 %vm126_vm3, %v5928_v62  ;;  %v8295_v62 = vld [vmem:[#allocation40_spill] sm:$0xff]  ;;  %v4327_v31 = vmul.f32 %v4323_v53, %v8296_v61 }
 0x6fa   :  { %4148 = vmatpush.bf16.msra.mxu0 %v4130_v56  ;;  %4162 = vmatpush.bf16.msra.mxu1 %v4133_v20  ;;  %v4326_v18 = vmul.f32 %v4320_v24, %v8295_v62  ;;  %v8298_v56 = vld [vmem:[#allocation39_spill] sm:$0xff]  ;;  %v4328_v20 = vpack.c.bf16 %v4324_v63, %v4324_v63 }
 0x6fb   :  { %v4331_v39 = vpack.c.bf16 %v4327_v31, %v4327_v31  ;;  %v4325_v32 = vmul.f32 %v4321_v26, %v8298_v56 }
 0x6fc   :  { %v4330_v3 = vpack.c.bf16 %v4326_v18, %v4326_v18  ;;  %v4344_v19 = vsel %vm130_vm2, %v4328_v20, 0 }
 0x6fd   :  { %v4353_v51 = vsel %vm130_vm2, %v4331_v39, 0  ;;  %v4329_v34 = vpack.c.bf16 %v4325_v32, %v4325_v32 }
 0x6fe   :  { %v4350_v54 = vsel %vm130_vm2, %v4330_v3, 0 }
 0x6ff   :  { %v4347_v57 = vsel %vm130_vm2, %v4329_v34, 0 }
 0x700   :  { %5799 = vmatmul.msk.bf16.vlgmr.msrb.gmra.mxu3 %vm126_vm3, %v5929_v28 }
 0x701   :  { %5798 = vmatmul.msk.bf16.vlgmr.msrb.gmra.mxu2 %vm126_vm3, %v5929_v28  ;;  %4297 = vmatpush.bf16.msrb.mxu3 %v4246_v5 }
 0x702   :  { %4283 = vmatpush.bf16.msrb.mxu2 %v4243_v35 }
 0x709   :  { %5796 = vmatmul.msk.bf16.vlgmr.msrb.gmra.mxu0 %vm126_vm3, %v5929_v28  ;;  %5797 = vmatmul.msk.bf16.vlgmr.msrb.gmra.mxu1 %vm126_vm3, %v5929_v28  ;;  %v5931_v28 = vld [vmem:[%s8158_s10 + $0x38] sm:$0xff] }
 0x70a   :  { %4255 = vmatpush.bf16.msrb.mxu0 %v4237_v52  ;;  %4269 = vmatpush.bf16.msrb.mxu1 %v4240_v22 }
 0x710   :  { %5809 = vmatmul.msk.bf16.vlgmr.msra.gmra.mxu3 %vm126_vm3, %v5930_v29 }
 0x711   :  { %5808 = vmatmul.msk.bf16.vlgmr.msra.gmra.mxu2 %vm126_vm3, %v5930_v29  ;;  %4404 = vmatpush.bf16.msra.mxu3 %v4353_v51 }
 0x712   :  { %4390 = vmatpush.bf16.msra.mxu2 %v4350_v54 }
 0x719   :  { %5806 = vmatmul.msk.bf16.vlgmr.msra.gmra.mxu0 %vm126_vm3, %v5930_v29  ;;  %5807 = vmatmul.msk.bf16.vlgmr.msra.gmra.mxu1 %vm126_vm3, %v5930_v29 }
 0x71a   :  { %4362 = vmatpush.bf16.msra.mxu0 %v4344_v19  ;;  %4376 = vmatpush.bf16.msra.mxu1 %v4347_v57 }
 0x720   :  { %5819 = vmatmul.msk.bf16.vlgmr.msrb.gmra.mxu3 %vm126_vm3, %v5931_v28 }
 0x721   :  { %5818 = vmatmul.msk.bf16.vlgmr.msrb.gmra.mxu2 %vm126_vm3, %v5931_v28 }
 0x729   :  { %5816 = vmatmul.msk.bf16.vlgmr.msrb.gmra.mxu0 %vm126_vm3, %v5931_v28  ;;  %5817 = vmatmul.msk.bf16.vlgmr.msrb.gmra.mxu1 %vm126_vm3, %v5931_v28 }
 0x730   :  { %5829 = vmatmul.msk.bf16.vlgmr.msra.gmra.mxu3 %vm126_vm3, %v5932_v27 }
 0x731   :  { %5828 = vmatmul.msk.bf16.vlgmr.msra.gmra.mxu2 %vm126_vm3, %v5932_v27 }
 0x733   :  { %v3589_v30 = vpop.f32.mrf.mxu3 }
 0x734   :  { %v3575_v58 = vpop.f32.mrf.mxu2 }
 0x736   :  { %v3547_v35 = vpop.f32.mrf.mxu0  ;;  %v3561_v5 = vpop.f32.mrf.mxu1 }
 0x739   :  { %5826 = vmatmul.msk.bf16.vlgmr.msra.gmra.mxu0 %vm126_vm3, %v5932_v27  ;;  %5827 = vmatmul.msk.bf16.vlgmr.msra.gmra.mxu1 %vm126_vm3, %v5932_v27 }
 0x73b   :  { %v7565_v60 = vpop.f32.mrf.mxu3 }
 0x73c   :  { %v7563_v23 = vpop.f32.mrf.mxu2 }
 0x73e   :  { %v7567_v25 = vpop.f32.mrf.mxu0  ;;  %v7569_v45 = vpop.f32.mrf.mxu1 }
 0x743   :  { %v3665_v53 = vpop.f32.mrf.mxu3 }
 0x744   :  { %v3651_v24 = vpop.f32.mrf.mxu2  ;;  %v3666_v18 = vadd.f32 %v3665_v53, %v3589_v30 }
 0x745   :  { %v3652_v52 = vadd.f32 %v3651_v24, %v3575_v58 }
 0x746   :  { %v3623_v31 = vpop.f32.mrf.mxu0  ;;  %v3637_v22 = vpop.f32.mrf.mxu1 }
 0x747   :  { %v3624_v0 = vadd.f32 %v3623_v31, %v3547_v35  ;;  %v3638_v49 = vadd.f32 %v3637_v22, %v3561_v5 }
 0x74b   :  { %v7573_v39 = vpop.f32.mrf.mxu3 }
 0x74c   :  { %v7571_v3 = vpop.f32.mrf.mxu2 }
 0x74e   :  { %v7575_v29 = vpop.f32.mrf.mxu0  ;;  %v3639_v26 = vpop.f32.mrf.mxu1 }
 0x74f   :  { %v3640_v42 = vadd.f32 %v3639_v26, %v7569_v45  ;;  %v3626_v41 = vadd.f32 %v7575_v29, %v7567_v25 }
 0x753   :  { %v3764_v32 = vpop.f32.mrf.mxu3 }
 0x754   :  { %v3750_v63 = vpop.f32.mrf.mxu2  ;;  %v3772_v51 = vadd.f32 %v3764_v32, %v3666_v18 }
 0x755   :  { %v3771_v54 = vadd.f32 %v3750_v63, %v3652_v52 }
 0x756   :  { %v3722_v20 = vpop.f32.mrf.mxu0  ;;  %v3736_v19 = vpop.f32.mrf.mxu1 }
 0x757   :  { %v3769_v34 = vadd.f32 %v3722_v20, %v3624_v0  ;;  %v3770_v57 = vadd.f32 %v3736_v19, %v3638_v49 }
 0x75b   :  { %v7579_v55 = vpop.f32.mrf.mxu3 }
 0x75c   :  { %v7577_v28 = vpop.f32.mrf.mxu2 }
 0x75e   :  { %v3724_v27 = vpop.f32.mrf.mxu0  ;;  %v3738_v58 = vpop.f32.mrf.mxu1 }
 0x75f   :  { %v3774_v9 = vadd.f32 %v3738_v58, %v3640_v42 }
 0x763   :  { %v3871_v35 = vpop.f32.mrf.mxu3 }
 0x764   :  { %v3857_v30 = vpop.f32.mrf.mxu2  ;;  %v3879_v24 = vadd.f32 %v3871_v35, %v3772_v51 }
 0x765   :  { %v3878_v5 = vadd.f32 %v3857_v30, %v3771_v54 }
 0x766   :  { %v3829_v53 = vpop.f32.mrf.mxu0  ;;  %v3843_v22 = vpop.f32.mrf.mxu1 }
 0x767   :  { %v3876_v31 = vadd.f32 %v3829_v53, %v3769_v34  ;;  %v3877_v56 = vadd.f32 %v3843_v22, %v3770_v57 }
 0x76b   :  { %v7583_v18 = vpop.f32.mrf.mxu3 }
 0x76c   :  { %v7581_v52 = vpop.f32.mrf.mxu2 }
 0x76e   :  { %v3831_v0 = vpop.f32.mrf.mxu0  ;;  %v3845_v49 = vpop.f32.mrf.mxu1 }
 0x773   :  { %v3978_v32 = vpop.f32.mrf.mxu3 }
 0x774   :  { %v3964_v63 = vpop.f32.mrf.mxu2  ;;  %v3986_v8 = vadd.f32 %v3978_v32, %v3879_v24  ;;  %v3773_v24 = vadd.f32 %v3724_v27, %v3626_v41 }
 0x775   :  { %v3985_v17 = vadd.f32 %v3964_v63, %v3878_v5 }
 0x776   :  { %v3936_v20 = vpop.f32.mrf.mxu0  ;;  %v3950_v19 = vpop.f32.mrf.mxu1  ;;  %v3880_v26 = vadd.f32 %v3831_v0, %v3773_v24 }
 0x777   :  { %v3983_v12 = vadd.f32 %v3936_v20, %v3876_v31  ;;  %v3984_v38 = vadd.f32 %v3950_v19, %v3877_v56  ;;  %v4424_v20 = vpop.permute.xlu2 %4423  ;;  %v3881_v56 = vadd.f32 %v3845_v49, %v3774_v9 }
 0x77b   :  { %v7587_v62 = vpop.f32.mrf.mxu3 }
 0x77c   :  { %v7585_v59 = vpop.f32.mrf.mxu2 }
 0x77e   :  { %v3938_v54 = vpop.f32.mrf.mxu0  ;;  %v3952_v51 = vpop.f32.mrf.mxu1 }
 0x77f   :  { %v3988_v5 = vadd.f32 %v3952_v51, %v3881_v56 }
 0x783   :  { %v4085_v34 = vpop.f32.mrf.mxu3 }
 0x784   :  { %v4071_v30 = vpop.f32.mrf.mxu2  ;;  %v4093_v4 = vadd.f32 %v4085_v34, %v3986_v8 }
 0x786   :  { %v4043_v35 = vpop.f32.mrf.mxu0  ;;  %v4057_v57 = vpop.f32.mrf.mxu1 }
 0x787   :  { %v4090_v2 = vadd.f32 %v4043_v35, %v3983_v12  ;;  %v4091_v14 = vadd.f32 %v4057_v57, %v3984_v38 }
 0x78b   :  { %v7591_v22 = vpop.f32.mrf.mxu3 }
 0x78c   :  { %v7589_v53 = vpop.f32.mrf.mxu2 }
 0x78e   :  { %v4045_v61 = vpop.f32.mrf.mxu0  ;;  %v4059_v36 = vpop.f32.mrf.mxu1 }
 0x793   :  { %v4192_v33 = vpop.f32.mrf.mxu3 }
 0x794   :  { %v4178_v10 = vpop.f32.mrf.mxu2  ;;  %v4200_v16 = vadd.f32 %v4192_v33, %v4093_v4 }
 0x796   :  { %v4150_v21 = vpop.f32.mrf.mxu0  ;;  %v4164_v48 = vpop.f32.mrf.mxu1 }
 0x797   :  { %v4197_v15 = vadd.f32 %v4150_v21, %v4090_v2 }
 0x79b   :  { %v7595_v50 = vpop.f32.mrf.mxu3 }
 0x79c   :  { %v7593_v46 = vpop.f32.mrf.mxu2  ;;  %8299 = vst [vmem:[#allocation41_spill] sm:$0xff] %v7595_v50  ;;  %v4198_v50 = vadd.f32 %v4164_v48, %v4091_v14 }
 0x79e   :  { %v4152_v47 = vpop.f32.mrf.mxu0  ;;  %v4166_v13 = vpop.f32.mrf.mxu1 }
 0x7a3   :  { %v4299_v6 = vpop.f32.mrf.mxu3 }
 0x7a4   :  { %v4285_v11 = vpop.f32.mrf.mxu2 }
 0x7a6   :  { %v4257_v44 = vpop.f32.mrf.mxu0  ;;  %v4271_v40 = vpop.f32.mrf.mxu1 }
 0x7a7   :  { %v4304_v32 = vadd.f32 %v4257_v44, %v4197_v15  ;;  %v4305_v12 = vadd.f32 %v4271_v40, %v4198_v50 }
 0x7ab   :  { %v7599_v37 = vpop.f32.mrf.mxu3 }
 0x7ac   :  { %v7597_v7 = vpop.f32.mrf.mxu2  ;;  %8301 = vst [vmem:[#allocation43_spill] sm:$0xff] %v7599_v37  ;;  %v4307_v37 = vadd.f32 %v4299_v6, %v4200_v16  ;;  %v4095_v16 = vadd.f32 %v4059_v36, %v3988_v5 }
 0x7ad   :  { %8300 = vst [vmem:[#allocation42_spill] sm:$0xff] %v7597_v7  ;;  %v4092_v7 = vadd.f32 %v4071_v30, %v3985_v17  ;;  %v3987_v17 = vadd.f32 %v3938_v54, %v3880_v26 }
 0x7ae   :  { %v4259_v1 = vpop.f32.mrf.mxu0  ;;  %v4273_v43 = vpop.f32.mrf.mxu1 }
 0x7af   :  { %v4199_v8 = vadd.f32 %v4178_v10, %v4092_v7  ;;  %v4094_v40 = vadd.f32 %v4045_v61, %v3987_v17  ;;  %v4429_v61 = vpop.permute.xlu0 %4428 }
 0x7b1   :  { %v4306_v25 = vadd.f32 %v4285_v11, %v4199_v8  ;;  %v4201_v7 = vadd.f32 %v4152_v47, %v4094_v40  ;;  %v3668_v47 = vadd.f32 %v7573_v39, %v7565_v60 }
 0x7b3   :  { %v4406_v31 = vpop.f32.mrf.mxu3  ;;  %v4308_v10 = vadd.f32 %v4259_v1, %v4201_v7  ;;  %v3776_v49 = vadd.f32 %v7579_v55, %v3668_v47  ;;  %v8302_v55 = vld [vmem:[#allocation41_spill] sm:$0xff]  ;;  %v8304_v34 = vld [vmem:[#allocation43_spill] sm:$0xff] }
 0x7b4   :  { %v4414_v19 = vadd.f32 %v4406_v31, %v4307_v37  ;;  %v4392_v38 = vpop.f32.mrf.mxu2  ;;  %v4202_v37 = vadd.f32 %v4166_v13, %v4095_v16 }
 0x7b5   :  { %v4413_v41 = vadd.f32 %v4392_v38, %v4306_v25  ;;  %v3883_v54 = vadd.f32 %v7583_v18, %v3776_v49 }
 0x7b6   :  { %v4364_v45 = vpop.f32.mrf.mxu0  ;;  %v4378_v33 = vpop.f32.mrf.mxu1  ;;  %v4434_v2 = vadd.f32 %v4424_v20, %v4414_v19  ;;  %v4309_v11 = vadd.f32 %v4273_v43, %v4202_v37  ;;  %v3654_v43 = vadd.f32 %v7571_v3, %v7563_v23  ;;  %v8307_v37 = vld [vmem:[#allocation14_spill] sm:$0xff] }
 0x7b7   :  { %v4411_v4 = vadd.f32 %v4364_v45, %v4304_v32  ;;  %v4412_v42 = vadd.f32 %v4378_v33, %v4305_v12  ;;  %v4433_v48 = vadd.f32 %v4424_v20, %v4413_v41  ;;  %v3990_v60 = vadd.f32 %v7587_v62, %v3883_v54  ;;  %v8303_v62 = vld [vmem:[#allocation42_spill] sm:$0xff] }
 0x7b8   :  { %v7604_v15 = vmax.f32 %v4434_v2, 0.0  ;;  %v3775_v1 = vadd.f32 %v7577_v28, %v3654_v43  ;;  %v8306_v2 = vld [vmem:[#allocation11_spill] sm:$0xff]  ;;  %v8308_v43 = vld [vmem:[#allocation12_spill] sm:$0xff] }
 0x7b9   :  { %v4431_v14 = vadd.f32 %v4424_v20, %v4411_v4  ;;  %v4432_v44 = vadd.f32 %v4424_v20, %v4412_v42  ;;  %v7616_v13 = vmax.f32 %v4433_v48, 0.0  ;;  %v4097_v39 = vadd.f32 %v7591_v22, %v3990_v60 }
 0x7ba   :  { %4466 = vrot.lane.b32.xlu0 %v7604_v15, %s6022_s5  ;;  %v3882_v63 = vadd.f32 %v7581_v52, %v3775_v1 }
 0x7bb   :  { %v7606_v9 = vmax.f32 %v4431_v14, 0.0  ;;  %v7608_v6 = vmax.f32 %v4432_v44, 0.0  ;;  %v4204_v52 = vadd.f32 %v8302_v55, %v4097_v39  ;;  %v4408_v18 = vpop.f32.mrf.mxu3  ;;  %v8309_v55 = vld [vmem:[#allocation10_spill] sm:$0xff] }
 0x7bc   :  { %v3989_v23 = vadd.f32 %v7585_v59, %v3882_v63  ;;  %v4394_v59 = vpop.f32.mrf.mxu2 }
 0x7bd   :  { %4454 = vrot.lane.b32.xlu2 %v7606_v9, %s6022_s5  ;;  %4458 = vrot.lane.b32.xlu1 %v7608_v6, %s6022_s5  ;;  %v4311_v35 = vadd.f32 %v8304_v34, %v4204_v52 }
 0x7be   :  { %v4380_v50 = vpop.f32.mrf.mxu1  ;;  %v4366_v36 = vpop.f32.mrf.mxu0  ;;  %v4096_v3 = vadd.f32 %v7589_v53, %v3989_v23 }
 0x7bf   :  { %v4416_v21 = vadd.f32 %v4380_v50, %v4309_v11  ;;  %v4415_v27 = vadd.f32 %v4366_v36, %v4308_v10  ;;  %v4418_v53 = vadd.f32 %v4408_v18, %v4311_v35  ;;  %v5934_v50 = vld [vmem:[%s8160_s12] sm:$0xff] }
 0x7c0   :  { %v4203_v28 = vadd.f32 %v7593_v46, %v4096_v3  ;;  %v5933_v35 = vld [vmem:[%s8160_s12 + $0x20] sm:$0xff] }
 0x7c1   :  { %v4436_v29 = vadd.f32 %v4429_v61, %v4416_v21  ;;  %v4435_v0 = vadd.f32 %v4429_v61, %v4415_v27  ;;  %v4438_v22 = vadd.f32 %v4429_v61, %v4418_v53 }
 0x7c2   :  { %4629 = vrot.lane.b32.xlu0 %v7616_v13, %s6023_s20  ;;  %v4310_v30 = vadd.f32 %v8303_v62, %v4203_v28 }
 0x7c3   :  { %v7618_v58 = vmax.f32 %v4436_v29, 0.0  ;;  %v7634_v51 = vmax.f32 %v4435_v0, 0.0  ;;  %v7658_v32 = vmax.f32 %v4438_v22, 0.0 }
 0x7c4   :  { %v4417_v57 = vadd.f32 %v4394_v59, %v4310_v30 }
 0x7c5   :  { %4625 = vrot.lane.b32.xlu1 %v7608_v6, %s6023_s20  ;;  %4460 = vrot.lane.b32.xlu2 %v7618_v58, %s6022_s5  ;;  %v4451_v48 = vpack.c.bf16 %v7618_v58, %v7608_v6  ;;  %v4450_v53 = vpack.c.bf16 %v7634_v51, %v7606_v9 }
 0x7c6   :  { %v4437_v46 = vadd.f32 %v4429_v61, %v4417_v57 }
 0x7c8   :  { %v7656_v24 = vmax.f32 %v4437_v46, 0.0  ;;  %v4453_v46 = vpack.c.bf16 %v7658_v32, %v7604_v15 }
 0x7ca   :  { %4456 = vrot.lane.b32.xlu0 %v7634_v51, %s6022_s5  ;;  %v4452_v63 = vpack.c.bf16 %v7656_v24, %v7616_v13 }
 0x7cd   :  { %4621 = vrot.lane.b32.xlu1 %v7606_v9, %s6023_s20  ;;  %4627 = vrot.lane.b32.xlu2 %v7618_v58, %s6023_s20 }
 0x7d2   :  { %4736 = vrot.lane.b32.xlu0 %v7608_v6, %s6024_s25 }
 0x7d5   :  { %4462 = vrot.lane.b32.xlu1 %v7616_v13, %s6022_s5  ;;  %4633 = vrot.lane.b32.xlu2 %v7604_v15, %s6023_s20 }
 0x7da   :  { %4732 = vrot.lane.b32.xlu0 %v7606_v9, %s6024_s25 }
 0x7dd   :  { %4468 = vrot.lane.b32.xlu1 %v7658_v32, %s6022_s5  ;;  %4464 = vrot.lane.b32.xlu2 %v7656_v24, %s6022_s5 }
 0x7e2   :  { %4849 = vrot.lane.b32.xlu0 %v7618_v58, %s6025_s26 }
 0x7e5   :  { %4738 = vrot.lane.b32.xlu1 %v7618_v58, %s6024_s25  ;;  %4623 = vrot.lane.b32.xlu2 %v7634_v51, %s6023_s20 }
 0x7ea   :  { %4855 = vrot.lane.b32.xlu0 %v7604_v15, %s6025_s26 }
 0x7ed   :  { %4744 = vrot.lane.b32.xlu1 %v7604_v15, %s6024_s25  ;;  %4740 = vrot.lane.b32.xlu2 %v7616_v13, %s6024_s25 }
 0x7f2   :  { %4635 = vrot.lane.b32.xlu0 %v7658_v32, %s6023_s20 }
 0x7f5   :  { %4734 = vrot.lane.b32.xlu1 %v7634_v51, %s6024_s25  ;;  %4847 = vrot.lane.b32.xlu2 %v7608_v6, %s6025_s26 }
 0x7fa   :  { %4845 = vrot.lane.b32.xlu0 %v7634_v51, %s6025_s26 }
 0x7fd   :  { %4631 = vrot.lane.b32.xlu1 %v7656_v24, %s6023_s20  ;;  %4843 = vrot.lane.b32.xlu2 %v7606_v9, %s6025_s26 }
 0x802   :  { %4742 = vrot.lane.b32.xlu0 %v7656_v24, %s6024_s25 }
 0x805   :  { %4851 = vrot.lane.b32.xlu1 %v7616_v13, %s6025_s26  ;;  %4956 = vrot.lane.b32.xlu2 %v7634_v51, %s6026_s27 }
 0x80a   :  { %4962 = vrot.lane.b32.xlu0 %v7616_v13, %s6026_s27 }
 0x80d   :  { %4954 = vrot.lane.b32.xlu1 %v7606_v9, %s6026_s27  ;;  %4746 = vrot.lane.b32.xlu2 %v7658_v32, %s6024_s25 }
 0x812   :  { %5065 = vrot.lane.b32.xlu0 %v7606_v9, %s6027_s28 }
 0x815   :  { %4958 = vrot.lane.b32.xlu1 %v7608_v6, %s6026_s27  ;;  %4966 = vrot.lane.b32.xlu2 %v7604_v15, %s6026_s27 }
 0x817   :  { %v4455_v31 = vpop.permute.xlu2 %4454 }
 0x81a   :  { %5069 = vrot.lane.b32.xlu0 %v7608_v6, %s6027_s28 }
 0x81d   :  { %4857 = vrot.lane.b32.xlu1 %v7658_v32, %s6025_s26  ;;  %4853 = vrot.lane.b32.xlu2 %v7656_v24, %s6025_s26 }
 0x81f   :  { %v4461_v20 = vpop.permute.xlu2 %4460 }
 0x822   :  { %4968 = vrot.lane.b32.xlu0 %v7658_v32, %s6026_s27 }
 0x825   :  { %5067 = vrot.lane.b32.xlu1 %v7634_v51, %s6027_s28  ;;  %4960 = vrot.lane.b32.xlu2 %v7618_v58, %s6026_s27 }
 0x827   :  { %v7720_v56 = vpop.permute.xlu2 %4627 }
 0x82a   :  { %5178 = vrot.lane.b32.xlu0 %v7634_v51, %s6028_s29 }
 0x82c   :  { %v4467_v8 = vpop.permute.xlu0 %4466 }
 0x82d   :  { %4964 = vrot.lane.b32.xlu1 %v7656_v24, %s6026_s27  ;;  %5073 = vrot.lane.b32.xlu2 %v7616_v13, %s6027_s28  ;;  %v4476_v54 = vsel %vm103_vm1, %v4467_v8, %v4455_v31 }
 0x82e   :  { %v4478_v52 = vmul.f32 %v4476_v54, %v8309_v55 }
 0x82f   :  { %v4459_v12 = vpop.permute.xlu1 %4458  ;;  %v7728_v19 = vpop.permute.xlu2 %4633 }
 0x830   :  { %v4474_v33 = vsel %vm103_vm1, %v4455_v31, %v4459_v12 }
 0x831   :  { %v4479_v42 = vmul.f32 %v4474_v33, %v8306_v2 }
 0x832   :  { %5075 = vrot.lane.b32.xlu0 %v7656_v24, %s6027_s28 }
 0x834   :  { %v7732_v45 = vpop.permute.xlu0 %4629 }
 0x835   :  { %5077 = vrot.lane.b32.xlu1 %v7604_v15, %s6027_s28  ;;  %5176 = vrot.lane.b32.xlu2 %v7606_v9, %s6028_s29 }
 0x837   :  { %v7738_v26 = vpop.permute.xlu1 %4625  ;;  %v4465_v38 = vpop.permute.xlu2 %4464 }
 0x838   :  { %v4473_v21 = vsel %vm103_vm1, %v4461_v20, %v4465_v38 }
 0x839   :  { %v4484_v47 = vmul.f32 %v4473_v21, %v8308_v43  ;;  %v4637_v21 = vsel %vm272_vm0, %v7732_v45, %v7728_v19 }
 0x83a   :  { %5188 = vrot.lane.b32.xlu0 %v7604_v15, %s6028_s29 }
 0x83c   :  { %v4457_v5 = vpop.permute.xlu0 %4456 }
 0x83d   :  { %5071 = vrot.lane.b32.xlu1 %v7618_v58, %s6027_s28  ;;  %5079 = vrot.lane.b32.xlu2 %v7658_v32, %s6027_s28  ;;  %v4475_v25 = vsel %vm103_vm1, %v4457_v5, %v4461_v20  ;;  %v5398_v20 = vld [vmem:[%s8161_s13] sm:$0xff] }
 0x83e   :  { %v4483_v17 = vmul.f32 %v4475_v25, %v8306_v2 }
 0x83f   :  { %v7752_v14 = vpop.permute.xlu1 %4621  ;;  %v7754_v16 = vpop.permute.xlu2 %4623 }
 0x840   :  { %v4641_v41 = vsel %vm272_vm0, %v7752_v14, %v7738_v26  ;;  %v4642_v44 = vsel %vm272_vm0, %v7754_v16, %v7720_v56  ;;  %v4487_v40 = vpack.c.bf16 %v4483_v17, %v4479_v42 }
 0x841   :  { %v4646_v7 = vmul.f32 %v4641_v41, %v8307_v37  ;;  %v4650_v11 = vmul.f32 %v4642_v44, %v8307_v37  ;;  %v8313_v44 = vld [vmem:[#allocation19_spill] sm:$0xff] }
 0x842   :  { %5182 = vrot.lane.b32.xlu0 %v7618_v58, %s6028_s29  ;;  %4522 = vmatpush.bf16.msrb.mxu1 %v4487_v40 }
 0x843   :  { %v4654_v36 = vpack.c.bf16 %v4650_v11, %v4646_v7  ;;  %v5431_v11 = vld [vmem:[%s8163_s15] sm:$0xff] }
 0x844   :  { %v7773_v10 = vpop.permute.xlu0 %4736 }
 0x845   :  { %5184 = vrot.lane.b32.xlu1 %v7616_v13, %s6028_s29  ;;  %5180 = vrot.lane.b32.xlu2 %v7608_v6, %s6028_s29 }
 0x846   :  { %4586 = vmatpush.bf16.msra.mxu1 %v4451_v48 }
 0x847   :  { %5837 = vmatmul.msk.bf16.vlgmr.msrb.gmra.mxu1 %vm4497_vm10, %v5934_v50  ;;  %v4463_v61 = vpop.permute.xlu1 %4462  ;;  %v7782_v29 = vpop.permute.xlu2 %4740 }
 0x848   :  { %v4472_v27 = vsel %vm103_vm1, %v4459_v12, %v4463_v61  ;;  %v4470_v23 = vsel %vm103_vm1, %v4463_v61, %v4467_v8  ;;  %v7848_v8 = vld [vmem:[%s8160_s12 + $0x8] sm:$0xff]  ;;  %v4643_v12 = vsel %vm272_vm0, %v7728_v19, %v7752_v14  ;;  %v8312_v14 = vld [vmem:[#allocation18_spill] sm:$0xff] }
 0x849   :  { %v4480_v0 = vmul.f32 %v4472_v27, %v8308_v43  ;;  %v4639_v27 = vsel %vm272_vm0, %v7738_v26, %v7732_v45  ;;  %v8316_v26 = vld [vmem:[#allocation9_spill] sm:$0xff] }
 0x84a   :  { %4689 = vmatpush.bf16.msrb.mxu1 %v4654_v36  ;;  %5295 = vrot.lane.b32.xlu0 %v7616_v13, %s6029_s30  ;;  %v8310_v13 = vld [vmem:[#allocation13_spill] sm:$0xff] }
 0x84b   :  { %v4488_v1 = vpack.c.bf16 %v4484_v47, %v4480_v0  ;;  %v4481_v59 = vmul.f32 %v4470_v23, %v8310_v13  ;;  %v8314_v47 = vld [vmem:[#allocation22_spill] sm:$0xff] }
 0x84c   :  { %v4733_v49 = vpop.permute.xlu0 %4732 }
 0x84d   :  { %5190 = vrot.lane.b32.xlu1 %v7658_v32, %s6028_s29  ;;  %5186 = vrot.lane.b32.xlu2 %v7656_v24, %s6028_s29 }
 0x84e   :  { %4536 = vmatpush.bf16.msrb.mxu2 %v4488_v1 }
 0x84f   :  { %v4469_v60 = vpop.permute.xlu1 %4468  ;;  %v7800_v3 = vpop.permute.xlu2 %4847 }
 0x850   :  { %v4471_v39 = vsel %vm103_vm1, %v4465_v38, %v4469_v60  ;;  %v4477_v28 = vsel %vm103_vm1, %v4469_v60, %v4457_v5  ;;  %v8311_v5 = vld [vmem:[#allocation15_spill] sm:$0xff]  ;;  %v4647_v60 = vmul.f32 %v4639_v27, %v8316_v26 }
 0x851   :  { %v4482_v18 = vmul.f32 %v4477_v28, %v8309_v55  ;;  %v4485_v62 = vmul.f32 %v4471_v39, %v8310_v13  ;;  %5838 = vmatmul.msk.bf16.vlgmr.msrb.gmra.mxu2 %vm4497_vm10, %v5934_v50  ;;  %v4645_v25 = vmul.f32 %v4643_v12, %v8311_v5 }
 0x852   :  { %4600 = vmatpush.bf16.msra.mxu2 %v4452_v63  ;;  %5301 = vrot.lane.b32.xlu0 %v7658_v32, %s6029_s30  ;;  %v8315_v63 = vld [vmem:[#allocation16_spill] sm:$0xff] }
 0x853   :  { %v4486_v30 = vpack.c.bf16 %v4482_v18, %v4478_v52  ;;  %v4489_v34 = vpack.c.bf16 %v4485_v62, %v4481_v59  ;;  %v4648_v54 = vmul.f32 %v4637_v21, %v8315_v63  ;;  %v5936_v59 = vld [vmem:[%s8160_s12 + $0x10] sm:$0xff]  ;;  %v4750_v18 = vsel %vm377_vm4, %v7773_v10, %v7782_v29 }
 0x854   :  { %v7816_v57 = vpop.permute.xlu0 %4849  ;;  %v8322_v21 = vld [vmem:[#allocation24_spill] sm:$0xff] }
 0x855   :  { %5287 = vrot.lane.b32.xlu1 %v7606_v9, %s6029_s30  ;;  %5289 = vrot.lane.b32.xlu2 %v7634_v51, %s6029_s30 }
 0x856   :  { %4508 = vmatpush.bf16.msrb.mxu0 %v4486_v30  ;;  %4550 = vmatpush.bf16.msrb.mxu3 %v4489_v34 }
 0x857   :  { %5845 = vmatmul.msk.bf16.vlgmr.msra.gmra.mxu1 %vm4497_vm10, %v5933_v35  ;;  %v7827_v22 = vpop.permute.xlu1 %4738  ;;  %v7829_v31 = vpop.permute.xlu2 %4843 }
 0x858   :  { %v4863_v36 = vsel %vm482_vm5, %v7829_v31, %v7800_v3 }
 0x859   :  { %5836 = vmatmul.msk.bf16.vlgmr.msrb.gmra.mxu0 %vm4497_vm10, %v5934_v50  ;;  %5839 = vmatmul.msk.bf16.vlgmr.msrb.gmra.mxu3 %vm4497_vm10, %v5934_v50  ;;  %v4868_v0 = vmul.f32 %v4863_v36, %v8314_v47  ;;  %v8321_v36 = vld [vmem:[#allocation23_spill] sm:$0xff] }
 0x85a   :  { %4572 = vmatpush.bf16.msra.mxu0 %v4450_v53  ;;  %4614 = vmatpush.bf16.msra.mxu3 %v4453_v46  ;;  %v8318_v46 = vld [vmem:[#allocation20_spill] sm:$0xff] }
 0x85b   :  { %5402 = vperm.xlu0 %5954, %v5398_v20  }
 0x85c   :  { %v7836_v9 = vpop.permute.xlu0 %4855 }
 0x85d   :  { %5297 = vrot.lane.b32.xlu1 %v7656_v24, %s6029_s30  ;;  %5299 = vrot.lane.b32.xlu2 %v7604_v15, %s6029_s30  ;;  %v4752_v24 = vsel %vm377_vm4, %v4733_v49, %v7773_v10 }
 0x85e   :  { %v4757_v41 = vmul.f32 %v4752_v24, %v8312_v14 }
 0x85f   :  { %v4745_v51 = vpop.permute.xlu1 %4744  ;;  %v7842_v32 = vpop.permute.xlu2 %4956 }
 0x860   :  { %v4754_v15 = vsel %vm377_vm4, %v4745_v51, %v4733_v49 }
 0x861   :  { %5846 = vmatmul.msk.bf16.vlgmr.msra.gmra.mxu2 %vm4497_vm10, %v5933_v35 }
 0x864   :  { %v4636_v38 = vpop.permute.xlu0 %4635 }
 0x865   :  { %5291 = vrot.lane.b32.xlu1 %v7608_v6, %s6029_s30  ;;  %5293 = vrot.lane.b32.xlu2 %v7618_v58, %s6029_s30  ;;  %v4644_v33 = vsel %vm272_vm0, %v4636_v38, %v7754_v16  ;;  %v4756_v6 = vmul.f32 %v4754_v15, %v8313_v44 }
 0x866   :  { %v4649_v2 = vmul.f32 %v4644_v33, %v8311_v5  ;;  %v8319_v33 = vld [vmem:[#allocation21_spill] sm:$0xff] }
 0x867   :  { %5855 = vmatmul.msk.bf16.vlgmr.msrb.gmra.mxu1 %vm4497_vm10, %v7848_v8  ;;  %v4735_v42 = vpop.permute.xlu1 %4734  ;;  %v4747_v17 = vpop.permute.xlu2 %4746 }
 0x868   :  { %v4753_v58 = vsel %vm377_vm4, %v4735_v42, %v7827_v22  ;;  %v4755_v16 = vsel %vm377_vm4, %v4747_v17, %v4735_v42  ;;  %v4653_v40 = vpack.c.bf16 %v4649_v2, %v4645_v25 }
 0x869   :  { %v4761_v37 = vmul.f32 %v4753_v58, %v8312_v14  ;;  %v4760_v7 = vmul.f32 %v4755_v16, %v8313_v44  ;;  %5844 = vmatmul.msk.bf16.vlgmr.msra.gmra.mxu0 %vm4497_vm10, %v5933_v35  ;;  %5847 = vmatmul.msk.bf16.vlgmr.msra.gmra.mxu3 %vm4497_vm10, %v5933_v35  ;;  %v8317_v35 = vld [vmem:[#allocation17_spill] sm:$0xff]  ;;  %v4865_v58 = vsel %vm482_vm5, %v7836_v9, %v7829_v31 }
 0x86a   :  { %4675 = vmatpush.bf16.msrb.mxu0 %v4653_v40  ;;  %v4758_v53 = vmul.f32 %v4750_v18, %v8317_v35  ;;  %v4867_v31 = vmul.f32 %v4865_v58, %v8321_v36 }
 0x86b   :  { %v4765_v48 = vpack.c.bf16 %v4761_v37, %v4757_v41  ;;  %v4764_v50 = vpack.c.bf16 %v4760_v7, %v4756_v6  ;;  %v8320_v7 = vld [vmem:[#allocation26_spill] sm:$0xff] }
 0x86c   :  { %v7892_v61 = vpop.permute.xlu0 %4845 }
 0x86d   :  { %5434 = vperm.xlu2 %5953, %v5431_v11   ;;  %v4864_v43 = vsel %vm482_vm5, %v7892_v61, %v7816_v57  ;;  %4800 = vmatpush.bf16.msra.mxu1 %v4765_v48 }
 0x86e   :  { %4786 = vmatpush.bf16.msra.mxu0 %v4764_v50  ;;  %v4872_v1 = vmul.f32 %v4864_v43, %v8314_v47 }
 0x86f   :  { %v4632_v19 = vpop.permute.xlu1 %4631  ;;  %v7904_v49 = vpop.permute.xlu2 %4966 }
 0x870   :  { %v4638_v23 = vsel %vm272_vm0, %v4632_v19, %v4636_v38  ;;  %v4640_v45 = vsel %vm272_vm0, %v7720_v56, %v4632_v19  ;;  %v4876_v39 = vpack.c.bf16 %v4872_v1, %v4868_v0  ;;  %v4748_v56 = vsel %vm377_vm4, %v7782_v29, %v4745_v51 }
 0x871   :  { %v4651_v28 = vmul.f32 %v4640_v45, %v8316_v26  ;;  %v4652_v55 = vmul.f32 %v4638_v23, %v8315_v63  ;;  %v4759_v20 = vmul.f32 %v4748_v56, %v8318_v46  ;;  %v8323_v45 = vld [vmem:[#allocation25_spill] sm:$0xff] }
 0x872   :  { %4911 = vmatpush.bf16.msrb.mxu1 %v4876_v39 }
 0x873   :  { %v4655_v52 = vpack.c.bf16 %v4651_v28, %v4647_v60  ;;  %v4656_v13 = vpack.c.bf16 %v4652_v55, %v4648_v54 }
 0x874   :  { %v4743_v62 = vpop.permute.xlu0 %4742 }
 0x875   :  { %4703 = vmatpush.bf16.msrb.mxu2 %v4655_v52  ;;  %4717 = vmatpush.bf16.msrb.mxu3 %v4656_v13  ;;  %v4749_v30 = vsel %vm377_vm4, %v4743_v62, %v4747_v17  ;;  %v4751_v34 = vsel %vm377_vm4, %v7827_v22, %v4743_v62  ;;  %v5937_v17 = vld [vmem:[%s8160_s12 + $0x18] sm:$0xff]  ;;  %v8324_v62 = vld [vmem:[#allocation27_spill] sm:$0xff] }
 0x876   :  { %v4762_v10 = vmul.f32 %v4751_v34, %v8317_v35  ;;  %v4763_v12 = vmul.f32 %v4749_v30, %v8318_v46  ;;  %v8325_v34 = vld [vmem:[#allocation28_spill] sm:$0xff] }
 0x877   :  { %5865 = vmatmul.msk.bf16.vlgmr.msra.gmra.mxu1 %vm4497_vm10, %v5936_v59  ;;  %v4852_v29 = vpop.permute.xlu1 %4851  ;;  %v4854_v51 = vpop.permute.xlu2 %4853 }
 0x878   :  { %v4861_v24 = vsel %vm482_vm5, %v7800_v3, %v4852_v29  ;;  %v4862_v22 = vsel %vm482_vm5, %v7816_v57, %v4854_v51  ;;  %5856 = vmatmul.msk.bf16.vlgmr.msrb.gmra.mxu2 %vm4497_vm10, %v7848_v8  ;;  %v4766_v15 = vpack.c.bf16 %v4762_v10, %v4758_v53  ;;  %v4767_v38 = vpack.c.bf16 %v4763_v12, %v4759_v20  ;;  %v5938_v10 = vld [vmem:[%s8160_s12 + $0x28] sm:$0xff] }
 0x879   :  { %v4869_v5 = vmul.f32 %v4861_v24, %v8319_v33  ;;  %5854 = vmatmul.msk.bf16.vlgmr.msrb.gmra.mxu0 %vm4497_vm10, %v7848_v8  ;;  %v4873_v25 = vmul.f32 %v4862_v22, %v8319_v33  ;;  %5857 = vmatmul.msk.bf16.vlgmr.msrb.gmra.mxu3 %vm4497_vm10, %v7848_v8  ;;  %v4859_v16 = vsel %vm482_vm5, %v4852_v29, %v7836_v9 }
 0x87a   :  { %4814 = vmatpush.bf16.msra.mxu2 %v4766_v15  ;;  %4828 = vmatpush.bf16.msra.mxu3 %v4767_v38  ;;  %v4870_v27 = vmul.f32 %v4859_v16, %v8322_v21  ;;  %v8326_v38 = vld [vmem:[#allocation30_spill] sm:$0xff] }
 0x87b   :  { %v4877_v3 = vpack.c.bf16 %v4873_v25, %v4869_v5  ;;  %v8327_v25 = vld [vmem:[#allocation32_spill] sm:$0xff] }
 0x87c   :  { %v4963_v2 = vpop.permute.xlu0 %4962 }
 0x87e   :  { %4925 = vmatpush.bf16.msrb.mxu2 %v4877_v3 }
 0x87f   :  { %v4955_v57 = vpop.permute.xlu1 %4954  ;;  %v4961_v42 = vpop.permute.xlu2 %4960 }
 0x880   :  { %v4975_v40 = vsel %vm587_vm6, %v7842_v32, %v4961_v42  ;;  %v4976_v19 = vsel %vm587_vm6, %v7904_v49, %v4955_v57 }
 0x881   :  { %v4982_v47 = vmul.f32 %v4975_v40, %v8320_v7  ;;  %v4981_v26 = vmul.f32 %v4976_v19, %v8323_v45 }
 0x884   :  { %v7952_v14 = vpop.permute.xlu0 %5065 }
 0x887   :  { %5875 = vmatmul.msk.bf16.vlgmr.msrb.gmra.mxu1 %vm4497_vm10, %v5937_v17  ;;  %v4959_v41 = vpop.permute.xlu1 %4958  ;;  %v7958_v8 = vpop.permute.xlu2 %5073 }
 0x888   :  { %5866 = vmatmul.msk.bf16.vlgmr.msra.gmra.mxu2 %vm4497_vm10, %v5936_v59  ;;  %v4974_v44 = vsel %vm587_vm6, %v4955_v57, %v4959_v41  ;;  %v4972_v52 = vsel %vm587_vm6, %v4959_v41, %v4963_v2 }
 0x889   :  { %5864 = vmatmul.msk.bf16.vlgmr.msra.gmra.mxu0 %vm4497_vm10, %v5936_v59  ;;  %5867 = vmatmul.msk.bf16.vlgmr.msra.gmra.mxu3 %vm4497_vm10, %v5936_v59  ;;  %v4978_v11 = vmul.f32 %v4974_v44, %v8320_v7  ;;  %v4979_v35 = vmul.f32 %v4972_v52, %v8325_v34  ;;  %v8328_v7 = vld [vmem:[#allocation29_spill] sm:$0xff] }
 0x88b   :  { %v4986_v63 = vpack.c.bf16 %v4982_v47, %v4978_v11 }
 0x88c   :  { %v7962_v6 = vpop.permute.xlu0 %5069 }
 0x88d   :  { %v5083_v44 = vsel %vm692_vm7, %v7962_v6, %v7958_v8  ;;  %v5085_v58 = vsel %vm692_vm7, %v7952_v14, %v7962_v6  ;;  %v5939_v6 = vld [vmem:[%s8160_s12 + $0x30] sm:$0xff] }
 0x88e   :  { %v5089_v11 = vmul.f32 %v5085_v58, %v8328_v7 }
 0x88f   :  { %v4858_v37 = vpop.permute.xlu1 %4857  ;;  %v7988_v54 = vpop.permute.xlu2 %5176 }
 0x890   :  { %v4860_v48 = vsel %vm482_vm5, %v4854_v51, %v4858_v37  ;;  %v4866_v50 = vsel %vm482_vm5, %v4858_v37, %v7892_v61 }
 0x891   :  { %v4871_v9 = vmul.f32 %v4866_v50, %v8321_v36  ;;  %v4874_v43 = vmul.f32 %v4860_v48, %v8322_v21  ;;  %v8329_v48 = vld [vmem:[#allocation31_spill] sm:$0xff] }
 0x892   :  { %v5090_v50 = vmul.f32 %v5083_v44, %v8329_v48 }
 0x893   :  { %v4875_v0 = vpack.c.bf16 %v4871_v9, %v4867_v31  ;;  %v4878_v1 = vpack.c.bf16 %v4874_v43, %v4870_v27 }
 0x894   :  { %v4969_v61 = vpop.permute.xlu0 %4968 }
 0x895   :  { %4897 = vmatpush.bf16.msrb.mxu0 %v4875_v0  ;;  %4939 = vmatpush.bf16.msrb.mxu3 %v4878_v1  ;;  %v4977_v23 = vsel %vm587_vm6, %v4969_v61, %v7842_v32  ;;  %v4970_v32 = vsel %vm587_vm6, %v4963_v2, %v7904_v49  ;;  %v8330_v0 = vld [vmem:[#allocation33_spill] sm:$0xff] }
 0x896   :  { %v4985_v60 = vmul.f32 %v4977_v23, %v8323_v45  ;;  %v4980_v30 = vmul.f32 %v4970_v32, %v8324_v62  ;;  %v8331_v23 = vld [vmem:[#allocation35_spill] sm:$0xff] }
 0x897   :  { %v5068_v39 = vpop.permute.xlu1 %5067  ;;  %v5080_v13 = vpop.permute.xlu2 %5079 }
 0x898   :  { %5876 = vmatmul.msk.bf16.vlgmr.msrb.gmra.mxu2 %vm4497_vm10, %v5937_v17  ;;  %v4989_v28 = vpack.c.bf16 %v4985_v60, %v4981_v26  ;;  %v5088_v29 = vsel %vm692_vm7, %v5080_v13, %v5068_v39 }
 0x899   :  { %5008 = vmatpush.bf16.msra.mxu0 %v4986_v63  ;;  %5877 = vmatmul.msk.bf16.vlgmr.msrb.gmra.mxu3 %vm4497_vm10, %v5937_v17  ;;  %v5096_v33 = vmul.f32 %v5088_v29, %v8326_v38 }
 0x89a   :  { %5874 = vmatmul.msk.bf16.vlgmr.msrb.gmra.mxu0 %vm4497_vm10, %v5937_v17  ;;  %5050 = vmatpush.bf16.msra.mxu3 %v4989_v28 }
 0x89c   :  { %v7998_v55 = vpop.permute.xlu0 %5178 }
 0x89f   :  { %v4965_v59 = vpop.permute.xlu1 %4964  ;;  %v5181_v5 = vpop.permute.xlu2 %5180 }
 0x8a0   :  { %v4971_v18 = vsel %vm587_vm6, %v4965_v59, %v4969_v61  ;;  %v4973_v56 = vsel %vm587_vm6, %v4961_v42, %v4965_v59 }
 0x8a1   :  { %v4983_v53 = vmul.f32 %v4973_v56, %v8325_v34  ;;  %v4984_v46 = vmul.f32 %v4971_v18, %v8324_v62  ;;  %v8332_v62 = vld [vmem:[#allocation34_spill] sm:$0xff]  ;;  %v8333_v34 = vld [vmem:[#allocation36_spill] sm:$0xff] }
 0x8a3   :  { %v4987_v49 = vpack.c.bf16 %v4983_v53, %v4979_v35  ;;  %v4988_v20 = vpack.c.bf16 %v4984_v46, %v4980_v30 }
 0x8a4   :  { %v5076_v12 = vpop.permute.xlu0 %5075 }
 0x8a5   :  { %5022 = vmatpush.bf16.msra.mxu1 %v4987_v49  ;;  %5036 = vmatpush.bf16.msra.mxu2 %v4988_v20  ;;  %v5082_v51 = vsel %vm692_vm7, %v5076_v12, %v5080_v13 }
 0x8a6   :  { %v5095_v3 = vmul.f32 %v5082_v51, %v8327_v25 }
 0x8a7   :  { %v5078_v24 = vpop.permute.xlu1 %5077  ;;  %v5187_v31 = vpop.permute.xlu2 %5186 }
 0x8a8   :  { %v5081_v22 = vsel %vm692_vm7, %v7958_v8, %v5078_v24  ;;  %v5087_v15 = vsel %vm692_vm7, %v5078_v24, %v7952_v14  ;;  %5885 = vmatmul.msk.bf16.vlgmr.msra.gmra.mxu1 %vm4497_vm10, %v5938_v10  ;;  %5886 = vmatmul.msk.bf16.vlgmr.msra.gmra.mxu2 %vm4497_vm10, %v5938_v10  ;;  %v5196_v14 = vsel %vm797_vm8, %v7988_v54, %v5181_v5 }
 0x8a9   :  { %v5091_v2 = vmul.f32 %v5081_v22, %v8327_v25  ;;  %v5092_v57 = vmul.f32 %v5087_v15, %v8326_v38  ;;  %5887 = vmatmul.msk.bf16.vlgmr.msra.gmra.mxu3 %vm4497_vm10, %v5938_v10  ;;  %v5200_v1 = vmul.f32 %v5196_v14, %v8330_v0  ;;  %v8334_v22 = vld [vmem:[#allocation37_spill] sm:$0xff]  ;;  %v8337_v14 = vld [vmem:[#allocation39_spill] sm:$0xff] }
 0x8aa   :  { %5884 = vmatmul.msk.bf16.vlgmr.msra.gmra.mxu0 %vm4497_vm10, %v5938_v10  ;;  %v5940_v10 = vld [vmem:[%s8160_s12 + $0x38] sm:$0xff] }
 0x8ab   :  { %v5099_v42 = vpack.c.bf16 %v5095_v3, %v5091_v2  ;;  %v5100_v17 = vpack.c.bf16 %v5096_v33, %v5092_v57  ;;  %v5399_v2 = vld [vmem:[%s8161_s13 + $0x8] sm:$0xff] }
 0x8ac   :  { %v5189_v41 = vpop.permute.xlu0 %5188  ;;  %5407 = vperm.xlu1 %5955, %v5399_v2  }
 0x8ad   :  { %5147 = vmatpush.bf16.msrb.mxu2 %v5099_v42  ;;  %5161 = vmatpush.bf16.msrb.mxu3 %v5100_v17  ;;  %v5198_v52 = vsel %vm797_vm8, %v5189_v41, %v7988_v54  ;;  %v8335_v42 = vld [vmem:[#allocation40_spill] sm:$0xff] }
 0x8ae   :  { %v5203_v30 = vmul.f32 %v5198_v52, %v8332_v62 }
 0x8af   :  { %v5072_v16 = vpop.permute.xlu1 %5071  ;;  %v5290_v28 = vpop.permute.xlu2 %5289 }
 0x8b0   :  { %v5084_v40 = vsel %vm692_vm7, %v5072_v16, %v5076_v12  ;;  %v5086_v37 = vsel %vm692_vm7, %v5068_v39, %v5072_v16 }
 0x8b1   :  { %v5093_v36 = vmul.f32 %v5086_v37, %v8328_v7  ;;  %v5094_v8 = vmul.f32 %v5084_v40, %v8329_v48  ;;  %v5941_v37 = vld [vmem:[%s8160_s12 + $0x40] sm:$0xff] }
 0x8b3   :  { %v5097_v21 = vpack.c.bf16 %v5093_v36, %v5089_v11  ;;  %v5098_v27 = vpack.c.bf16 %v5094_v8, %v5090_v50 }
 0x8b4   :  { %v5183_v9 = vpop.permute.xlu0 %5182 }
 0x8b5   :  { %5119 = vmatpush.bf16.msrb.mxu0 %v5097_v21  ;;  %5133 = vmatpush.bf16.msrb.mxu1 %v5098_v27  ;;  %v5195_v43 = vsel %vm797_vm8, %v5183_v9, %v5187_v31  ;;  %v5197_v47 = vsel %vm797_vm8, %v7998_v55, %v5183_v9  ;;  %v8336_v21 = vld [vmem:[#allocation38_spill] sm:$0xff] }
 0x8b6   :  { %v5204_v19 = vmul.f32 %v5197_v47, %v8330_v0  ;;  %v5205_v45 = vmul.f32 %v5195_v43, %v8331_v23 }
 0x8b7   :  { %v5185_v63 = vpop.permute.xlu1 %5184  ;;  %v5300_v29 = vpop.permute.xlu2 %5299 }
 0x8b8   :  { %v5194_v61 = vsel %vm797_vm8, %v5181_v5, %v5185_v63  ;;  %5895 = vmatmul.msk.bf16.vlgmr.msrb.gmra.mxu1 %vm4497_vm10, %v5939_v6  ;;  %5896 = vmatmul.msk.bf16.vlgmr.msrb.gmra.mxu2 %vm4497_vm10, %v5939_v6  ;;  %v5208_v26 = vpack.c.bf16 %v5204_v19, %v5200_v1  ;;  %v5192_v13 = vsel %vm797_vm8, %v5185_v63, %v5189_v41 }
 0x8b9   :  { %v5201_v60 = vmul.f32 %v5194_v61, %v8331_v23  ;;  %5897 = vmatmul.msk.bf16.vlgmr.msrb.gmra.mxu3 %vm4497_vm10, %v5939_v6  ;;  %v5202_v35 = vmul.f32 %v5192_v13, %v8333_v34 }
 0x8ba   :  { %5894 = vmatmul.msk.bf16.vlgmr.msrb.gmra.mxu0 %vm4497_vm10, %v5939_v6 }
 0x8bb   :  { %v5209_v39 = vpack.c.bf16 %v5205_v45, %v5201_v60  ;;  %5230 = vmatpush.bf16.msra.mxu0 %v5208_v26 }
 0x8bc   :  { %v5296_v32 = vpop.permute.xlu0 %5295 }
 0x8bd   :  { %5244 = vmatpush.bf16.msra.mxu1 %v5209_v39  ;;  %v5303_v25 = vsel %vm902_vm9, %v5296_v32, %v5300_v29 }
 0x8be   :  { %v5313_v17 = vmul.f32 %v5303_v25, %v8335_v42 }
 0x8bf   :  { %v5191_v59 = vpop.permute.xlu1 %5190  ;;  %v5294_v44 = vpop.permute.xlu2 %5293 }
 0x8c0   :  { %v5193_v18 = vsel %vm797_vm8, %v5187_v31, %v5191_v59  ;;  %v5199_v56 = vsel %vm797_vm8, %v5191_v59, %v7998_v55  ;;  %v5308_v11 = vsel %vm902_vm9, %v5290_v28, %v5294_v44 }
 0x8c1   :  { %v5206_v53 = vmul.f32 %v5193_v18, %v8333_v34  ;;  %v5207_v46 = vmul.f32 %v5199_v56, %v8332_v62  ;;  %v5315_v27 = vmul.f32 %v5308_v11, %v8336_v21 }
 0x8c3   :  { %v5210_v54 = vpack.c.bf16 %v5206_v53, %v5202_v35  ;;  %v5211_v49 = vpack.c.bf16 %v5207_v46, %v5203_v30 }
 0x8c4   :  { %v4524_v20 = vpop.f32.mrf.mxu1  ;;  %v5302_v12 = vpop.permute.xlu0 %5301 }
 0x8c5   :  { %5258 = vmatpush.bf16.msra.mxu2 %v5210_v54  ;;  %5272 = vmatpush.bf16.msra.mxu3 %v5211_v49  ;;  %v5310_v55 = vsel %vm902_vm9, %v5302_v12, %v5290_v28 }
 0x8c6   :  { %v5318_v15 = vmul.f32 %v5310_v55, %v8334_v22 }
 0x8c7   :  { %v5288_v51 = vpop.permute.xlu1 %5287 }
 0x8c8   :  { %v5309_v24 = vsel %vm902_vm9, %v5300_v29, %v5288_v51  ;;  %5905 = vmatmul.msk.bf16.vlgmr.msra.gmra.mxu1 %vm4497_vm10, %v5940_v10  ;;  %5906 = vmatmul.msk.bf16.vlgmr.msra.gmra.mxu2 %vm4497_vm10, %v5940_v10 }
 0x8c9   :  { %v5314_v38 = vmul.f32 %v5309_v24, %v8334_v22  ;;  %5907 = vmatmul.msk.bf16.vlgmr.msra.gmra.mxu3 %vm4497_vm10, %v5940_v10 }
 0x8ca   :  { %5904 = vmatmul.msk.bf16.vlgmr.msra.gmra.mxu0 %vm4497_vm10, %v5940_v10 }
 0x8cb   :  { %v5322_v33 = vpack.c.bf16 %v5318_v15, %v5314_v38 }
 0x8cc   :  { %v4526_v5 = vpop.f32.mrf.mxu1 }
 0x8cd   :  { %5383 = vmatpush.bf16.msrb.mxu3 %v5322_v33 }
 0x8cf   :  { %v5298_v3 = vpop.permute.xlu1 %5297 }
 0x8d0   :  { %v5304_v57 = vsel %vm902_vm9, %v5298_v3, %v5302_v12  ;;  %v5306_v48 = vsel %vm902_vm9, %v5294_v44, %v5298_v3 }
 0x8d1   :  { %v5317_v41 = vmul.f32 %v5304_v57, %v8335_v42  ;;  %v5316_v6 = vmul.f32 %v5306_v48, %v8337_v14 }
 0x8d3   :  { %v5321_v58 = vpack.c.bf16 %v5317_v41, %v5313_v17 }
 0x8d4   :  { %v4538_v16 = vpop.f32.mrf.mxu2  ;;  %v4588_v40 = vpop.f32.mrf.mxu1 }
 0x8d5   :  { %v4589_v7 = vadd.f32 %v4588_v40, %v4524_v20  ;;  %5369 = vmatpush.bf16.msrb.mxu2 %v5321_v58 }
 0x8d6   :  { %v4510_v50 = vpop.f32.mrf.mxu0 }
 0x8d7   :  { %v5292_v36 = vpop.permute.xlu1 %5291 }
 0x8d8   :  { %v5305_v8 = vsel %vm902_vm9, %v5292_v36, %v5296_v32  ;;  %v5307_v31 = vsel %vm902_vm9, %v5288_v51, %v5292_v36  ;;  %5916 = vmatmul.msk.bf16.vlgmr.msrb.gmra.mxu2 %vm4497_vm10, %v5941_v37 }
 0x8d9   :  { %v5311_v9 = vmul.f32 %v5307_v31, %v8336_v21  ;;  %v5312_v43 = vmul.f32 %v5305_v8, %v8337_v14  ;;  %5917 = vmatmul.msk.bf16.vlgmr.msrb.gmra.mxu3 %vm4497_vm10, %v5941_v37 }
 0x8db   :  { %v5319_v47 = vpack.c.bf16 %v5315_v27, %v5311_v9  ;;  %v5320_v0 = vpack.c.bf16 %v5316_v6, %v5312_v43 }
 0x8dc   :  { %v4540_v1 = vpop.f32.mrf.mxu2  ;;  %v4552_v19 = vpop.f32.mrf.mxu3 }
 0x8dd   :  { %v4590_v63 = vpop.f32.mrf.mxu1  ;;  %5341 = vmatpush.bf16.msrb.mxu0 %v5319_v47  ;;  %5355 = vmatpush.bf16.msrb.mxu1 %v5320_v0 }
 0x8de   :  { %v4591_v4 = vadd.f32 %v4590_v63, %v4526_v5  ;;  %v4512_v61 = vpop.f32.mrf.mxu0 }
 0x8e0   :  { %5914 = vmatmul.msk.bf16.vlgmr.msrb.gmra.mxu0 %vm4497_vm10, %v5941_v37  ;;  %5915 = vmatmul.msk.bf16.vlgmr.msrb.gmra.mxu1 %vm4497_vm10, %v5941_v37 }
 0x8e4   :  { %v4554_v23 = vpop.f32.mrf.mxu3  ;;  %v4602_v45 = vpop.f32.mrf.mxu2 }
 0x8e5   :  { %v4603_v26 = vadd.f32 %v4602_v45, %v4538_v16  ;;  %v4691_v60 = vpop.f32.mrf.mxu1 }
 0x8e6   :  { %v4725_v39 = vadd.f32 %v4691_v60, %v4589_v7  ;;  %v4574_v28 = vpop.f32.mrf.mxu0 }
 0x8e7   :  { %v4575_v32 = vadd.f32 %v4574_v28, %v4510_v50 }
 0x8ec   :  { %v4604_v52 = vpop.f32.mrf.mxu2  ;;  %v4616_v13 = vpop.f32.mrf.mxu3 }
 0x8ed   :  { %v4605_v59 = vadd.f32 %v4604_v52, %v4540_v1  ;;  %v4617_v18 = vadd.f32 %v4616_v13, %v4552_v19  ;;  %v4693_v56 = vpop.f32.mrf.mxu1 }
 0x8ee   :  { %v4729_v62 = vadd.f32 %v4693_v56, %v4591_v4  ;;  %v4576_v30 = vpop.f32.mrf.mxu0 }
 0x8ef   :  { %v4577_v34 = vadd.f32 %v4576_v30, %v4512_v61 }
 0x8f4   :  { %v4618_v35 = vpop.f32.mrf.mxu3 }
 0x8f5   :  { %v4619_v53 = vadd.f32 %v4618_v35, %v4554_v23  ;;  %v4802_v46 = vpop.f32.mrf.mxu1 }
 0x8f6   :  { %v4836_v54 = vadd.f32 %v4802_v46, %v4725_v39  ;;  %v4677_v49 = vpop.f32.mrf.mxu0 }
 0x8f7   :  { %v4724_v20 = vadd.f32 %v4677_v49, %v4575_v32 }
 0x8fb   :  { %v4705_v10 = vpop.f32.mrf.mxu2 }
 0x8fc   :  { %v4726_v12 = vadd.f32 %v4705_v10, %v4603_v26  ;;  %v4719_v55 = vpop.f32.mrf.mxu3 }
 0x8fd   :  { %v4804_v29 = vpop.f32.mrf.mxu1  ;;  %v4727_v51 = vadd.f32 %v4719_v55, %v4617_v18 }
 0x8fe   :  { %v8126_v24 = vadd.f32 %v4804_v29, %v4729_v62  ;;  %v4679_v22 = vpop.f32.mrf.mxu0 }
 0x8ff   :  { %v4728_v15 = vadd.f32 %v4679_v22, %v4577_v34 }
 0x903   :  { %v4707_v38 = vpop.f32.mrf.mxu2 }
 0x904   :  { %v4730_v33 = vadd.f32 %v4707_v38, %v4605_v59  ;;  %v4721_v5 = vpop.f32.mrf.mxu3 }
 0x905   :  { %v4913_v25 = vpop.f32.mrf.mxu1  ;;  %v4731_v3 = vadd.f32 %v4721_v5, %v4619_v53 }
 0x906   :  { %v4947_v2 = vadd.f32 %v4913_v25, %v4836_v54  ;;  %v4788_v57 = vpop.f32.mrf.mxu0 }
 0x907   :  { %v4835_v42 = vadd.f32 %v4788_v57, %v4724_v20 }
 0x90b   :  { %v4816_v17 = vpop.f32.mrf.mxu2 }
 0x90c   :  { %v4837_v41 = vadd.f32 %v4816_v17, %v4726_v12  ;;  %v4830_v44 = vpop.f32.mrf.mxu3 }
 0x90d   :  { %v4838_v58 = vadd.f32 %v4830_v44, %v4727_v51  ;;  %v4915_v21 = vpop.f32.mrf.mxu1 }
 0x90e   :  { %v4790_v16 = vpop.f32.mrf.mxu0  ;;  %v4951_v57 = vadd.f32 %v4915_v21, %v8126_v24 }
 0x90f   :  { %v4839_v40 = vadd.f32 %v4790_v16, %v4728_v15 }
 0x913   :  { %v4818_v37 = vpop.f32.mrf.mxu2 }
 0x914   :  { %v4841_v7 = vadd.f32 %v4818_v37, %v4730_v33  ;;  %v4832_v11 = vpop.f32.mrf.mxu3 }
 0x915   :  { %v4842_v48 = vadd.f32 %v4832_v11, %v4731_v3  ;;  %v5403_v11 = vpop.permute.xlu0 %5402 }
 0x917   :  { %v4899_v50 = vpop.f32.mrf.mxu0 }
 0x918   :  { %v4946_v36 = vadd.f32 %v4899_v50, %v4835_v42 }
 0x91b   :  { %v4927_v8 = vpop.f32.mrf.mxu2 }
 0x91c   :  { %v4948_v31 = vadd.f32 %v4927_v8, %v4837_v41  ;;  %v4941_v27 = vpop.f32.mrf.mxu3 }
 0x91d   :  { %v4949_v14 = vadd.f32 %v4941_v27, %v4838_v58 }
 0x91f   :  { %v4901_v6 = vpop.f32.mrf.mxu0 }
 0x920   :  { %v4950_v55 = vadd.f32 %v4901_v6, %v4839_v40  ;;  %v5408_v6 = vpop.permute.xlu1 %5407 }
 0x923   :  { %v4929_v9 = vpop.f32.mrf.mxu2 }
 0x924   :  { %v4943_v43 = vpop.f32.mrf.mxu3  ;;  %v4952_v20 = vadd.f32 %v4929_v9, %v4841_v7 }
 0x925   :  { %v5024_v47 = vpop.f32.mrf.mxu1  ;;  %v4953_v38 = vadd.f32 %v4943_v43, %v4842_v48 }
 0x926   :  { %v5058_v29 = vadd.f32 %v5024_v47, %v4947_v2 }
 0x927   :  { %v5010_v0 = vpop.f32.mrf.mxu0 }
 0x928   :  { %v5057_v10 = vadd.f32 %v5010_v0, %v4946_v36 }
 0x92b   :  { %v5038_v1 = vpop.f32.mrf.mxu2 }
 0x92c   :  { %v5052_v19 = vpop.f32.mrf.mxu3  ;;  %v5059_v46 = vadd.f32 %v5038_v1, %v4948_v31 }
 0x92d   :  { %v5026_v4 = vpop.f32.mrf.mxu1  ;;  %v5060_v54 = vadd.f32 %v5052_v19, %v4949_v14 }
 0x92e   :  { %v5062_v7 = vadd.f32 %v5026_v4, %v4951_v57 }
 0x92f   :  { %v5012_v63 = vpop.f32.mrf.mxu0 }
 0x930   :  { %v5061_v42 = vadd.f32 %v5012_v63, %v4950_v55 }
 0x933   :  { %v5040_v61 = vpop.f32.mrf.mxu2 }
 0x934   :  { %v5054_v23 = vpop.f32.mrf.mxu3  ;;  %v5063_v33 = vadd.f32 %v5040_v61, %v4952_v20  ;;  %v5435_v20 = vpop.permute.xlu2 %5434 }
 0x935   :  { %v5135_v26 = vpop.f32.mrf.mxu1  ;;  %v5064_v44 = vadd.f32 %v5054_v23, %v4953_v38 }
 0x936   :  { %v5169_v17 = vadd.f32 %v5135_v26, %v5058_v29 }
 0x937   :  { %v5121_v45 = vpop.f32.mrf.mxu0 }
 0x938   :  { %v5168_v5 = vadd.f32 %v5121_v45, %v5057_v10 }
 0x93b   :  { %v5149_v60 = vpop.f32.mrf.mxu2 }
 0x93c   :  { %v5163_v39 = vpop.f32.mrf.mxu3  ;;  %v5170_v12 = vadd.f32 %v5149_v60, %v5059_v46 }
 0x93d   :  { %v5137_v32 = vpop.f32.mrf.mxu1  ;;  %v5171_v51 = vadd.f32 %v5163_v39, %v5060_v54  ;;  %v5426_v54 = vld [vmem:[%s8162_s14] sm:$0xf] }
 0x93e   :  { %v5173_v31 = vadd.f32 %v5137_v32, %v5062_v7 }
 0x93f   :  { %v5123_v28 = vpop.f32.mrf.mxu0 }
 0x940   :  { %v5172_v50 = vadd.f32 %v5123_v28, %v5061_v42 }
 0x943   :  { %v5151_v52 = vpop.f32.mrf.mxu2 }
 0x944   :  { %v5165_v13 = vpop.f32.mrf.mxu3  ;;  %v5174_v58 = vadd.f32 %v5151_v52, %v5063_v33 }
 0x945   :  { %v5246_v56 = vpop.f32.mrf.mxu1  ;;  %v5175_v36 = vadd.f32 %v5165_v13, %v5064_v44 }
 0x946   :  { %v5280_v40 = vadd.f32 %v5246_v56, %v5169_v17 }
 0x947   :  { %v5232_v59 = vpop.f32.mrf.mxu0 }
 0x948   :  { %v5279_v16 = vadd.f32 %v5232_v59, %v5168_v5 }
 0x94b   :  { %v5260_v18 = vpop.f32.mrf.mxu2 }
 0x94c   :  { %v5274_v62 = vpop.f32.mrf.mxu3  ;;  %v5281_v25 = vadd.f32 %v5260_v18, %v5170_v12 }
 0x94d   :  { %v5248_v53 = vpop.f32.mrf.mxu1  ;;  %v5282_v41 = vadd.f32 %v5274_v62, %v5171_v51 }
 0x94e   :  { %v5284_v47 = vadd.f32 %v5248_v53, %v5173_v31 }
 0x94f   :  { %v5234_v34 = vpop.f32.mrf.mxu0 }
 0x950   :  { %v5283_v24 = vadd.f32 %v5234_v34, %v5172_v50 }
 0x953   :  { %v5262_v30 = vpop.f32.mrf.mxu2 }
 0x954   :  { %v5276_v35 = vpop.f32.mrf.mxu3  ;;  %v5285_v48 = vadd.f32 %v5262_v30, %v5174_v58 }
 0x955   :  { %v5286_v21 = vadd.f32 %v5276_v35, %v5175_v36 }
 0x95b   :  { %v5371_v49 = vpop.f32.mrf.mxu2 }
 0x95c   :  { %v5385_v22 = vpop.f32.mrf.mxu3  ;;  %v5392_v37 = vadd.f32 %v5371_v49, %v5281_v25 }
 0x95d   :  { %v5343_v15 = vpop.f32.mrf.mxu0  ;;  %v5357_v3 = vpop.f32.mrf.mxu1  ;;  %v5393_v2 = vadd.f32 %v5385_v22, %v5282_v41 }
 0x95e   :  { %v5390_v8 = vadd.f32 %v5343_v15, %v5279_v16  ;;  %v5391_v27 = vadd.f32 %v5357_v3, %v5280_v40  ;;  %v5412_v9 = vadd.f32 %v5403_v11, %v5392_v37 }
 0x95f   :  { %v5413_v0 = vadd.f32 %v5403_v11, %v5393_v2 }
 0x960   :  { %v5410_v63 = vadd.f32 %v5403_v11, %v5390_v8  ;;  %v5411_v26 = vadd.f32 %v5403_v11, %v5391_v27  ;;  %v5420_v39 = vmax.f32 %v5412_v9, 0.0 }
 0x961   :  { %v5421_v13 = vmax.f32 %v5413_v0, 0.0 }
 0x962   :  { %v5418_v18 = vmax.f32 %v5410_v63, 0.0  ;;  %v5419_v34 = vmax.f32 %v5411_v26, 0.0 }
 0x963   :  { %v5373_v14 = vpop.f32.mrf.mxu2 }
 0x964   :  { %v5396_v43 = vadd.f32 %v5373_v14, %v5285_v48  ;;  %v5387_v1 = vpop.f32.mrf.mxu3 }
 0x965   :  { %v5345_v19 = vpop.f32.mrf.mxu0  ;;  %v5397_v4 = vadd.f32 %v5387_v1, %v5286_v21  ;;  %v5359_v45 = vpop.f32.mrf.mxu1 }
 0x966   :  { %v5416_v61 = vadd.f32 %v5408_v6, %v5396_v43  ;;  %v5394_v23 = vadd.f32 %v5345_v19, %v5283_v24  ;;  %v5395_v60 = vadd.f32 %v5359_v45, %v5284_v47 }
 0x967   :  { %v5417_v28 = vadd.f32 %v5408_v6, %v5397_v4 }
 0x968   :  { %v5424_v32 = vmax.f32 %v5416_v61, 0.0  ;;  %v5414_v52 = vadd.f32 %v5408_v6, %v5394_v23  ;;  %v5415_v59 = vadd.f32 %v5408_v6, %v5395_v60 }
 0x969   :  { %v5425_v56 = vmax.f32 %v5417_v28, 0.0 }
 0x96a   :  { %v5422_v62 = vmax.f32 %v5414_v52, 0.0  ;;  %v5429_v30 = vpack.c.bf16 %v5424_v32, %v5420_v39  ;;  %v5423_v35 = vmax.f32 %v5415_v59, 0.0 }
 0x96b   :  { %v5430_v46 = vpack.c.bf16 %v5425_v56, %v5421_v13 }
 0x96c   :  { %v5427_v53 = vpack.c.bf16 %v5422_v62, %v5418_v18  ;;  %5473 = vmatpush.bf16.msra.mxu2 %v5429_v30  ;;  %v5428_v49 = vpack.c.bf16 %v5423_v35, %v5419_v34 }
 0x96d   :  { %5486 = vmatpush.bf16.msra.mxu3 %v5430_v46 }
 0x96e   :  { %5447 = vmatpush.bf16.msra.mxu0 %v5427_v53  ;;  %5460 = vmatpush.bf16.msra.mxu1 %v5428_v49 }
 0x96f   :  { %5920 = vmatmul.msk.bf16.vlgmr.msra.gmra.mxu2 %vm4497_vm10, %v5426_v54 }
 0x970   :  { %5921 = vmatmul.msk.bf16.vlgmr.msra.gmra.mxu3 %vm4497_vm10, %v5426_v54 }
 0x971   :  { %5918 = vmatmul.msk.bf16.vlgmr.msra.gmra.mxu0 %vm4497_vm10, %v5426_v54  ;;  %5919 = vmatmul.msk.bf16.vlgmr.msra.gmra.mxu1 %vm4497_vm10, %v5426_v54 }
 0x9ee   :  { %v5449_v10 = vpop.f32.mrf.mxu0  ;;  %v5462_v55 = vpop.f32.mrf.mxu1 }
 0x9ef   :  { %v5450_v12 = vadd.f32 %v5449_v10, %v5435_v20  ;;  %v5463_v29 = vadd.f32 %v5462_v55, %v5435_v20 }
 0x9f1   :  { %v5492_v51 = vmax.f32 %v5450_v12, %v5463_v29 }
 0x9f2   :  { %v5475_v22 = vpop.f32.mrf.mxu2 }
 0x9f3   :  { %v5476_v15 = vadd.f32 %v5475_v22, %v5435_v20  ;;  %v5488_v38 = vpop.f32.mrf.mxu3  ;;  %5493 = vmax.xlane.f32.xlu0 %v5492_v51 }
 0x9f4   :  { %v5489_v33 = vadd.f32 %v5488_v38, %v5435_v20 }
 0x9f6   :  { %v5451_v5 = vpop.f32.mrf.mxu0  ;;  %v5522_v25 = vmax.f32 %v5476_v15, %v5489_v33  ;;  %v5464_v3 = vpop.f32.mrf.mxu1 }
 0x9f8   :  { %5523 = vmax.xlane.f32.xlu1 %v5522_v25 }
 0x9fa   :  { %v5477_v57 = vpop.f32.mrf.mxu2 }
 0x9fb   :  { %v5490_v42 = vpop.f32.mrf.mxu3 }
 0xa66   :  { %v5494_v17 = vpop.xlane.xlu0 %5493 }
 0xa67   :  { %v5495_v41 = vsub.f32 %v5450_v12, %v5494_v17  ;;  %v5496_v44 = vsub.f32 %v5463_v29, %v5494_v17 }
 0xa69   :  { %v5497_v58 = vmul.f32 1.442695, %v5495_v41  ;;  %v5499_v16 = vmul.f32 1.442695, %v5496_v44 }
 0xa6b   :  { %5956 = vpow2.f32 %v5497_v58  ;;  %v5524_v37 = vpop.xlane.xlu1 %5523 }
 0xa6c   :  { %5958 = vpow2.f32 %v5499_v16  ;;  %v5525_v7 = vsub.f32 %v5476_v15, %v5524_v37  ;;  %v5526_v40 = vsub.f32 %v5489_v33, %v5524_v37 }
 0xa6e   :  { %v5527_v2 = vmul.f32 1.442695, %v5525_v7  ;;  %v5529_v11 = vmul.f32 1.442695, %v5526_v40 }
 0xa70   :  { %5960 = vpow2.f32 %v5527_v2 }
 0xa71   :  { %v5957_v50 = vpop.eup %5956  ;;  %5962 = vpow2.f32 %v5529_v11 }
 0xa72   :  { %v5959_v36 = vpop.eup %5958 }
 0xa73   :  { %v5501_v48 = vadd.f32 %v5959_v36, %v5957_v50 }
 0xa75   :  { %5502 = vadd.xlane.f32.xlu2 %v5501_v48 }
 0xa76   :  { %v5961_v8 = vpop.eup %5960 }
 0xa77   :  { %v5963_v31 = vpop.eup %5962 }
 0xa78   :  { %v5531_v27 = vadd.f32 %v5963_v31, %v5961_v8 }
 0xa7d   :  { %5532 = vadd.xlane.f32.xlu2 %v5531_v27 }
 0xae8   :  { %v5503_v14 = vpop.xlane.xlu2 %5502 }
 0xae9   :  { %5964 = vrcp.f32 %v5503_v14  ;;  %v5515_v43 = vand.u32 2147483648, %v5503_v14  ;;  %v5513_v0 = vand.u32 2147483647, %v5503_v14  ;;  %vm5509_vm12 = vweird.f32 %v5503_v14 }
 0xaeb   :  { %v5516_v63 = vor.u32 1.1754944e-38, %v5515_v43  ;;  %vm5514_vm14 = vcmp.eq.f32.partialorder %v5513_v0, 8.507059e+37 }
 0xaef   :  { %v5965_v6 = vpop.eup %5964 }
 0xaf0   :  { %v5505_v24 = vmul.f32 %v5965_v6, %v5503_v14  ;;  %v5533_v21 = vpop.xlane.xlu2 %5532  ;;  %vm5510_vm11 = vweird.f32 %v5965_v6 }
 0xaf1   :  { %5966 = vrcp.f32 %v5533_v21  ;;  %vm5511_vm13 = vmor %vm5509_vm12, %vm5510_vm11  ;;  %v5545_v39 = vand.u32 2147483648, %v5533_v21  ;;  %v5543_v32 = vand.u32 2147483647, %v5533_v21  ;;  %vm5539_vm0 = vweird.f32 %v5533_v21 }
 0xaf2   :  { %v5506_v9 = vsub.f32 1.0, %v5505_v24 }
 0xaf3   :  { %v5546_v13 = vor.u32 1.1754944e-38, %v5545_v39  ;;  %vm5544_vm2 = vcmp.eq.f32.partialorder %v5543_v32, 8.507059e+37 }
 0xaf4   :  { %v5507_v47 = vmul.f32 %v5965_v6, %v5506_v9 }
 0xaf6   :  { %v5508_v1 = vadd.f32 %v5965_v6, %v5507_v47 }
 0xaf7   :  { %v5967_v19 = vpop.eup %5966 }
 0xaf8   :  { %v5512_v4 = vsel %vm5511_vm13, %v5965_v6, %v5508_v1  ;;  %v5535_v61 = vmul.f32 %v5967_v19, %v5533_v21  ;;  %vm5540_vm15 = vweird.f32 %v5967_v19 }
 0xaf9   :  { %v5517_v23 = vsel %vm5514_vm14, %v5516_v63, %v5512_v4  ;;  %vm5541_vm1 = vmor %vm5539_vm0, %vm5540_vm15 }
 0xafa   :  { %v5518_v45 = vmul.f32 %v5957_v50, %v5517_v23  ;;  %v5519_v26 = vmul.f32 %v5959_v36, %v5517_v23  ;;  %v5536_v60 = vsub.f32 1.0, %v5535_v61 }
 0xafc   :  { %5520 = vst [vmem:[%s8164_s16] sm:$0xff] %v5518_v45  ;;  %v5537_v28 = vmul.f32 %v5967_v19, %v5536_v60 }
 0xafd   :  { %5521 = vst [vmem:[%s8164_s16 + $0x8] sm:$0xff] %v5519_v26 }
 0xafe   :  { %v5538_v52 = vadd.f32 %v5967_v19, %v5537_v28 }
 0xb00   :  { %v5542_v59 = vsel %vm5541_vm1, %v5967_v19, %v5538_v52 }
 0xb01   :  { %v5547_v18 = vsel %vm5544_vm2, %v5546_v13, %v5542_v59 }
 0xb02   :  { %v5548_v56 = vmul.f32 %v5961_v8, %v5547_v18  ;;  %v5549_v62 = vmul.f32 %v5963_v31, %v5547_v18 }
 0xb04   :  { %5922 = vst [vmem:[%s8164_s16 + $0x10] sm:$0xff] %v5548_v56 }
 0xb05   :  { %5923 = vst [vmem:[%s8164_s16 + $0x18] sm:$0xff] %v5549_v62 }
 0xb06   :  { %5557 = vsyncpa [#allocation3], 1 }
 0xb07   :  { %5558 = vsyncpa [#allocation5], 1 }

</bundles_post_ra>
